<compile_context>
chip_gen: v7x
topology: tpu7x:2x2x1
jax: 0.10.0
libtpu: 0.0.40
codegen_flags: <defaults>
</compile_context>

<pallas_src>
import functools

import jax
import jax.numpy as jnp
from jax import lax
from jax.experimental import pallas as pl
from jax.experimental.pallas import tpu as pltpu


def _round_up(x, m):
    return ((x + m - 1) // m) * m


# ---------------------------------------------------------------------------
# Kernel: one grid step = one Tc-sized time chunk (fwd chunk i, bwd chunk nT-1-i).
# ---------------------------------------------------------------------------
def _encoder_grid_kernel(Tc, Bp, Hp, T_total,
                         xf_ref, xb_ref,          # [Tc*Bp, Ep] f32 time-major chunks
                         len_ref,                 # [Bp, 1] i32 valid lengths
                         wih_f_ref, wih_b_ref,    # [Ep, 3Hp]
                         bgi_f_ref, bgi_b_ref,    # [1, 3Hp]  (b_ih + b_hh_{r,z} folded)
                         whh_ref,                 # [2Hp, 6Hp] block-diag (fwd | bwd)
                         bhn_f_ref, bhn_b_ref,    # [1, Hp]   (b_hh_n stays inside r*(...))
                         wfc_f_ref, wfc_b_ref,    # [Hp, Hp]
                         bfc_ref,                 # [1, Hp]
                         out_ref,                 # [Bp, Hp]
                         gi_f_ref, gi_b_ref,      # scratch [Tc*Bp, 3Hp]
                         h_ref):                  # scratch [Bp, 2Hp] carried hidden state
    H3 = 3 * Hp
    i = pl.program_id(0)
    nT = pl.num_programs(0)

    @pl.when(i == 0)
    def _init():
        h_ref[...] = jnp.zeros_like(h_ref)

    # Hoisted per-chunk input->hidden projections (off the serial latency chain).
    gi_f_ref[...] = (jnp.dot(xf_ref[...], wih_f_ref[...],
                             preferred_element_type=jnp.float32) + bgi_f_ref[...])
    gi_b_ref[...] = (jnp.dot(xb_ref[...], wih_b_ref[...],
                             preferred_element_type=jnp.float32) + bgi_b_ref[...])

    whh = whh_ref[...]              # [2Hp, 6Hp] block-diagonal
    bhn_f = bhn_f_ref[...]
    bhn_b = bhn_b_ref[...]
    lens = len_ref[...]             # [Bp, 1] i32
    t0 = i * Tc

    def gates(gi, gh, h_old, bhn):
        r = jax.nn.sigmoid(gi[:, 0:Hp] + gh[:, 0:Hp])
        z = jax.nn.sigmoid(gi[:, Hp:2 * Hp] + gh[:, Hp:2 * Hp])
        n = jnp.tanh(gi[:, 2 * Hp:H3] + r * (gh[:, 2 * Hp:H3] + bhn))
        return (1.0 - z) * n + z * h_old

    def body(l, h_cat):
        t = t0 + l                       # fwd global time
        tb = (T_total - 1) - t           # bwd global time (decreasing)
        gi_f = gi_f_ref[pl.ds(pl.multiple_of(l * Bp, Bp), Bp), :]
        gi_b = gi_b_ref[pl.ds(pl.multiple_of((Tc - 1 - l) * Bp, Bp), Bp), :]
        # Single recurrent matmul for BOTH directions (block-diagonal W_hh,
        # K = 2*Hp); this dot is the only thing on the serial dependency chain.
        gh = jnp.dot(h_cat, whh, preferred_element_type=jnp.float32)   # [Bp, 6Hp]
        h_f_old = h_cat[:, 0:Hp]
        h_b_old = h_cat[:, Hp:2 * Hp]
        h_f = gates(gi_f, gh[:, 0:H3], h_f_old, bhn_f)
        h_b = gates(gi_b, gh[:, H3:2 * H3], h_b_old, bhn_b)
        # pack_padded_sequence semantics: freeze outside the valid range.
        h_f = jnp.where(lens > t, h_f, h_f_old)
        h_b = jnp.where(lens > tb, h_b, h_b_old)
        return jnp.concatenate([h_f, h_b], axis=1)

    h_cat = lax.fori_loop(0, Tc, body, h_ref[...], unroll=min(Tc, 8))
    h_ref[...] = h_cat

    @pl.when(i == nT - 1)
    def _finish():
        # fc(cat(h_f, h_b)) == h_f @ W_top + h_b @ W_bot + b   (no concat/relayout).
        h_f = h_cat[:, 0:Hp]
        h_b = h_cat[:, Hp:2 * Hp]
        out_ref[...] = (jnp.dot(h_f, wfc_f_ref[...], preferred_element_type=jnp.float32)
                        + jnp.dot(h_b, wfc_b_ref[...], preferred_element_type=jnp.float32)
                        + bfc_ref[...])


# ---------------------------------------------------------------------------
# Parameter packing: per-gate Hp-padded columns (zero-filled padding keeps the
# padded hidden lanes exactly 0), folded biases, block-diagonal W_hh, split fc.
# ---------------------------------------------------------------------------
def _pad2(a, rows, cols):
    return jnp.pad(a, ((0, rows - a.shape[0]), (0, cols - a.shape[1])))


def pack_params(params, Ep, Hp):
    E = params["emb"].shape[1]
    H = params["whh_f"].shape[0]

    def pack_dir(wih, whh, bih, bhh):
        # wih: [E, 3H], whh: [H, 3H], bih/bhh: [1, 3H], gate order (r, z, n).
        wih_g = jnp.concatenate(
            [_pad2(wih[:, g * H:(g + 1) * H], Ep, Hp) for g in range(3)], axis=1)
        whh_g = jnp.concatenate(
            [_pad2(whh[:, g * H:(g + 1) * H], Hp, Hp) for g in range(3)], axis=1)
        b_r = bih[:, 0:H] + bhh[:, 0:H]
        b_z = bih[:, H:2 * H] + bhh[:, H:2 * H]
        b_n = bih[:, 2 * H:3 * H]
        bgi = jnp.concatenate([_pad2(b, 1, Hp) for b in (b_r, b_z, b_n)], axis=1)
        bhn = _pad2(bhh[:, 2 * H:3 * H], 1, Hp)
        return wih_g, whh_g, bgi, bhn

    wih_f, whh_f, bgi_f, bhn_f = pack_dir(params["wih_f"], params["whh_f"],
                                          params["bih_f"], params["bhh_f"])
    wih_b, whh_b, bgi_b, bhn_b = pack_dir(params["wih_b"], params["whh_b"],
                                          params["bih_b"], params["bhh_b"])
    # Block-diagonal recurrent weight: [h_f | h_b] @ whh_bd = [h_f@Wf | h_b@Wb].
    z33 = jnp.zeros((Hp, 3 * Hp), jnp.float32)
    whh_bd = jnp.concatenate(
        [jnp.concatenate([whh_f, z33], axis=1),
         jnp.concatenate([z33, whh_b], axis=1)], axis=0)                 # [2Hp, 6Hp]
    wfc = params["wfc"]
    return dict(
        emb=jnp.pad(params["emb"], ((0, 0), (0, Ep - E))),
        wih_f=wih_f, wih_b=wih_b, bgi_f=bgi_f, bgi_b=bgi_b,
        whh_bd=whh_bd, bhn_f=bhn_f, bhn_b=bhn_b,
        wfc_f=_pad2(wfc[:H], Hp, Hp), wfc_b=_pad2(wfc[H:], Hp, Hp),
        bfc=_pad2(params["bfc"], 1, Hp),
    )


# ---------------------------------------------------------------------------
# Wrapper: time-major embedding gather at (near-)native E + T-chunked pallas_call.
# ---------------------------------------------------------------------------
def encoder_forward(params, input_seq, input_len, pad_idx=0, t_chunk=None):
    """input_seq: [B, T] int32, input_len: [B] int32 -> [B, H] float32."""
    B, T = input_seq.shape
    E = params["emb"].shape[1]
    H = params["whh_f"].shape[0]
    Bp = _round_up(max(B, 8), 8)       # f32 sublane tile
    Hp = _round_up(H, 128)             # lane tile (per gate)
    Ep = _round_up(E, 8)               # NO 128-padding of E: saves 4x HBM for x here

    Tc = min(T, 64) if t_chunk is None else t_chunk
    T_pad = _round_up(T, Tc)
    nT = T_pad // Tc

    kp = pack_params(params, Ep, Hp)

    # Pad the (cheap, int) token matrix and gather directly in time-major order.
    tok = jnp.full((Bp, T_pad), pad_idx, dtype=jnp.int32).at[:B, :T].set(input_seq)
    x = jnp.take(kp["emb"], tok.T, axis=0).astype(jnp.float32)      # [T_pad, Bp, Ep]
    x = x.reshape(T_pad * Bp, Ep)
    lens = jnp.zeros((Bp, 1), jnp.int32).at[:B, 0].set(input_len)

    kernel = functools.partial(_encoder_grid_kernel, Tc, Bp, Hp, T_pad)

    def const_spec(a):
        return pl.BlockSpec(a.shape, lambda i: (0, 0))

    grid_spec = pltpu.PrefetchScalarGridSpec(
        num_scalar_prefetch=0,
        grid=(nT,),
        in_specs=[
            pl.BlockSpec((Tc * Bp, Ep), lambda i: (i, 0)),              # x, fwd chunk
            pl.BlockSpec((Tc * Bp, Ep), lambda i: (nT - 1 - i, 0)),     # x, bwd chunk
            const_spec(lens),
            const_spec(kp["wih_f"]), const_spec(kp["wih_b"]),
            const_spec(kp["bgi_f"]), const_spec(kp["bgi_b"]),
            const_spec(kp["whh_bd"]),
            const_spec(kp["bhn_f"]), const_spec(kp["bhn_b"]),
            const_spec(kp["wfc_f"]), const_spec(kp["wfc_b"]), const_spec(kp["bfc"]),
        ],
        out_specs=pl.BlockSpec((Bp, Hp), lambda i: (0, 0)),
        scratch_shapes=[
            pltpu.VMEM((Tc * Bp, 3 * Hp), jnp.float32),   # GI fwd chunk
            pltpu.VMEM((Tc * Bp, 3 * Hp), jnp.float32),   # GI bwd chunk
            pltpu.VMEM((Bp, 2 * Hp), jnp.float32),        # carried [h_f | h_b]
        ],
    )

    # Explicit VMEM budget (v7x has only 64 MiB physical -> keep well under).
    itemsize = 4
    weight_bytes = sum(int(v.size) * itemsize for k, v in kp.items() if k != "emb")
    stream_bytes = 2 * 2 * Tc * Bp * Ep * itemsize          # 2 x-inputs, double-buffered
    scratch_bytes = (2 * Tc * Bp * 3 * Hp + Bp * 2 * Hp) * itemsize
    out_bytes = 2 * Bp * Hp * itemsize
    est = weight_bytes + stream_bytes + scratch_bytes + out_bytes
    vmem_limit = int(min(max(2 * est, 16 * 1024 * 1024), 48 * 1024 * 1024))

    out = pl.pallas_call(
        kernel,
        out_shape=jax.ShapeDtypeStruct((Bp, Hp), jnp.float32),
        grid_spec=grid_spec,
        compiler_params=pltpu.CompilerParams(
            dimension_semantics=("arbitrary",),      # carried hidden state across chunks
            vmem_limit_bytes=vmem_limit),
    )(x, x, lens,
      kp["wih_f"], kp["wih_b"], kp["bgi_f"], kp["bgi_b"],
      kp["whh_bd"], kp["bhn_f"], kp["bhn_b"],
      kp["wfc_f"], kp["wfc_b"], kp["bfc"])
    return out[:B, :H]


# ---------------------------------------------------------------------------
# Pure-JAX reference (same math, unpadded, HIGHEST-precision dots).
# ---------------------------------------------------------------------------
def encoder_reference(params, input_seq, input_len):
    B, T = input_seq.shape
    H = params["whh_f"].shape[0]
    hp = jax.lax.Precision.HIGHEST
    emb = jnp.take(params["emb"], input_seq, axis=0).astype(jnp.float32)   # [B, T, E]
    mask = (jnp.arange(T)[None, :] < input_len[:, None]).astype(jnp.float32)

    def gru_step(x_t, h, wih, whh, bih, bhh):
        gi = jnp.dot(x_t, wih, precision=hp) + bih
        gh = jnp.dot(h, whh, precision=hp) + bhh
        r = jax.nn.sigmoid(gi[:, :H] + gh[:, :H])
        z = jax.nn.sigmoid(gi[:, H:2 * H] + gh[:, H:2 * H])
        n = jnp.tanh(gi[:, 2 * H:] + r * gh[:, 2 * H:])
        return (1.0 - z) * n + z * h

    def run_dir(wih, whh, bih, bhh, reverse):
        h = jnp.zeros((B, H), jnp.float32)
        ts = range(T - 1, -1, -1) if reverse else range(T)
        for t in ts:
            m = mask[:, t][:, None]
            h_new = gru_step(emb[:, t, :], h, wih, whh, bih, bhh)
            h = m * h_new + (1.0 - m) * h
        return h

    h_f = run_dir(params["wih_f"], params["whh_f"], params["bih_f"], params["bhh_f"], False)
    h_b = run_dir(params["wih_b"], params["whh_b"], params["bih_b"], params["bhh_b"], True)
    return (jnp.dot(jnp.concatenate([h_f, h_b], axis=1), params["wfc"], precision=hp)
            + params["bfc"])


# ---------------------------------------------------------------------------
# Deterministic parameter init (shapes follow nn.Embedding / nn.GRU / nn.Linear,
# stored pre-transposed for right-multiplication).
# ---------------------------------------------------------------------------
def init_params(key, vocab_dim, emb_dim, enc_hidden_dim, pad_idx):
    H, E = enc_hidden_dim, emb_dim
    keys = jax.random.split(key, 12)
    stdv = 1.0 / jnp.sqrt(jnp.float32(H))

    def u(k, shape):
        return jax.random.uniform(k, shape, jnp.float32, -stdv, stdv)

    emb = jax.random.normal(keys[0], (vocab_dim, E), jnp.float32)
    emb = emb.at[pad_idx].set(0.0)  # padding_idx row is zero

    return dict(
        emb=emb,
        # forward direction (GRU gate order r, z, n)
        wih_f=u(keys[1], (E, 3 * H)), whh_f=u(keys[2], (H, 3 * H)),
        bih_f=u(keys[3], (1, 3 * H)), bhh_f=u(keys[4], (1, 3 * H)),
        # reverse direction
        wih_b=u(keys[5], (E, 3 * H)), whh_b=u(keys[6], (H, 3 * H)),
        bih_b=u(keys[7], (1, 3 * H)), bhh_b=u(keys[8], (1, 3 * H)),
        # fc: Linear(2H -> H)
        wfc=u(keys[9], (2 * H, H)), bfc=u(keys[10], (1, H)),
    )


if __name__ == "__main__":
    VOCAB, EMB, HID, PAD = 50, 32, 32, 0
    B, T = 4, 8

    key = jax.random.PRNGKey(0)
    kp_, ks_ = jax.random.split(key)
    params = init_params(kp_, VOCAB, EMB, HID, PAD)

    # tokens in [1, VOCAB) with trailing padding per the given lengths
    input_len = jnp.array([8, 5, 3, 1], dtype=jnp.int32)
    tokens = jax.random.randint(ks_, (B, T), 1, VOCAB, dtype=jnp.int32)
    valid = jnp.arange(T)[None, :] < input_len[:, None]
    input_seq = jnp.where(valid, tokens, PAD).astype(jnp.int32)

    ref = jax.block_until_ready(encoder_reference(params, input_seq, input_len))

    # Exercise grid sizes 1, 2 and 3 (the last also covers T padding to a chunk multiple).
    for t_chunk in (8, 4, 3):
        out = jax.block_until_ready(
            encoder_forward(params, input_seq, input_len, pad_idx=PAD, t_chunk=t_chunk))
        assert out.shape == (B, HID)
        err = float(jnp.max(jnp.abs(out - ref)))
        assert err < 5e-3, f"t_chunk={t_chunk}: max abs diff = {err}"

    print("KERNEL_OK")
</pallas_src>

<mosaic_0001>
module attributes {stable_mosaic.version = 11 : i64} {
  func.func @_encoder_grid_kernel(%arg0: i32, %arg1: memref<64x32xf32, #tpu.memory_space<vmem>>, %arg2: memref<64x32xf32, #tpu.memory_space<vmem>>, %arg3: memref<8x1xi32, #tpu.memory_space<vmem>>, %arg4: memref<32x384xf32, #tpu.memory_space<vmem>>, %arg5: memref<32x384xf32, #tpu.memory_space<vmem>>, %arg6: memref<1x384xf32, #tpu.memory_space<vmem>>, %arg7: memref<1x384xf32, #tpu.memory_space<vmem>>, %arg8: memref<256x768xf32, #tpu.memory_space<vmem>>, %arg9: memref<1x128xf32, #tpu.memory_space<vmem>>, %arg10: memref<1x128xf32, #tpu.memory_space<vmem>>, %arg11: memref<128x128xf32, #tpu.memory_space<vmem>>, %arg12: memref<128x128xf32, #tpu.memory_space<vmem>>, %arg13: memref<1x128xf32, #tpu.memory_space<vmem>>, %arg14: memref<8x128xf32, #tpu.memory_space<vmem>>, %arg15: memref<64x384xf32, #tpu.memory_space<vmem>>, %arg16: memref<64x384xf32, #tpu.memory_space<vmem>>, %arg17: memref<8x256xf32, #tpu.memory_space<vmem>>) attributes {dimension_semantics = [#tpu.dimension_semantics<arbitrary>], iteration_bounds = array<i64: 1>, scalar_prefetch = 0 : i64, scratch_operands = 3 : i64, tpu.core_type = #tpu.core_type<tc>, window_params = [{transform_indices = @transform_0, window_bounds = array<i64: 64, 32>}, {transform_indices = @transform_1, window_bounds = array<i64: 64, 32>}, {pipeline_mode = #tpu.pipeline_mode<synchronous>, transform_indices = @transform_2, window_bounds = array<i64: 8, 1>}, {pipeline_mode = #tpu.pipeline_mode<synchronous>, transform_indices = @transform_3, window_bounds = array<i64: 32, 384>}, {pipeline_mode = #tpu.pipeline_mode<synchronous>, transform_indices = @transform_4, window_bounds = array<i64: 32, 384>}, {pipeline_mode = #tpu.pipeline_mode<synchronous>, transform_indices = @transform_5, window_bounds = array<i64: 1, 384>}, {pipeline_mode = #tpu.pipeline_mode<synchronous>, transform_indices = @transform_6, window_bounds = array<i64: 1, 384>}, {pipeline_mode = #tpu.pipeline_mode<synchronous>, transform_indices = @transform_7, window_bounds = array<i64: 256, 768>}, {pipeline_mode = #tpu.pipeline_mode<synchronous>, transform_indices = @transform_8, window_bounds = array<i64: 1, 128>}, {pipeline_mode = #tpu.pipeline_mode<synchronous>, transform_indices = @transform_9, window_bounds = array<i64: 1, 128>}, {pipeline_mode = #tpu.pipeline_mode<synchronous>, transform_indices = @transform_10, window_bounds = array<i64: 128, 128>}, {pipeline_mode = #tpu.pipeline_mode<synchronous>, transform_indices = @transform_11, window_bounds = array<i64: 128, 128>}, {pipeline_mode = #tpu.pipeline_mode<synchronous>, transform_indices = @transform_12, window_bounds = array<i64: 1, 128>}, {pipeline_mode = #tpu.pipeline_mode<synchronous>, transform_indices = @transform_13, window_bounds = array<i64: 8, 128>}]} {
    %c0_i32 = arith.constant 0 : i32
    %0 = arith.cmpi eq, %arg0, %c0_i32 : i32
    %1 = arith.extui %0 : i1 to i32
    %c0_i32_0 = arith.constant 0 : i32
    %2 = arith.cmpi ne, %1, %c0_i32_0 : i32
    scf.if %2 {
      %cst_137 = arith.constant 0.000000e+00 : f32
      %691 = vector.broadcast %cst_137 : f32 to vector<8x256xf32>
      %c0_138 = arith.constant 0 : index
      %c0_139 = arith.constant 0 : index
      %692 = vector.load %arg17[%c0_138, %c0_139] : memref<8x256xf32, #tpu.memory_space<vmem>>, vector<8x256xf32>
      tpu.vector_store %arg17[%c0_138, %c0_139], %691 {strides = array<i32>} : memref<8x256xf32, #tpu.memory_space<vmem>>, vector<8x256xf32>,
    } else {
    }
    %c0 = arith.constant 0 : index
    %c0_1 = arith.constant 0 : index
    %3 = vector.load %arg1[%c0, %c0_1] : memref<64x32xf32, #tpu.memory_space<vmem>>, vector<64x32xf32>
    %c0_2 = arith.constant 0 : index
    %c0_3 = arith.constant 0 : index
    %4 = vector.load %arg4[%c0_2, %c0_3] : memref<32x384xf32, #tpu.memory_space<vmem>>, vector<32x384xf32>
    %cst = arith.constant dense<0.000000e+00> : vector<64x384xf32>
    %5 = tpu.matmul %3, %4, %cst {dimension_numbers = #tpu.dot_dimension_numbers<[1], [0], [0], [1], [0, 0, 1, 1], [], []>} : vector<64x32xf32>, vector<32x384xf32>, vector<64x384xf32> -> vector<64x384xf32>
    %c0_4 = arith.constant 0 : index
    %c0_5 = arith.constant 0 : index
    %6 = vector.load %arg6[%c0_4, %c0_5] : memref<1x384xf32, #tpu.memory_space<vmem>>, vector<1x384xf32>
    %7 = vector.broadcast %6 : vector<1x384xf32> to vector<64x384xf32>
    %8 = arith.addf %5, %7 : vector<64x384xf32>
    %c0_6 = arith.constant 0 : index
    %c0_7 = arith.constant 0 : index
    %9 = vector.load %arg15[%c0_6, %c0_7] : memref<64x384xf32, #tpu.memory_space<vmem>>, vector<64x384xf32>
    tpu.vector_store %arg15[%c0_6, %c0_7], %8 {strides = array<i32>} : memref<64x384xf32, #tpu.memory_space<vmem>>, vector<64x384xf32>,
    %c0_8 = arith.constant 0 : index
    %c0_9 = arith.constant 0 : index
    %10 = vector.load %arg2[%c0_8, %c0_9] : memref<64x32xf32, #tpu.memory_space<vmem>>, vector<64x32xf32>
    %c0_10 = arith.constant 0 : index
    %c0_11 = arith.constant 0 : index
    %11 = vector.load %arg5[%c0_10, %c0_11] : memref<32x384xf32, #tpu.memory_space<vmem>>, vector<32x384xf32>
    %cst_12 = arith.constant dense<0.000000e+00> : vector<64x384xf32>
    %12 = tpu.matmul %10, %11, %cst_12 {dimension_numbers = #tpu.dot_dimension_numbers<[1], [0], [0], [1], [0, 0, 1, 1], [], []>} : vector<64x32xf32>, vector<32x384xf32>, vector<64x384xf32> -> vector<64x384xf32>
    %c0_13 = arith.constant 0 : index
    %c0_14 = arith.constant 0 : index
    %13 = vector.load %arg7[%c0_13, %c0_14] : memref<1x384xf32, #tpu.memory_space<vmem>>, vector<1x384xf32>
    %14 = vector.broadcast %13 : vector<1x384xf32> to vector<64x384xf32>
    %15 = arith.addf %12, %14 : vector<64x384xf32>
    %c0_15 = arith.constant 0 : index
    %c0_16 = arith.constant 0 : index
    %16 = vector.load %arg16[%c0_15, %c0_16] : memref<64x384xf32, #tpu.memory_space<vmem>>, vector<64x384xf32>
    tpu.vector_store %arg16[%c0_15, %c0_16], %15 {strides = array<i32>} : memref<64x384xf32, #tpu.memory_space<vmem>>, vector<64x384xf32>,
    %c0_17 = arith.constant 0 : index
    %c0_18 = arith.constant 0 : index
    %17 = vector.load %arg8[%c0_17, %c0_18] : memref<256x768xf32, #tpu.memory_space<vmem>>, vector<256x768xf32>
    %c0_19 = arith.constant 0 : index
    %c0_20 = arith.constant 0 : index
    %18 = vector.load %arg9[%c0_19, %c0_20] : memref<1x128xf32, #tpu.memory_space<vmem>>, vector<1x128xf32>
    %c0_21 = arith.constant 0 : index
    %c0_22 = arith.constant 0 : index
    %19 = vector.load %arg10[%c0_21, %c0_22] : memref<1x128xf32, #tpu.memory_space<vmem>>, vector<1x128xf32>
    %c0_23 = arith.constant 0 : index
    %c0_24 = arith.constant 0 : index
    %20 = vector.load %arg3[%c0_23, %c0_24] : memref<8x1xi32, #tpu.memory_space<vmem>>, vector<8x1xi32>
    %c8_i32 = arith.constant 8 : i32
    %21 = arith.muli %arg0, %c8_i32 : i32
    %c0_25 = arith.constant 0 : index
    %c0_26 = arith.constant 0 : index
    %22 = vector.load %arg17[%c0_25, %c0_26] : memref<8x256xf32, #tpu.memory_space<vmem>>, vector<8x256xf32>
    %c0_i32_27 = arith.constant 0 : i32
    %23 = arith.addi %21, %c0_i32_27 : i32
    %c7_i32 = arith.constant 7 : i32
    %24 = arith.subi %c7_i32, %23 : i32
    %c8_i32_28 = arith.constant 8 : i32
    %25 = arith.muli %c0_i32_27, %c8_i32_28 : i32
    %26 = tpu.assume_multiple %25, 8 : i32
    %27 = arith.index_cast %26 : i32 to index
    %c0_29 = arith.constant 0 : index
    %28 = vector.load %arg15[%27, %c0_29] : memref<64x384xf32, #tpu.memory_space<vmem>>, vector<8x384xf32>
    %c7_i32_30 = arith.constant 7 : i32
    %29 = arith.subi %c7_i32_30, %c0_i32_27 : i32
    %c8_i32_31 = arith.constant 8 : i32
    %30 = arith.muli %29, %c8_i32_31 : i32
    %31 = tpu.assume_multiple %30, 8 : i32
    %32 = arith.index_cast %31 : i32 to index
    %c0_32 = arith.constant 0 : index
    %33 = vector.load %arg16[%32, %c0_32] : memref<64x384xf32, #tpu.memory_space<vmem>>, vector<8x384xf32>
    %cst_33 = arith.constant dense<0.000000e+00> : vector<8x768xf32>
    %34 = tpu.matmul %22, %17, %cst_33 {dimension_numbers = #tpu.dot_dimension_numbers<[1], [0], [0], [1], [0, 0, 1, 1], [], []>} : vector<8x256xf32>, vector<256x768xf32>, vector<8x768xf32> -> vector<8x768xf32>
    %35 = vector.extract_strided_slice %22 {offsets = [0, 0], sizes = [8, 128], strides = [1, 1]} : vector<8x256xf32> to vector<8x128xf32>
    %36 = vector.extract_strided_slice %22 {offsets = [0, 128], sizes = [8, 128], strides = [1, 1]} : vector<8x256xf32> to vector<8x128xf32>
    %37 = vector.extract_strided_slice %34 {offsets = [0, 0], sizes = [8, 384], strides = [1, 1]} : vector<8x768xf32> to vector<8x384xf32>
    %38 = vector.extract_strided_slice %28 {offsets = [0, 0], sizes = [8, 128], strides = [1, 1]} : vector<8x384xf32> to vector<8x128xf32>
    %39 = vector.extract_strided_slice %37 {offsets = [0, 0], sizes = [8, 128], strides = [1, 1]} : vector<8x384xf32> to vector<8x128xf32>
    %40 = arith.addf %38, %39 : vector<8x128xf32>
    %41 = arith.negf %40 : vector<8x128xf32>
    %42 = math.exp %41 : vector<8x128xf32>
    %cst_34 = arith.constant 1.000000e+00 : f32
    %43 = vector.broadcast %cst_34 : f32 to vector<8x128xf32>
    %44 = arith.addf %43, %42 : vector<8x128xf32>
    %45 = arith.divf %43, %44 : vector<8x128xf32>
    %46 = vector.extract_strided_slice %28 {offsets = [0, 128], sizes = [8, 128], strides = [1, 1]} : vector<8x384xf32> to vector<8x128xf32>
    %47 = vector.extract_strided_slice %37 {offsets = [0, 128], sizes = [8, 128], strides = [1, 1]} : vector<8x384xf32> to vector<8x128xf32>
    %48 = arith.addf %46, %47 : vector<8x128xf32>
    %49 = arith.negf %48 : vector<8x128xf32>
    %50 = math.exp %49 : vector<8x128xf32>
    %cst_35 = arith.constant 1.000000e+00 : f32
    %51 = vector.broadcast %cst_35 : f32 to vector<8x128xf32>
    %52 = arith.addf %51, %50 : vector<8x128xf32>
    %53 = arith.divf %51, %52 : vector<8x128xf32>
    %54 = vector.extract_strided_slice %28 {offsets = [0, 256], sizes = [8, 128], strides = [1, 1]} : vector<8x384xf32> to vector<8x128xf32>
    %55 = vector.extract_strided_slice %37 {offsets = [0, 256], sizes = [8, 128], strides = [1, 1]} : vector<8x384xf32> to vector<8x128xf32>
    %56 = vector.broadcast %18 : vector<1x128xf32> to vector<8x128xf32>
    %57 = arith.addf %55, %56 : vector<8x128xf32>
    %58 = arith.mulf %45, %57 : vector<8x128xf32>
    %59 = arith.addf %54, %58 : vector<8x128xf32>
    %60 = math.tanh %59 : vector<8x128xf32>
    %cst_36 = arith.constant 1.000000e+00 : f32
    %61 = vector.broadcast %cst_36 : f32 to vector<8x128xf32>
    %62 = arith.subf %61, %53 : vector<8x128xf32>
    %63 = arith.mulf %62, %60 : vector<8x128xf32>
    %64 = arith.mulf %53, %35 : vector<8x128xf32>
    %65 = arith.addf %63, %64 : vector<8x128xf32>
    %66 = vector.extract_strided_slice %34 {offsets = [0, 384], sizes = [8, 384], strides = [1, 1]} : vector<8x768xf32> to vector<8x384xf32>
    %67 = vector.extract_strided_slice %33 {offsets = [0, 0], sizes = [8, 128], strides = [1, 1]} : vector<8x384xf32> to vector<8x128xf32>
    %68 = vector.extract_strided_slice %66 {offsets = [0, 0], sizes = [8, 128], strides = [1, 1]} : vector<8x384xf32> to vector<8x128xf32>
    %69 = arith.addf %67, %68 : vector<8x128xf32>
    %70 = arith.negf %69 : vector<8x128xf32>
    %71 = math.exp %70 : vector<8x128xf32>
    %cst_37 = arith.constant 1.000000e+00 : f32
    %72 = vector.broadcast %cst_37 : f32 to vector<8x128xf32>
    %73 = arith.addf %72, %71 : vector<8x128xf32>
    %74 = arith.divf %72, %73 : vector<8x128xf32>
    %75 = vector.extract_strided_slice %33 {offsets = [0, 128], sizes = [8, 128], strides = [1, 1]} : vector<8x384xf32> to vector<8x128xf32>
    %76 = vector.extract_strided_slice %66 {offsets = [0, 128], sizes = [8, 128], strides = [1, 1]} : vector<8x384xf32> to vector<8x128xf32>
    %77 = arith.addf %75, %76 : vector<8x128xf32>
    %78 = arith.negf %77 : vector<8x128xf32>
    %79 = math.exp %78 : vector<8x128xf32>
    %cst_38 = arith.constant 1.000000e+00 : f32
    %80 = vector.broadcast %cst_38 : f32 to vector<8x128xf32>
    %81 = arith.addf %80, %79 : vector<8x128xf32>
    %82 = arith.divf %80, %81 : vector<8x128xf32>
    %83 = vector.extract_strided_slice %33 {offsets = [0, 256], sizes = [8, 128], strides = [1, 1]} : vector<8x384xf32> to vector<8x128xf32>
    %84 = vector.extract_strided_slice %66 {offsets = [0, 256], sizes = [8, 128], strides = [1, 1]} : vector<8x384xf32> to vector<8x128xf32>
    %85 = vector.broadcast %19 : vector<1x128xf32> to vector<8x128xf32>
    %86 = arith.addf %84, %85 : vector<8x128xf32>
    %87 = arith.mulf %74, %86 : vector<8x128xf32>
    %88 = arith.addf %83, %87 : vector<8x128xf32>
    %89 = math.tanh %88 : vector<8x128xf32>
    %cst_39 = arith.constant 1.000000e+00 : f32
    %90 = vector.broadcast %cst_39 : f32 to vector<8x128xf32>
    %91 = arith.subf %90, %82 : vector<8x128xf32>
    %92 = arith.mulf %91, %89 : vector<8x128xf32>
    %93 = arith.mulf %82, %36 : vector<8x128xf32>
    %94 = arith.addf %92, %93 : vector<8x128xf32>
    %95 = vector.broadcast %23 : i32 to vector<8x1xi32>
    %96 = arith.cmpi sgt, %20, %95 : vector<8x1xi32>
    %97 = vector.shape_cast %96 : vector<8x1xi1> to vector<8x1xi1>
    %98 = vector.broadcast %97 : vector<8x1xi1> to vector<8x128xi1>
    %99 = arith.select %98, %65, %35 : vector<8x128xi1>, vector<8x128xf32>
    %100 = vector.broadcast %24 : i32 to vector<8x1xi32>
    %101 = arith.cmpi sgt, %20, %100 : vector<8x1xi32>
    %102 = vector.shape_cast %101 : vector<8x1xi1> to vector<8x1xi1>
    %103 = vector.broadcast %102 : vector<8x1xi1> to vector<8x128xi1>
    %104 = arith.select %103, %94, %36 : vector<8x128xi1>, vector<8x128xf32>
    %105 = tpu.concatenate %99, %104 in 1 : vector<8x128xf32>, vector<8x128xf32> -> vector<8x256xf32>
    %c1_i32 = arith.constant 1 : i32
    %106 = arith.addi %21, %c1_i32 : i32
    %c7_i32_40 = arith.constant 7 : i32
    %107 = arith.subi %c7_i32_40, %106 : i32
    %c8_i32_41 = arith.constant 8 : i32
    %108 = arith.muli %c1_i32, %c8_i32_41 : i32
    %109 = tpu.assume_multiple %108, 8 : i32
    %110 = arith.index_cast %109 : i32 to index
    %c0_42 = arith.constant 0 : index
    %111 = vector.load %arg15[%110, %c0_42] : memref<64x384xf32, #tpu.memory_space<vmem>>, vector<8x384xf32>
    %c7_i32_43 = arith.constant 7 : i32
    %112 = arith.subi %c7_i32_43, %c1_i32 : i32
    %c8_i32_44 = arith.constant 8 : i32
    %113 = arith.muli %112, %c8_i32_44 : i32
    %114 = tpu.assume_multiple %113, 8 : i32
    %115 = arith.index_cast %114 : i32 to index
    %c0_45 = arith.constant 0 : index
    %116 = vector.load %arg16[%115, %c0_45] : memref<64x384xf32, #tpu.memory_space<vmem>>, vector<8x384xf32>
    %cst_46 = arith.constant dense<0.000000e+00> : vector<8x768xf32>
    %117 = tpu.matmul %105, %17, %cst_46 {dimension_numbers = #tpu.dot_dimension_numbers<[1], [0], [0], [1], [0, 0, 1, 1], [], []>} : vector<8x256xf32>, vector<256x768xf32>, vector<8x768xf32> -> vector<8x768xf32>
    %118 = vector.extract_strided_slice %105 {offsets = [0, 0], sizes = [8, 128], strides = [1, 1]} : vector<8x256xf32> to vector<8x128xf32>
    %119 = vector.extract_strided_slice %105 {offsets = [0, 128], sizes = [8, 128], strides = [1, 1]} : vector<8x256xf32> to vector<8x128xf32>
    %120 = vector.extract_strided_slice %117 {offsets = [0, 0], sizes = [8, 384], strides = [1, 1]} : vector<8x768xf32> to vector<8x384xf32>
    %121 = vector.extract_strided_slice %111 {offsets = [0, 0], sizes = [8, 128], strides = [1, 1]} : vector<8x384xf32> to vector<8x128xf32>
    %122 = vector.extract_strided_slice %120 {offsets = [0, 0], sizes = [8, 128], strides = [1, 1]} : vector<8x384xf32> to vector<8x128xf32>
    %123 = arith.addf %121, %122 : vector<8x128xf32>
    %124 = arith.negf %123 : vector<8x128xf32>
    %125 = math.exp %124 : vector<8x128xf32>
    %cst_47 = arith.constant 1.000000e+00 : f32
    %126 = vector.broadcast %cst_47 : f32 to vector<8x128xf32>
    %127 = arith.addf %126, %125 : vector<8x128xf32>
    %128 = arith.divf %126, %127 : vector<8x128xf32>
    %129 = vector.extract_strided_slice %111 {offsets = [0, 128], sizes = [8, 128], strides = [1, 1]} : vector<8x384xf32> to vector<8x128xf32>
    %130 = vector.extract_strided_slice %120 {offsets = [0, 128], sizes = [8, 128], strides = [1, 1]} : vector<8x384xf32> to vector<8x128xf32>
    %131 = arith.addf %129, %130 : vector<8x128xf32>
    %132 = arith.negf %131 : vector<8x128xf32>
    %133 = math.exp %132 : vector<8x128xf32>
    %cst_48 = arith.constant 1.000000e+00 : f32
    %134 = vector.broadcast %cst_48 : f32 to vector<8x128xf32>
    %135 = arith.addf %134, %133 : vector<8x128xf32>
    %136 = arith.divf %134, %135 : vector<8x128xf32>
    %137 = vector.extract_strided_slice %111 {offsets = [0, 256], sizes = [8, 128], strides = [1, 1]} : vector<8x384xf32> to vector<8x128xf32>
    %138 = vector.extract_strided_slice %120 {offsets = [0, 256], sizes = [8, 128], strides = [1, 1]} : vector<8x384xf32> to vector<8x128xf32>
    %139 = vector.broadcast %18 : vector<1x128xf32> to vector<8x128xf32>
    %140 = arith.addf %138, %139 : vector<8x128xf32>
    %141 = arith.mulf %128, %140 : vector<8x128xf32>
    %142 = arith.addf %137, %141 : vector<8x128xf32>
    %143 = math.tanh %142 : vector<8x128xf32>
    %cst_49 = arith.constant 1.000000e+00 : f32
    %144 = vector.broadcast %cst_49 : f32 to vector<8x128xf32>
    %145 = arith.subf %144, %136 : vector<8x128xf32>
    %146 = arith.mulf %145, %143 : vector<8x128xf32>
    %147 = arith.mulf %136, %118 : vector<8x128xf32>
    %148 = arith.addf %146, %147 : vector<8x128xf32>
    %149 = vector.extract_strided_slice %117 {offsets = [0, 384], sizes = [8, 384], strides = [1, 1]} : vector<8x768xf32> to vector<8x384xf32>
    %150 = vector.extract_strided_slice %116 {offsets = [0, 0], sizes = [8, 128], strides = [1, 1]} : vector<8x384xf32> to vector<8x128xf32>
    %151 = vector.extract_strided_slice %149 {offsets = [0, 0], sizes = [8, 128], strides = [1, 1]} : vector<8x384xf32> to vector<8x128xf32>
    %152 = arith.addf %150, %151 : vector<8x128xf32>
    %153 = arith.negf %152 : vector<8x128xf32>
    %154 = math.exp %153 : vector<8x128xf32>
    %cst_50 = arith.constant 1.000000e+00 : f32
    %155 = vector.broadcast %cst_50 : f32 to vector<8x128xf32>
    %156 = arith.addf %155, %154 : vector<8x128xf32>
    %157 = arith.divf %155, %156 : vector<8x128xf32>
    %158 = vector.extract_strided_slice %116 {offsets = [0, 128], sizes = [8, 128], strides = [1, 1]} : vector<8x384xf32> to vector<8x128xf32>
    %159 = vector.extract_strided_slice %149 {offsets = [0, 128], sizes = [8, 128], strides = [1, 1]} : vector<8x384xf32> to vector<8x128xf32>
    %160 = arith.addf %158, %159 : vector<8x128xf32>
    %161 = arith.negf %160 : vector<8x128xf32>
    %162 = math.exp %161 : vector<8x128xf32>
    %cst_51 = arith.constant 1.000000e+00 : f32
    %163 = vector.broadcast %cst_51 : f32 to vector<8x128xf32>
    %164 = arith.addf %163, %162 : vector<8x128xf32>
    %165 = arith.divf %163, %164 : vector<8x128xf32>
    %166 = vector.extract_strided_slice %116 {offsets = [0, 256], sizes = [8, 128], strides = [1, 1]} : vector<8x384xf32> to vector<8x128xf32>
    %167 = vector.extract_strided_slice %149 {offsets = [0, 256], sizes = [8, 128], strides = [1, 1]} : vector<8x384xf32> to vector<8x128xf32>
    %168 = vector.broadcast %19 : vector<1x128xf32> to vector<8x128xf32>
    %169 = arith.addf %167, %168 : vector<8x128xf32>
    %170 = arith.mulf %157, %169 : vector<8x128xf32>
    %171 = arith.addf %166, %170 : vector<8x128xf32>
    %172 = math.tanh %171 : vector<8x128xf32>
    %cst_52 = arith.constant 1.000000e+00 : f32
    %173 = vector.broadcast %cst_52 : f32 to vector<8x128xf32>
    %174 = arith.subf %173, %165 : vector<8x128xf32>
    %175 = arith.mulf %174, %172 : vector<8x128xf32>
    %176 = arith.mulf %165, %119 : vector<8x128xf32>
    %177 = arith.addf %175, %176 : vector<8x128xf32>
    %178 = vector.broadcast %106 : i32 to vector<8x1xi32>
    %179 = arith.cmpi sgt, %20, %178 : vector<8x1xi32>
    %180 = vector.shape_cast %179 : vector<8x1xi1> to vector<8x1xi1>
    %181 = vector.broadcast %180 : vector<8x1xi1> to vector<8x128xi1>
    %182 = arith.select %181, %148, %118 : vector<8x128xi1>, vector<8x128xf32>
    %183 = vector.broadcast %107 : i32 to vector<8x1xi32>
    %184 = arith.cmpi sgt, %20, %183 : vector<8x1xi32>
    %185 = vector.shape_cast %184 : vector<8x1xi1> to vector<8x1xi1>
    %186 = vector.broadcast %185 : vector<8x1xi1> to vector<8x128xi1>
    %187 = arith.select %186, %177, %119 : vector<8x128xi1>, vector<8x128xf32>
    %188 = tpu.concatenate %182, %187 in 1 : vector<8x128xf32>, vector<8x128xf32> -> vector<8x256xf32>
    %c2_i32 = arith.constant 2 : i32
    %189 = arith.addi %21, %c2_i32 : i32
    %c7_i32_53 = arith.constant 7 : i32
    %190 = arith.subi %c7_i32_53, %189 : i32
    %c8_i32_54 = arith.constant 8 : i32
    %191 = arith.muli %c2_i32, %c8_i32_54 : i32
    %192 = tpu.assume_multiple %191, 8 : i32
    %193 = arith.index_cast %192 : i32 to index
    %c0_55 = arith.constant 0 : index
    %194 = vector.load %arg15[%193, %c0_55] : memref<64x384xf32, #tpu.memory_space<vmem>>, vector<8x384xf32>
    %c7_i32_56 = arith.constant 7 : i32
    %195 = arith.subi %c7_i32_56, %c2_i32 : i32
    %c8_i32_57 = arith.constant 8 : i32
    %196 = arith.muli %195, %c8_i32_57 : i32
    %197 = tpu.assume_multiple %196, 8 : i32
    %198 = arith.index_cast %197 : i32 to index
    %c0_58 = arith.constant 0 : index
    %199 = vector.load %arg16[%198, %c0_58] : memref<64x384xf32, #tpu.memory_space<vmem>>, vector<8x384xf32>
    %cst_59 = arith.constant dense<0.000000e+00> : vector<8x768xf32>
    %200 = tpu.matmul %188, %17, %cst_59 {dimension_numbers = #tpu.dot_dimension_numbers<[1], [0], [0], [1], [0, 0, 1, 1], [], []>} : vector<8x256xf32>, vector<256x768xf32>, vector<8x768xf32> -> vector<8x768xf32>
    %201 = vector.extract_strided_slice %188 {offsets = [0, 0], sizes = [8, 128], strides = [1, 1]} : vector<8x256xf32> to vector<8x128xf32>
    %202 = vector.extract_strided_slice %188 {offsets = [0, 128], sizes = [8, 128], strides = [1, 1]} : vector<8x256xf32> to vector<8x128xf32>
    %203 = vector.extract_strided_slice %200 {offsets = [0, 0], sizes = [8, 384], strides = [1, 1]} : vector<8x768xf32> to vector<8x384xf32>
    %204 = vector.extract_strided_slice %194 {offsets = [0, 0], sizes = [8, 128], strides = [1, 1]} : vector<8x384xf32> to vector<8x128xf32>
    %205 = vector.extract_strided_slice %203 {offsets = [0, 0], sizes = [8, 128], strides = [1, 1]} : vector<8x384xf32> to vector<8x128xf32>
    %206 = arith.addf %204, %205 : vector<8x128xf32>
    %207 = arith.negf %206 : vector<8x128xf32>
    %208 = math.exp %207 : vector<8x128xf32>
    %cst_60 = arith.constant 1.000000e+00 : f32
    %209 = vector.broadcast %cst_60 : f32 to vector<8x128xf32>
    %210 = arith.addf %209, %208 : vector<8x128xf32>
    %211 = arith.divf %209, %210 : vector<8x128xf32>
    %212 = vector.extract_strided_slice %194 {offsets = [0, 128], sizes = [8, 128], strides = [1, 1]} : vector<8x384xf32> to vector<8x128xf32>
    %213 = vector.extract_strided_slice %203 {offsets = [0, 128], sizes = [8, 128], strides = [1, 1]} : vector<8x384xf32> to vector<8x128xf32>
    %214 = arith.addf %212, %213 : vector<8x128xf32>
    %215 = arith.negf %214 : vector<8x128xf32>
    %216 = math.exp %215 : vector<8x128xf32>
    %cst_61 = arith.constant 1.000000e+00 : f32
    %217 = vector.broadcast %cst_61 : f32 to vector<8x128xf32>
    %218 = arith.addf %217, %216 : vector<8x128xf32>
    %219 = arith.divf %217, %218 : vector<8x128xf32>
    %220 = vector.extract_strided_slice %194 {offsets = [0, 256], sizes = [8, 128], strides = [1, 1]} : vector<8x384xf32> to vector<8x128xf32>
    %221 = vector.extract_strided_slice %203 {offsets = [0, 256], sizes = [8, 128], strides = [1, 1]} : vector<8x384xf32> to vector<8x128xf32>
    %222 = vector.broadcast %18 : vector<1x128xf32> to vector<8x128xf32>
    %223 = arith.addf %221, %222 : vector<8x128xf32>
    %224 = arith.mulf %211, %223 : vector<8x128xf32>
    %225 = arith.addf %220, %224 : vector<8x128xf32>
    %226 = math.tanh %225 : vector<8x128xf32>
    %cst_62 = arith.constant 1.000000e+00 : f32
    %227 = vector.broadcast %cst_62 : f32 to vector<8x128xf32>
    %228 = arith.subf %227, %219 : vector<8x128xf32>
    %229 = arith.mulf %228, %226 : vector<8x128xf32>
    %230 = arith.mulf %219, %201 : vector<8x128xf32>
    %231 = arith.addf %229, %230 : vector<8x128xf32>
    %232 = vector.extract_strided_slice %200 {offsets = [0, 384], sizes = [8, 384], strides = [1, 1]} : vector<8x768xf32> to vector<8x384xf32>
    %233 = vector.extract_strided_slice %199 {offsets = [0, 0], sizes = [8, 128], strides = [1, 1]} : vector<8x384xf32> to vector<8x128xf32>
    %234 = vector.extract_strided_slice %232 {offsets = [0, 0], sizes = [8, 128], strides = [1, 1]} : vector<8x384xf32> to vector<8x128xf32>
    %235 = arith.addf %233, %234 : vector<8x128xf32>
    %236 = arith.negf %235 : vector<8x128xf32>
    %237 = math.exp %236 : vector<8x128xf32>
    %cst_63 = arith.constant 1.000000e+00 : f32
    %238 = vector.broadcast %cst_63 : f32 to vector<8x128xf32>
    %239 = arith.addf %238, %237 : vector<8x128xf32>
    %240 = arith.divf %238, %239 : vector<8x128xf32>
    %241 = vector.extract_strided_slice %199 {offsets = [0, 128], sizes = [8, 128], strides = [1, 1]} : vector<8x384xf32> to vector<8x128xf32>
    %242 = vector.extract_strided_slice %232 {offsets = [0, 128], sizes = [8, 128], strides = [1, 1]} : vector<8x384xf32> to vector<8x128xf32>
    %243 = arith.addf %241, %242 : vector<8x128xf32>
    %244 = arith.negf %243 : vector<8x128xf32>
    %245 = math.exp %244 : vector<8x128xf32>
    %cst_64 = arith.constant 1.000000e+00 : f32
    %246 = vector.broadcast %cst_64 : f32 to vector<8x128xf32>
    %247 = arith.addf %246, %245 : vector<8x128xf32>
    %248 = arith.divf %246, %247 : vector<8x128xf32>
    %249 = vector.extract_strided_slice %199 {offsets = [0, 256], sizes = [8, 128], strides = [1, 1]} : vector<8x384xf32> to vector<8x128xf32>
    %250 = vector.extract_strided_slice %232 {offsets = [0, 256], sizes = [8, 128], strides = [1, 1]} : vector<8x384xf32> to vector<8x128xf32>
    %251 = vector.broadcast %19 : vector<1x128xf32> to vector<8x128xf32>
    %252 = arith.addf %250, %251 : vector<8x128xf32>
    %253 = arith.mulf %240, %252 : vector<8x128xf32>
    %254 = arith.addf %249, %253 : vector<8x128xf32>
    %255 = math.tanh %254 : vector<8x128xf32>
    %cst_65 = arith.constant 1.000000e+00 : f32
    %256 = vector.broadcast %cst_65 : f32 to vector<8x128xf32>
    %257 = arith.subf %256, %248 : vector<8x128xf32>
    %258 = arith.mulf %257, %255 : vector<8x128xf32>
    %259 = arith.mulf %248, %202 : vector<8x128xf32>
    %260 = arith.addf %258, %259 : vector<8x128xf32>
    %261 = vector.broadcast %189 : i32 to vector<8x1xi32>
    %262 = arith.cmpi sgt, %20, %261 : vector<8x1xi32>
    %263 = vector.shape_cast %262 : vector<8x1xi1> to vector<8x1xi1>
    %264 = vector.broadcast %263 : vector<8x1xi1> to vector<8x128xi1>
    %265 = arith.select %264, %231, %201 : vector<8x128xi1>, vector<8x128xf32>
    %266 = vector.broadcast %190 : i32 to vector<8x1xi32>
    %267 = arith.cmpi sgt, %20, %266 : vector<8x1xi32>
    %268 = vector.shape_cast %267 : vector<8x1xi1> to vector<8x1xi1>
    %269 = vector.broadcast %268 : vector<8x1xi1> to vector<8x128xi1>
    %270 = arith.select %269, %260, %202 : vector<8x128xi1>, vector<8x128xf32>
    %271 = tpu.concatenate %265, %270 in 1 : vector<8x128xf32>, vector<8x128xf32> -> vector<8x256xf32>
    %c3_i32 = arith.constant 3 : i32
    %272 = arith.addi %21, %c3_i32 : i32
    %c7_i32_66 = arith.constant 7 : i32
    %273 = arith.subi %c7_i32_66, %272 : i32
    %c8_i32_67 = arith.constant 8 : i32
    %274 = arith.muli %c3_i32, %c8_i32_67 : i32
    %275 = tpu.assume_multiple %274, 8 : i32
    %276 = arith.index_cast %275 : i32 to index
    %c0_68 = arith.constant 0 : index
    %277 = vector.load %arg15[%276, %c0_68] : memref<64x384xf32, #tpu.memory_space<vmem>>, vector<8x384xf32>
    %c7_i32_69 = arith.constant 7 : i32
    %278 = arith.subi %c7_i32_69, %c3_i32 : i32
    %c8_i32_70 = arith.constant 8 : i32
    %279 = arith.muli %278, %c8_i32_70 : i32
    %280 = tpu.assume_multiple %279, 8 : i32
    %281 = arith.index_cast %280 : i32 to index
    %c0_71 = arith.constant 0 : index
    %282 = vector.load %arg16[%281, %c0_71] : memref<64x384xf32, #tpu.memory_space<vmem>>, vector<8x384xf32>
    %cst_72 = arith.constant dense<0.000000e+00> : vector<8x768xf32>
    %283 = tpu.matmul %271, %17, %cst_72 {dimension_numbers = #tpu.dot_dimension_numbers<[1], [0], [0], [1], [0, 0, 1, 1], [], []>} : vector<8x256xf32>, vector<256x768xf32>, vector<8x768xf32> -> vector<8x768xf32>
    %284 = vector.extract_strided_slice %271 {offsets = [0, 0], sizes = [8, 128], strides = [1, 1]} : vector<8x256xf32> to vector<8x128xf32>
    %285 = vector.extract_strided_slice %271 {offsets = [0, 128], sizes = [8, 128], strides = [1, 1]} : vector<8x256xf32> to vector<8x128xf32>
    %286 = vector.extract_strided_slice %283 {offsets = [0, 0], sizes = [8, 384], strides = [1, 1]} : vector<8x768xf32> to vector<8x384xf32>
    %287 = vector.extract_strided_slice %277 {offsets = [0, 0], sizes = [8, 128], strides = [1, 1]} : vector<8x384xf32> to vector<8x128xf32>
    %288 = vector.extract_strided_slice %286 {offsets = [0, 0], sizes = [8, 128], strides = [1, 1]} : vector<8x384xf32> to vector<8x128xf32>
    %289 = arith.addf %287, %288 : vector<8x128xf32>
    %290 = arith.negf %289 : vector<8x128xf32>
    %291 = math.exp %290 : vector<8x128xf32>
    %cst_73 = arith.constant 1.000000e+00 : f32
    %292 = vector.broadcast %cst_73 : f32 to vector<8x128xf32>
    %293 = arith.addf %292, %291 : vector<8x128xf32>
    %294 = arith.divf %292, %293 : vector<8x128xf32>
    %295 = vector.extract_strided_slice %277 {offsets = [0, 128], sizes = [8, 128], strides = [1, 1]} : vector<8x384xf32> to vector<8x128xf32>
    %296 = vector.extract_strided_slice %286 {offsets = [0, 128], sizes = [8, 128], strides = [1, 1]} : vector<8x384xf32> to vector<8x128xf32>
    %297 = arith.addf %295, %296 : vector<8x128xf32>
    %298 = arith.negf %297 : vector<8x128xf32>
    %299 = math.exp %298 : vector<8x128xf32>
    %cst_74 = arith.constant 1.000000e+00 : f32
    %300 = vector.broadcast %cst_74 : f32 to vector<8x128xf32>
    %301 = arith.addf %300, %299 : vector<8x128xf32>
    %302 = arith.divf %300, %301 : vector<8x128xf32>
    %303 = vector.extract_strided_slice %277 {offsets = [0, 256], sizes = [8, 128], strides = [1, 1]} : vector<8x384xf32> to vector<8x128xf32>
    %304 = vector.extract_strided_slice %286 {offsets = [0, 256], sizes = [8, 128], strides = [1, 1]} : vector<8x384xf32> to vector<8x128xf32>
    %305 = vector.broadcast %18 : vector<1x128xf32> to vector<8x128xf32>
    %306 = arith.addf %304, %305 : vector<8x128xf32>
    %307 = arith.mulf %294, %306 : vector<8x128xf32>
    %308 = arith.addf %303, %307 : vector<8x128xf32>
    %309 = math.tanh %308 : vector<8x128xf32>
    %cst_75 = arith.constant 1.000000e+00 : f32
    %310 = vector.broadcast %cst_75 : f32 to vector<8x128xf32>
    %311 = arith.subf %310, %302 : vector<8x128xf32>
    %312 = arith.mulf %311, %309 : vector<8x128xf32>
    %313 = arith.mulf %302, %284 : vector<8x128xf32>
    %314 = arith.addf %312, %313 : vector<8x128xf32>
    %315 = vector.extract_strided_slice %283 {offsets = [0, 384], sizes = [8, 384], strides = [1, 1]} : vector<8x768xf32> to vector<8x384xf32>
    %316 = vector.extract_strided_slice %282 {offsets = [0, 0], sizes = [8, 128], strides = [1, 1]} : vector<8x384xf32> to vector<8x128xf32>
    %317 = vector.extract_strided_slice %315 {offsets = [0, 0], sizes = [8, 128], strides = [1, 1]} : vector<8x384xf32> to vector<8x128xf32>
    %318 = arith.addf %316, %317 : vector<8x128xf32>
    %319 = arith.negf %318 : vector<8x128xf32>
    %320 = math.exp %319 : vector<8x128xf32>
    %cst_76 = arith.constant 1.000000e+00 : f32
    %321 = vector.broadcast %cst_76 : f32 to vector<8x128xf32>
    %322 = arith.addf %321, %320 : vector<8x128xf32>
    %323 = arith.divf %321, %322 : vector<8x128xf32>
    %324 = vector.extract_strided_slice %282 {offsets = [0, 128], sizes = [8, 128], strides = [1, 1]} : vector<8x384xf32> to vector<8x128xf32>
    %325 = vector.extract_strided_slice %315 {offsets = [0, 128], sizes = [8, 128], strides = [1, 1]} : vector<8x384xf32> to vector<8x128xf32>
    %326 = arith.addf %324, %325 : vector<8x128xf32>
    %327 = arith.negf %326 : vector<8x128xf32>
    %328 = math.exp %327 : vector<8x128xf32>
    %cst_77 = arith.constant 1.000000e+00 : f32
    %329 = vector.broadcast %cst_77 : f32 to vector<8x128xf32>
    %330 = arith.addf %329, %328 : vector<8x128xf32>
    %331 = arith.divf %329, %330 : vector<8x128xf32>
    %332 = vector.extract_strided_slice %282 {offsets = [0, 256], sizes = [8, 128], strides = [1, 1]} : vector<8x384xf32> to vector<8x128xf32>
    %333 = vector.extract_strided_slice %315 {offsets = [0, 256], sizes = [8, 128], strides = [1, 1]} : vector<8x384xf32> to vector<8x128xf32>
    %334 = vector.broadcast %19 : vector<1x128xf32> to vector<8x128xf32>
    %335 = arith.addf %333, %334 : vector<8x128xf32>
    %336 = arith.mulf %323, %335 : vector<8x128xf32>
    %337 = arith.addf %332, %336 : vector<8x128xf32>
    %338 = math.tanh %337 : vector<8x128xf32>
    %cst_78 = arith.constant 1.000000e+00 : f32
    %339 = vector.broadcast %cst_78 : f32 to vector<8x128xf32>
    %340 = arith.subf %339, %331 : vector<8x128xf32>
    %341 = arith.mulf %340, %338 : vector<8x128xf32>
    %342 = arith.mulf %331, %285 : vector<8x128xf32>
    %343 = arith.addf %341, %342 : vector<8x128xf32>
    %344 = vector.broadcast %272 : i32 to vector<8x1xi32>
    %345 = arith.cmpi sgt, %20, %344 : vector<8x1xi32>
    %346 = vector.shape_cast %345 : vector<8x1xi1> to vector<8x1xi1>
    %347 = vector.broadcast %346 : vector<8x1xi1> to vector<8x128xi1>
    %348 = arith.select %347, %314, %284 : vector<8x128xi1>, vector<8x128xf32>
    %349 = vector.broadcast %273 : i32 to vector<8x1xi32>
    %350 = arith.cmpi sgt, %20, %349 : vector<8x1xi32>
    %351 = vector.shape_cast %350 : vector<8x1xi1> to vector<8x1xi1>
    %352 = vector.broadcast %351 : vector<8x1xi1> to vector<8x128xi1>
    %353 = arith.select %352, %343, %285 : vector<8x128xi1>, vector<8x128xf32>
    %354 = tpu.concatenate %348, %353 in 1 : vector<8x128xf32>, vector<8x128xf32> -> vector<8x256xf32>
    %c4_i32 = arith.constant 4 : i32
    %355 = arith.addi %21, %c4_i32 : i32
    %c7_i32_79 = arith.constant 7 : i32
    %356 = arith.subi %c7_i32_79, %355 : i32
    %c8_i32_80 = arith.constant 8 : i32
    %357 = arith.muli %c4_i32, %c8_i32_80 : i32
    %358 = tpu.assume_multiple %357, 8 : i32
    %359 = arith.index_cast %358 : i32 to index
    %c0_81 = arith.constant 0 : index
    %360 = vector.load %arg15[%359, %c0_81] : memref<64x384xf32, #tpu.memory_space<vmem>>, vector<8x384xf32>
    %c7_i32_82 = arith.constant 7 : i32
    %361 = arith.subi %c7_i32_82, %c4_i32 : i32
    %c8_i32_83 = arith.constant 8 : i32
    %362 = arith.muli %361, %c8_i32_83 : i32
    %363 = tpu.assume_multiple %362, 8 : i32
    %364 = arith.index_cast %363 : i32 to index
    %c0_84 = arith.constant 0 : index
    %365 = vector.load %arg16[%364, %c0_84] : memref<64x384xf32, #tpu.memory_space<vmem>>, vector<8x384xf32>
    %cst_85 = arith.constant dense<0.000000e+00> : vector<8x768xf32>
    %366 = tpu.matmul %354, %17, %cst_85 {dimension_numbers = #tpu.dot_dimension_numbers<[1], [0], [0], [1], [0, 0, 1, 1], [], []>} : vector<8x256xf32>, vector<256x768xf32>, vector<8x768xf32> -> vector<8x768xf32>
    %367 = vector.extract_strided_slice %354 {offsets = [0, 0], sizes = [8, 128], strides = [1, 1]} : vector<8x256xf32> to vector<8x128xf32>
    %368 = vector.extract_strided_slice %354 {offsets = [0, 128], sizes = [8, 128], strides = [1, 1]} : vector<8x256xf32> to vector<8x128xf32>
    %369 = vector.extract_strided_slice %366 {offsets = [0, 0], sizes = [8, 384], strides = [1, 1]} : vector<8x768xf32> to vector<8x384xf32>
    %370 = vector.extract_strided_slice %360 {offsets = [0, 0], sizes = [8, 128], strides = [1, 1]} : vector<8x384xf32> to vector<8x128xf32>
    %371 = vector.extract_strided_slice %369 {offsets = [0, 0], sizes = [8, 128], strides = [1, 1]} : vector<8x384xf32> to vector<8x128xf32>
    %372 = arith.addf %370, %371 : vector<8x128xf32>
    %373 = arith.negf %372 : vector<8x128xf32>
    %374 = math.exp %373 : vector<8x128xf32>
    %cst_86 = arith.constant 1.000000e+00 : f32
    %375 = vector.broadcast %cst_86 : f32 to vector<8x128xf32>
    %376 = arith.addf %375, %374 : vector<8x128xf32>
    %377 = arith.divf %375, %376 : vector<8x128xf32>
    %378 = vector.extract_strided_slice %360 {offsets = [0, 128], sizes = [8, 128], strides = [1, 1]} : vector<8x384xf32> to vector<8x128xf32>
    %379 = vector.extract_strided_slice %369 {offsets = [0, 128], sizes = [8, 128], strides = [1, 1]} : vector<8x384xf32> to vector<8x128xf32>
    %380 = arith.addf %378, %379 : vector<8x128xf32>
    %381 = arith.negf %380 : vector<8x128xf32>
    %382 = math.exp %381 : vector<8x128xf32>
    %cst_87 = arith.constant 1.000000e+00 : f32
    %383 = vector.broadcast %cst_87 : f32 to vector<8x128xf32>
    %384 = arith.addf %383, %382 : vector<8x128xf32>
    %385 = arith.divf %383, %384 : vector<8x128xf32>
    %386 = vector.extract_strided_slice %360 {offsets = [0, 256], sizes = [8, 128], strides = [1, 1]} : vector<8x384xf32> to vector<8x128xf32>
    %387 = vector.extract_strided_slice %369 {offsets = [0, 256], sizes = [8, 128], strides = [1, 1]} : vector<8x384xf32> to vector<8x128xf32>
    %388 = vector.broadcast %18 : vector<1x128xf32> to vector<8x128xf32>
    %389 = arith.addf %387, %388 : vector<8x128xf32>
    %390 = arith.mulf %377, %389 : vector<8x128xf32>
    %391 = arith.addf %386, %390 : vector<8x128xf32>
    %392 = math.tanh %391 : vector<8x128xf32>
    %cst_88 = arith.constant 1.000000e+00 : f32
    %393 = vector.broadcast %cst_88 : f32 to vector<8x128xf32>
    %394 = arith.subf %393, %385 : vector<8x128xf32>
    %395 = arith.mulf %394, %392 : vector<8x128xf32>
    %396 = arith.mulf %385, %367 : vector<8x128xf32>
    %397 = arith.addf %395, %396 : vector<8x128xf32>
    %398 = vector.extract_strided_slice %366 {offsets = [0, 384], sizes = [8, 384], strides = [1, 1]} : vector<8x768xf32> to vector<8x384xf32>
    %399 = vector.extract_strided_slice %365 {offsets = [0, 0], sizes = [8, 128], strides = [1, 1]} : vector<8x384xf32> to vector<8x128xf32>
    %400 = vector.extract_strided_slice %398 {offsets = [0, 0], sizes = [8, 128], strides = [1, 1]} : vector<8x384xf32> to vector<8x128xf32>
    %401 = arith.addf %399, %400 : vector<8x128xf32>
    %402 = arith.negf %401 : vector<8x128xf32>
    %403 = math.exp %402 : vector<8x128xf32>
    %cst_89 = arith.constant 1.000000e+00 : f32
    %404 = vector.broadcast %cst_89 : f32 to vector<8x128xf32>
    %405 = arith.addf %404, %403 : vector<8x128xf32>
    %406 = arith.divf %404, %405 : vector<8x128xf32>
    %407 = vector.extract_strided_slice %365 {offsets = [0, 128], sizes = [8, 128], strides = [1, 1]} : vector<8x384xf32> to vector<8x128xf32>
    %408 = vector.extract_strided_slice %398 {offsets = [0, 128], sizes = [8, 128], strides = [1, 1]} : vector<8x384xf32> to vector<8x128xf32>
    %409 = arith.addf %407, %408 : vector<8x128xf32>
    %410 = arith.negf %409 : vector<8x128xf32>
    %411 = math.exp %410 : vector<8x128xf32>
    %cst_90 = arith.constant 1.000000e+00 : f32
    %412 = vector.broadcast %cst_90 : f32 to vector<8x128xf32>
    %413 = arith.addf %412, %411 : vector<8x128xf32>
    %414 = arith.divf %412, %413 : vector<8x128xf32>
    %415 = vector.extract_strided_slice %365 {offsets = [0, 256], sizes = [8, 128], strides = [1, 1]} : vector<8x384xf32> to vector<8x128xf32>
    %416 = vector.extract_strided_slice %398 {offsets = [0, 256], sizes = [8, 128], strides = [1, 1]} : vector<8x384xf32> to vector<8x128xf32>
    %417 = vector.broadcast %19 : vector<1x128xf32> to vector<8x128xf32>
    %418 = arith.addf %416, %417 : vector<8x128xf32>
    %419 = arith.mulf %406, %418 : vector<8x128xf32>
    %420 = arith.addf %415, %419 : vector<8x128xf32>
    %421 = math.tanh %420 : vector<8x128xf32>
    %cst_91 = arith.constant 1.000000e+00 : f32
    %422 = vector.broadcast %cst_91 : f32 to vector<8x128xf32>
    %423 = arith.subf %422, %414 : vector<8x128xf32>
    %424 = arith.mulf %423, %421 : vector<8x128xf32>
    %425 = arith.mulf %414, %368 : vector<8x128xf32>
    %426 = arith.addf %424, %425 : vector<8x128xf32>
    %427 = vector.broadcast %355 : i32 to vector<8x1xi32>
    %428 = arith.cmpi sgt, %20, %427 : vector<8x1xi32>
    %429 = vector.shape_cast %428 : vector<8x1xi1> to vector<8x1xi1>
    %430 = vector.broadcast %429 : vector<8x1xi1> to vector<8x128xi1>
    %431 = arith.select %430, %397, %367 : vector<8x128xi1>, vector<8x128xf32>
    %432 = vector.broadcast %356 : i32 to vector<8x1xi32>
    %433 = arith.cmpi sgt, %20, %432 : vector<8x1xi32>
    %434 = vector.shape_cast %433 : vector<8x1xi1> to vector<8x1xi1>
    %435 = vector.broadcast %434 : vector<8x1xi1> to vector<8x128xi1>
    %436 = arith.select %435, %426, %368 : vector<8x128xi1>, vector<8x128xf32>
    %437 = tpu.concatenate %431, %436 in 1 : vector<8x128xf32>, vector<8x128xf32> -> vector<8x256xf32>
    %c5_i32 = arith.constant 5 : i32
    %438 = arith.addi %21, %c5_i32 : i32
    %c7_i32_92 = arith.constant 7 : i32
    %439 = arith.subi %c7_i32_92, %438 : i32
    %c8_i32_93 = arith.constant 8 : i32
    %440 = arith.muli %c5_i32, %c8_i32_93 : i32
    %441 = tpu.assume_multiple %440, 8 : i32
    %442 = arith.index_cast %441 : i32 to index
    %c0_94 = arith.constant 0 : index
    %443 = vector.load %arg15[%442, %c0_94] : memref<64x384xf32, #tpu.memory_space<vmem>>, vector<8x384xf32>
    %c7_i32_95 = arith.constant 7 : i32
    %444 = arith.subi %c7_i32_95, %c5_i32 : i32
    %c8_i32_96 = arith.constant 8 : i32
    %445 = arith.muli %444, %c8_i32_96 : i32
    %446 = tpu.assume_multiple %445, 8 : i32
    %447 = arith.index_cast %446 : i32 to index
    %c0_97 = arith.constant 0 : index
    %448 = vector.load %arg16[%447, %c0_97] : memref<64x384xf32, #tpu.memory_space<vmem>>, vector<8x384xf32>
    %cst_98 = arith.constant dense<0.000000e+00> : vector<8x768xf32>
    %449 = tpu.matmul %437, %17, %cst_98 {dimension_numbers = #tpu.dot_dimension_numbers<[1], [0], [0], [1], [0, 0, 1, 1], [], []>} : vector<8x256xf32>, vector<256x768xf32>, vector<8x768xf32> -> vector<8x768xf32>
    %450 = vector.extract_strided_slice %437 {offsets = [0, 0], sizes = [8, 128], strides = [1, 1]} : vector<8x256xf32> to vector<8x128xf32>
    %451 = vector.extract_strided_slice %437 {offsets = [0, 128], sizes = [8, 128], strides = [1, 1]} : vector<8x256xf32> to vector<8x128xf32>
    %452 = vector.extract_strided_slice %449 {offsets = [0, 0], sizes = [8, 384], strides = [1, 1]} : vector<8x768xf32> to vector<8x384xf32>
    %453 = vector.extract_strided_slice %443 {offsets = [0, 0], sizes = [8, 128], strides = [1, 1]} : vector<8x384xf32> to vector<8x128xf32>
    %454 = vector.extract_strided_slice %452 {offsets = [0, 0], sizes = [8, 128], strides = [1, 1]} : vector<8x384xf32> to vector<8x128xf32>
    %455 = arith.addf %453, %454 : vector<8x128xf32>
    %456 = arith.negf %455 : vector<8x128xf32>
    %457 = math.exp %456 : vector<8x128xf32>
    %cst_99 = arith.constant 1.000000e+00 : f32
    %458 = vector.broadcast %cst_99 : f32 to vector<8x128xf32>
    %459 = arith.addf %458, %457 : vector<8x128xf32>
    %460 = arith.divf %458, %459 : vector<8x128xf32>
    %461 = vector.extract_strided_slice %443 {offsets = [0, 128], sizes = [8, 128], strides = [1, 1]} : vector<8x384xf32> to vector<8x128xf32>
    %462 = vector.extract_strided_slice %452 {offsets = [0, 128], sizes = [8, 128], strides = [1, 1]} : vector<8x384xf32> to vector<8x128xf32>
    %463 = arith.addf %461, %462 : vector<8x128xf32>
    %464 = arith.negf %463 : vector<8x128xf32>
    %465 = math.exp %464 : vector<8x128xf32>
    %cst_100 = arith.constant 1.000000e+00 : f32
    %466 = vector.broadcast %cst_100 : f32 to vector<8x128xf32>
    %467 = arith.addf %466, %465 : vector<8x128xf32>
    %468 = arith.divf %466, %467 : vector<8x128xf32>
    %469 = vector.extract_strided_slice %443 {offsets = [0, 256], sizes = [8, 128], strides = [1, 1]} : vector<8x384xf32> to vector<8x128xf32>
    %470 = vector.extract_strided_slice %452 {offsets = [0, 256], sizes = [8, 128], strides = [1, 1]} : vector<8x384xf32> to vector<8x128xf32>
    %471 = vector.broadcast %18 : vector<1x128xf32> to vector<8x128xf32>
    %472 = arith.addf %470, %471 : vector<8x128xf32>
    %473 = arith.mulf %460, %472 : vector<8x128xf32>
    %474 = arith.addf %469, %473 : vector<8x128xf32>
    %475 = math.tanh %474 : vector<8x128xf32>
    %cst_101 = arith.constant 1.000000e+00 : f32
    %476 = vector.broadcast %cst_101 : f32 to vector<8x128xf32>
    %477 = arith.subf %476, %468 : vector<8x128xf32>
    %478 = arith.mulf %477, %475 : vector<8x128xf32>
    %479 = arith.mulf %468, %450 : vector<8x128xf32>
    %480 = arith.addf %478, %479 : vector<8x128xf32>
    %481 = vector.extract_strided_slice %449 {offsets = [0, 384], sizes = [8, 384], strides = [1, 1]} : vector<8x768xf32> to vector<8x384xf32>
    %482 = vector.extract_strided_slice %448 {offsets = [0, 0], sizes = [8, 128], strides = [1, 1]} : vector<8x384xf32> to vector<8x128xf32>
    %483 = vector.extract_strided_slice %481 {offsets = [0, 0], sizes = [8, 128], strides = [1, 1]} : vector<8x384xf32> to vector<8x128xf32>
    %484 = arith.addf %482, %483 : vector<8x128xf32>
    %485 = arith.negf %484 : vector<8x128xf32>
    %486 = math.exp %485 : vector<8x128xf32>
    %cst_102 = arith.constant 1.000000e+00 : f32
    %487 = vector.broadcast %cst_102 : f32 to vector<8x128xf32>
    %488 = arith.addf %487, %486 : vector<8x128xf32>
    %489 = arith.divf %487, %488 : vector<8x128xf32>
    %490 = vector.extract_strided_slice %448 {offsets = [0, 128], sizes = [8, 128], strides = [1, 1]} : vector<8x384xf32> to vector<8x128xf32>
    %491 = vector.extract_strided_slice %481 {offsets = [0, 128], sizes = [8, 128], strides = [1, 1]} : vector<8x384xf32> to vector<8x128xf32>
    %492 = arith.addf %490, %491 : vector<8x128xf32>
    %493 = arith.negf %492 : vector<8x128xf32>
    %494 = math.exp %493 : vector<8x128xf32>
    %cst_103 = arith.constant 1.000000e+00 : f32
    %495 = vector.broadcast %cst_103 : f32 to vector<8x128xf32>
    %496 = arith.addf %495, %494 : vector<8x128xf32>
    %497 = arith.divf %495, %496 : vector<8x128xf32>
    %498 = vector.extract_strided_slice %448 {offsets = [0, 256], sizes = [8, 128], strides = [1, 1]} : vector<8x384xf32> to vector<8x128xf32>
    %499 = vector.extract_strided_slice %481 {offsets = [0, 256], sizes = [8, 128], strides = [1, 1]} : vector<8x384xf32> to vector<8x128xf32>
    %500 = vector.broadcast %19 : vector<1x128xf32> to vector<8x128xf32>
    %501 = arith.addf %499, %500 : vector<8x128xf32>
    %502 = arith.mulf %489, %501 : vector<8x128xf32>
    %503 = arith.addf %498, %502 : vector<8x128xf32>
    %504 = math.tanh %503 : vector<8x128xf32>
    %cst_104 = arith.constant 1.000000e+00 : f32
    %505 = vector.broadcast %cst_104 : f32 to vector<8x128xf32>
    %506 = arith.subf %505, %497 : vector<8x128xf32>
    %507 = arith.mulf %506, %504 : vector<8x128xf32>
    %508 = arith.mulf %497, %451 : vector<8x128xf32>
    %509 = arith.addf %507, %508 : vector<8x128xf32>
    %510 = vector.broadcast %438 : i32 to vector<8x1xi32>
    %511 = arith.cmpi sgt, %20, %510 : vector<8x1xi32>
    %512 = vector.shape_cast %511 : vector<8x1xi1> to vector<8x1xi1>
    %513 = vector.broadcast %512 : vector<8x1xi1> to vector<8x128xi1>
    %514 = arith.select %513, %480, %450 : vector<8x128xi1>, vector<8x128xf32>
    %515 = vector.broadcast %439 : i32 to vector<8x1xi32>
    %516 = arith.cmpi sgt, %20, %515 : vector<8x1xi32>
    %517 = vector.shape_cast %516 : vector<8x1xi1> to vector<8x1xi1>
    %518 = vector.broadcast %517 : vector<8x1xi1> to vector<8x128xi1>
    %519 = arith.select %518, %509, %451 : vector<8x128xi1>, vector<8x128xf32>
    %520 = tpu.concatenate %514, %519 in 1 : vector<8x128xf32>, vector<8x128xf32> -> vector<8x256xf32>
    %c6_i32 = arith.constant 6 : i32
    %521 = arith.addi %21, %c6_i32 : i32
    %c7_i32_105 = arith.constant 7 : i32
    %522 = arith.subi %c7_i32_105, %521 : i32
    %c8_i32_106 = arith.constant 8 : i32
    %523 = arith.muli %c6_i32, %c8_i32_106 : i32
    %524 = tpu.assume_multiple %523, 8 : i32
    %525 = arith.index_cast %524 : i32 to index
    %c0_107 = arith.constant 0 : index
    %526 = vector.load %arg15[%525, %c0_107] : memref<64x384xf32, #tpu.memory_space<vmem>>, vector<8x384xf32>
    %c7_i32_108 = arith.constant 7 : i32
    %527 = arith.subi %c7_i32_108, %c6_i32 : i32
    %c8_i32_109 = arith.constant 8 : i32
    %528 = arith.muli %527, %c8_i32_109 : i32
    %529 = tpu.assume_multiple %528, 8 : i32
    %530 = arith.index_cast %529 : i32 to index
    %c0_110 = arith.constant 0 : index
    %531 = vector.load %arg16[%530, %c0_110] : memref<64x384xf32, #tpu.memory_space<vmem>>, vector<8x384xf32>
    %cst_111 = arith.constant dense<0.000000e+00> : vector<8x768xf32>
    %532 = tpu.matmul %520, %17, %cst_111 {dimension_numbers = #tpu.dot_dimension_numbers<[1], [0], [0], [1], [0, 0, 1, 1], [], []>} : vector<8x256xf32>, vector<256x768xf32>, vector<8x768xf32> -> vector<8x768xf32>
    %533 = vector.extract_strided_slice %520 {offsets = [0, 0], sizes = [8, 128], strides = [1, 1]} : vector<8x256xf32> to vector<8x128xf32>
    %534 = vector.extract_strided_slice %520 {offsets = [0, 128], sizes = [8, 128], strides = [1, 1]} : vector<8x256xf32> to vector<8x128xf32>
    %535 = vector.extract_strided_slice %532 {offsets = [0, 0], sizes = [8, 384], strides = [1, 1]} : vector<8x768xf32> to vector<8x384xf32>
    %536 = vector.extract_strided_slice %526 {offsets = [0, 0], sizes = [8, 128], strides = [1, 1]} : vector<8x384xf32> to vector<8x128xf32>
    %537 = vector.extract_strided_slice %535 {offsets = [0, 0], sizes = [8, 128], strides = [1, 1]} : vector<8x384xf32> to vector<8x128xf32>
    %538 = arith.addf %536, %537 : vector<8x128xf32>
    %539 = arith.negf %538 : vector<8x128xf32>
    %540 = math.exp %539 : vector<8x128xf32>
    %cst_112 = arith.constant 1.000000e+00 : f32
    %541 = vector.broadcast %cst_112 : f32 to vector<8x128xf32>
    %542 = arith.addf %541, %540 : vector<8x128xf32>
    %543 = arith.divf %541, %542 : vector<8x128xf32>
    %544 = vector.extract_strided_slice %526 {offsets = [0, 128], sizes = [8, 128], strides = [1, 1]} : vector<8x384xf32> to vector<8x128xf32>
    %545 = vector.extract_strided_slice %535 {offsets = [0, 128], sizes = [8, 128], strides = [1, 1]} : vector<8x384xf32> to vector<8x128xf32>
    %546 = arith.addf %544, %545 : vector<8x128xf32>
    %547 = arith.negf %546 : vector<8x128xf32>
    %548 = math.exp %547 : vector<8x128xf32>
    %cst_113 = arith.constant 1.000000e+00 : f32
    %549 = vector.broadcast %cst_113 : f32 to vector<8x128xf32>
    %550 = arith.addf %549, %548 : vector<8x128xf32>
    %551 = arith.divf %549, %550 : vector<8x128xf32>
    %552 = vector.extract_strided_slice %526 {offsets = [0, 256], sizes = [8, 128], strides = [1, 1]} : vector<8x384xf32> to vector<8x128xf32>
    %553 = vector.extract_strided_slice %535 {offsets = [0, 256], sizes = [8, 128], strides = [1, 1]} : vector<8x384xf32> to vector<8x128xf32>
    %554 = vector.broadcast %18 : vector<1x128xf32> to vector<8x128xf32>
    %555 = arith.addf %553, %554 : vector<8x128xf32>
    %556 = arith.mulf %543, %555 : vector<8x128xf32>
    %557 = arith.addf %552, %556 : vector<8x128xf32>
    %558 = math.tanh %557 : vector<8x128xf32>
    %cst_114 = arith.constant 1.000000e+00 : f32
    %559 = vector.broadcast %cst_114 : f32 to vector<8x128xf32>
    %560 = arith.subf %559, %551 : vector<8x128xf32>
    %561 = arith.mulf %560, %558 : vector<8x128xf32>
    %562 = arith.mulf %551, %533 : vector<8x128xf32>
    %563 = arith.addf %561, %562 : vector<8x128xf32>
    %564 = vector.extract_strided_slice %532 {offsets = [0, 384], sizes = [8, 384], strides = [1, 1]} : vector<8x768xf32> to vector<8x384xf32>
    %565 = vector.extract_strided_slice %531 {offsets = [0, 0], sizes = [8, 128], strides = [1, 1]} : vector<8x384xf32> to vector<8x128xf32>
    %566 = vector.extract_strided_slice %564 {offsets = [0, 0], sizes = [8, 128], strides = [1, 1]} : vector<8x384xf32> to vector<8x128xf32>
    %567 = arith.addf %565, %566 : vector<8x128xf32>
    %568 = arith.negf %567 : vector<8x128xf32>
    %569 = math.exp %568 : vector<8x128xf32>
    %cst_115 = arith.constant 1.000000e+00 : f32
    %570 = vector.broadcast %cst_115 : f32 to vector<8x128xf32>
    %571 = arith.addf %570, %569 : vector<8x128xf32>
    %572 = arith.divf %570, %571 : vector<8x128xf32>
    %573 = vector.extract_strided_slice %531 {offsets = [0, 128], sizes = [8, 128], strides = [1, 1]} : vector<8x384xf32> to vector<8x128xf32>
    %574 = vector.extract_strided_slice %564 {offsets = [0, 128], sizes = [8, 128], strides = [1, 1]} : vector<8x384xf32> to vector<8x128xf32>
    %575 = arith.addf %573, %574 : vector<8x128xf32>
    %576 = arith.negf %575 : vector<8x128xf32>
    %577 = math.exp %576 : vector<8x128xf32>
    %cst_116 = arith.constant 1.000000e+00 : f32
    %578 = vector.broadcast %cst_116 : f32 to vector<8x128xf32>
    %579 = arith.addf %578, %577 : vector<8x128xf32>
    %580 = arith.divf %578, %579 : vector<8x128xf32>
    %581 = vector.extract_strided_slice %531 {offsets = [0, 256], sizes = [8, 128], strides = [1, 1]} : vector<8x384xf32> to vector<8x128xf32>
    %582 = vector.extract_strided_slice %564 {offsets = [0, 256], sizes = [8, 128], strides = [1, 1]} : vector<8x384xf32> to vector<8x128xf32>
    %583 = vector.broadcast %19 : vector<1x128xf32> to vector<8x128xf32>
    %584 = arith.addf %582, %583 : vector<8x128xf32>
    %585 = arith.mulf %572, %584 : vector<8x128xf32>
    %586 = arith.addf %581, %585 : vector<8x128xf32>
    %587 = math.tanh %586 : vector<8x128xf32>
    %cst_117 = arith.constant 1.000000e+00 : f32
    %588 = vector.broadcast %cst_117 : f32 to vector<8x128xf32>
    %589 = arith.subf %588, %580 : vector<8x128xf32>
    %590 = arith.mulf %589, %587 : vector<8x128xf32>
    %591 = arith.mulf %580, %534 : vector<8x128xf32>
    %592 = arith.addf %590, %591 : vector<8x128xf32>
    %593 = vector.broadcast %521 : i32 to vector<8x1xi32>
    %594 = arith.cmpi sgt, %20, %593 : vector<8x1xi32>
    %595 = vector.shape_cast %594 : vector<8x1xi1> to vector<8x1xi1>
    %596 = vector.broadcast %595 : vector<8x1xi1> to vector<8x128xi1>
    %597 = arith.select %596, %563, %533 : vector<8x128xi1>, vector<8x128xf32>
    %598 = vector.broadcast %522 : i32 to vector<8x1xi32>
    %599 = arith.cmpi sgt, %20, %598 : vector<8x1xi32>
    %600 = vector.shape_cast %599 : vector<8x1xi1> to vector<8x1xi1>
    %601 = vector.broadcast %600 : vector<8x1xi1> to vector<8x128xi1>
    %602 = arith.select %601, %592, %534 : vector<8x128xi1>, vector<8x128xf32>
    %603 = tpu.concatenate %597, %602 in 1 : vector<8x128xf32>, vector<8x128xf32> -> vector<8x256xf32>
    %c7_i32_118 = arith.constant 7 : i32
    %604 = arith.addi %21, %c7_i32_118 : i32
    %c7_i32_119 = arith.constant 7 : i32
    %605 = arith.subi %c7_i32_119, %604 : i32
    %c8_i32_120 = arith.constant 8 : i32
    %606 = arith.muli %c7_i32_118, %c8_i32_120 : i32
    %607 = tpu.assume_multiple %606, 8 : i32
    %608 = arith.index_cast %607 : i32 to index
    %c0_121 = arith.constant 0 : index
    %609 = vector.load %arg15[%608, %c0_121] : memref<64x384xf32, #tpu.memory_space<vmem>>, vector<8x384xf32>
    %c7_i32_122 = arith.constant 7 : i32
    %610 = arith.subi %c7_i32_122, %c7_i32_118 : i32
    %c8_i32_123 = arith.constant 8 : i32
    %611 = arith.muli %610, %c8_i32_123 : i32
    %612 = tpu.assume_multiple %611, 8 : i32
    %613 = arith.index_cast %612 : i32 to index
    %c0_124 = arith.constant 0 : index
    %614 = vector.load %arg16[%613, %c0_124] : memref<64x384xf32, #tpu.memory_space<vmem>>, vector<8x384xf32>
    %cst_125 = arith.constant dense<0.000000e+00> : vector<8x768xf32>
    %615 = tpu.matmul %603, %17, %cst_125 {dimension_numbers = #tpu.dot_dimension_numbers<[1], [0], [0], [1], [0, 0, 1, 1], [], []>} : vector<8x256xf32>, vector<256x768xf32>, vector<8x768xf32> -> vector<8x768xf32>
    %616 = vector.extract_strided_slice %603 {offsets = [0, 0], sizes = [8, 128], strides = [1, 1]} : vector<8x256xf32> to vector<8x128xf32>
    %617 = vector.extract_strided_slice %603 {offsets = [0, 128], sizes = [8, 128], strides = [1, 1]} : vector<8x256xf32> to vector<8x128xf32>
    %618 = vector.extract_strided_slice %615 {offsets = [0, 0], sizes = [8, 384], strides = [1, 1]} : vector<8x768xf32> to vector<8x384xf32>
    %619 = vector.extract_strided_slice %609 {offsets = [0, 0], sizes = [8, 128], strides = [1, 1]} : vector<8x384xf32> to vector<8x128xf32>
    %620 = vector.extract_strided_slice %618 {offsets = [0, 0], sizes = [8, 128], strides = [1, 1]} : vector<8x384xf32> to vector<8x128xf32>
    %621 = arith.addf %619, %620 : vector<8x128xf32>
    %622 = arith.negf %621 : vector<8x128xf32>
    %623 = math.exp %622 : vector<8x128xf32>
    %cst_126 = arith.constant 1.000000e+00 : f32
    %624 = vector.broadcast %cst_126 : f32 to vector<8x128xf32>
    %625 = arith.addf %624, %623 : vector<8x128xf32>
    %626 = arith.divf %624, %625 : vector<8x128xf32>
    %627 = vector.extract_strided_slice %609 {offsets = [0, 128], sizes = [8, 128], strides = [1, 1]} : vector<8x384xf32> to vector<8x128xf32>
    %628 = vector.extract_strided_slice %618 {offsets = [0, 128], sizes = [8, 128], strides = [1, 1]} : vector<8x384xf32> to vector<8x128xf32>
    %629 = arith.addf %627, %628 : vector<8x128xf32>
    %630 = arith.negf %629 : vector<8x128xf32>
    %631 = math.exp %630 : vector<8x128xf32>
    %cst_127 = arith.constant 1.000000e+00 : f32
    %632 = vector.broadcast %cst_127 : f32 to vector<8x128xf32>
    %633 = arith.addf %632, %631 : vector<8x128xf32>
    %634 = arith.divf %632, %633 : vector<8x128xf32>
    %635 = vector.extract_strided_slice %609 {offsets = [0, 256], sizes = [8, 128], strides = [1, 1]} : vector<8x384xf32> to vector<8x128xf32>
    %636 = vector.extract_strided_slice %618 {offsets = [0, 256], sizes = [8, 128], strides = [1, 1]} : vector<8x384xf32> to vector<8x128xf32>
    %637 = vector.broadcast %18 : vector<1x128xf32> to vector<8x128xf32>
    %638 = arith.addf %636, %637 : vector<8x128xf32>
    %639 = arith.mulf %626, %638 : vector<8x128xf32>
    %640 = arith.addf %635, %639 : vector<8x128xf32>
    %641 = math.tanh %640 : vector<8x128xf32>
    %cst_128 = arith.constant 1.000000e+00 : f32
    %642 = vector.broadcast %cst_128 : f32 to vector<8x128xf32>
    %643 = arith.subf %642, %634 : vector<8x128xf32>
    %644 = arith.mulf %643, %641 : vector<8x128xf32>
    %645 = arith.mulf %634, %616 : vector<8x128xf32>
    %646 = arith.addf %644, %645 : vector<8x128xf32>
    %647 = vector.extract_strided_slice %615 {offsets = [0, 384], sizes = [8, 384], strides = [1, 1]} : vector<8x768xf32> to vector<8x384xf32>
    %648 = vector.extract_strided_slice %614 {offsets = [0, 0], sizes = [8, 128], strides = [1, 1]} : vector<8x384xf32> to vector<8x128xf32>
    %649 = vector.extract_strided_slice %647 {offsets = [0, 0], sizes = [8, 128], strides = [1, 1]} : vector<8x384xf32> to vector<8x128xf32>
    %650 = arith.addf %648, %649 : vector<8x128xf32>
    %651 = arith.negf %650 : vector<8x128xf32>
    %652 = math.exp %651 : vector<8x128xf32>
    %cst_129 = arith.constant 1.000000e+00 : f32
    %653 = vector.broadcast %cst_129 : f32 to vector<8x128xf32>
    %654 = arith.addf %653, %652 : vector<8x128xf32>
    %655 = arith.divf %653, %654 : vector<8x128xf32>
    %656 = vector.extract_strided_slice %614 {offsets = [0, 128], sizes = [8, 128], strides = [1, 1]} : vector<8x384xf32> to vector<8x128xf32>
    %657 = vector.extract_strided_slice %647 {offsets = [0, 128], sizes = [8, 128], strides = [1, 1]} : vector<8x384xf32> to vector<8x128xf32>
    %658 = arith.addf %656, %657 : vector<8x128xf32>
    %659 = arith.negf %658 : vector<8x128xf32>
    %660 = math.exp %659 : vector<8x128xf32>
    %cst_130 = arith.constant 1.000000e+00 : f32
    %661 = vector.broadcast %cst_130 : f32 to vector<8x128xf32>
    %662 = arith.addf %661, %660 : vector<8x128xf32>
    %663 = arith.divf %661, %662 : vector<8x128xf32>
    %664 = vector.extract_strided_slice %614 {offsets = [0, 256], sizes = [8, 128], strides = [1, 1]} : vector<8x384xf32> to vector<8x128xf32>
    %665 = vector.extract_strided_slice %647 {offsets = [0, 256], sizes = [8, 128], strides = [1, 1]} : vector<8x384xf32> to vector<8x128xf32>
    %666 = vector.broadcast %19 : vector<1x128xf32> to vector<8x128xf32>
    %667 = arith.addf %665, %666 : vector<8x128xf32>
    %668 = arith.mulf %655, %667 : vector<8x128xf32>
    %669 = arith.addf %664, %668 : vector<8x128xf32>
    %670 = math.tanh %669 : vector<8x128xf32>
    %cst_131 = arith.constant 1.000000e+00 : f32
    %671 = vector.broadcast %cst_131 : f32 to vector<8x128xf32>
    %672 = arith.subf %671, %663 : vector<8x128xf32>
    %673 = arith.mulf %672, %670 : vector<8x128xf32>
    %674 = arith.mulf %663, %617 : vector<8x128xf32>
    %675 = arith.addf %673, %674 : vector<8x128xf32>
    %676 = vector.broadcast %604 : i32 to vector<8x1xi32>
    %677 = arith.cmpi sgt, %20, %676 : vector<8x1xi32>
    %678 = vector.shape_cast %677 : vector<8x1xi1> to vector<8x1xi1>
    %679 = vector.broadcast %678 : vector<8x1xi1> to vector<8x128xi1>
    %680 = arith.select %679, %646, %616 : vector<8x128xi1>, vector<8x128xf32>
    %681 = vector.broadcast %605 : i32 to vector<8x1xi32>
    %682 = arith.cmpi sgt, %20, %681 : vector<8x1xi32>
    %683 = vector.shape_cast %682 : vector<8x1xi1> to vector<8x1xi1>
    %684 = vector.broadcast %683 : vector<8x1xi1> to vector<8x128xi1>
    %685 = arith.select %684, %675, %617 : vector<8x128xi1>, vector<8x128xf32>
    %686 = tpu.concatenate %680, %685 in 1 : vector<8x128xf32>, vector<8x128xf32> -> vector<8x256xf32>
    %c8_i32_132 = arith.constant 8 : i32
    %c0_133 = arith.constant 0 : index
    %c0_134 = arith.constant 0 : index
    %687 = vector.load %arg17[%c0_133, %c0_134] : memref<8x256xf32, #tpu.memory_space<vmem>>, vector<8x256xf32>
    tpu.vector_store %arg17[%c0_133, %c0_134], %686 {strides = array<i32>} : memref<8x256xf32, #tpu.memory_space<vmem>>, vector<8x256xf32>,
    %c0_i32_135 = arith.constant 0 : i32
    %688 = arith.cmpi eq, %arg0, %c0_i32_135 : i32
    %689 = arith.extui %688 : i1 to i32
    %c0_i32_136 = arith.constant 0 : i32
    %690 = arith.cmpi ne, %689, %c0_i32_136 : i32
    scf.if %690 {
      %691 = vector.extract_strided_slice %686 {offsets = [0, 0], sizes = [8, 128], strides = [1, 1]} : vector<8x256xf32> to vector<8x128xf32>
      %692 = vector.extract_strided_slice %686 {offsets = [0, 128], sizes = [8, 128], strides = [1, 1]} : vector<8x256xf32> to vector<8x128xf32>
      %c0_137 = arith.constant 0 : index
      %c0_138 = arith.constant 0 : index
      %693 = vector.load %arg11[%c0_137, %c0_138] : memref<128x128xf32, #tpu.memory_space<vmem>>, vector<128x128xf32>
      %cst_139 = arith.constant dense<0.000000e+00> : vector<8x128xf32>
      %694 = tpu.matmul %691, %693, %cst_139 {dimension_numbers = #tpu.dot_dimension_numbers<[1], [0], [0], [1], [0, 0, 1, 1], [], []>} : vector<8x128xf32>, vector<128x128xf32>, vector<8x128xf32> -> vector<8x128xf32>
      %c0_140 = arith.constant 0 : index
      %c0_141 = arith.constant 0 : index
      %695 = vector.load %arg12[%c0_140, %c0_141] : memref<128x128xf32, #tpu.memory_space<vmem>>, vector<128x128xf32>
      %cst_142 = arith.constant dense<0.000000e+00> : vector<8x128xf32>
      %696 = tpu.matmul %692, %695, %cst_142 {dimension_numbers = #tpu.dot_dimension_numbers<[1], [0], [0], [1], [0, 0, 1, 1], [], []>} : vector<8x128xf32>, vector<128x128xf32>, vector<8x128xf32> -> vector<8x128xf32>
      %697 = arith.addf %694, %696 : vector<8x128xf32>
      %c0_143 = arith.constant 0 : index
      %c0_144 = arith.constant 0 : index
      %698 = vector.load %arg13[%c0_143, %c0_144] : memref<1x128xf32, #tpu.memory_space<vmem>>, vector<1x128xf32>
      %699 = vector.broadcast %698 : vector<1x128xf32> to vector<8x128xf32>
      %700 = arith.addf %697, %699 : vector<8x128xf32>
      %c0_145 = arith.constant 0 : index
      %c0_146 = arith.constant 0 : index
      %701 = vector.load %arg14[%c0_145, %c0_146] : memref<8x128xf32, #tpu.memory_space<vmem>>, vector<8x128xf32>
      tpu.vector_store %arg14[%c0_145, %c0_146], %700 {strides = array<i32>} : memref<8x128xf32, #tpu.memory_space<vmem>>, vector<8x128xf32>,
    } else {
    }
    return
  }
  func.func @transform_0(%arg0: i32) -> (i32, i32) {
    %c0_i32 = arith.constant 0 : i32
    %c0_i32_0 = arith.constant 0 : i32
    return %arg0, %c0_i32 : i32, i32
  }
  func.func @transform_1(%arg0: i32) -> (i32, i32) {
    %c0_i32 = arith.constant 0 : i32
    %0 = arith.subi %c0_i32, %arg0 : i32
    %c0_i32_0 = arith.constant 0 : i32
    %c0_i32_1 = arith.constant 0 : i32
    return %0, %c0_i32_0 : i32, i32
  }
  func.func @transform_2(%arg0: i32) -> (i32, i32) {
    %c0_i32 = arith.constant 0 : i32
    %c0_i32_0 = arith.constant 0 : i32
    %c0_i32_1 = arith.constant 0 : i32
    return %c0_i32, %c0_i32_0 : i32, i32
  }
  func.func @transform_3(%arg0: i32) -> (i32, i32) {
    %c0_i32 = arith.constant 0 : i32
    %c0_i32_0 = arith.constant 0 : i32
    %c0_i32_1 = arith.constant 0 : i32
    return %c0_i32, %c0_i32_0 : i32, i32
  }
  func.func @transform_4(%arg0: i32) -> (i32, i32) {
    %c0_i32 = arith.constant 0 : i32
    %c0_i32_0 = arith.constant 0 : i32
    %c0_i32_1 = arith.constant 0 : i32
    return %c0_i32, %c0_i32_0 : i32, i32
  }
  func.func @transform_5(%arg0: i32) -> (i32, i32) {
    %c0_i32 = arith.constant 0 : i32
    %c0_i32_0 = arith.constant 0 : i32
    %c0_i32_1 = arith.constant 0 : i32
    return %c0_i32, %c0_i32_0 : i32, i32
  }
  func.func @transform_6(%arg0: i32) -> (i32, i32) {
    %c0_i32 = arith.constant 0 : i32
    %c0_i32_0 = arith.constant 0 : i32
    %c0_i32_1 = arith.constant 0 : i32
    return %c0_i32, %c0_i32_0 : i32, i32
  }
  func.func @transform_7(%arg0: i32) -> (i32, i32) {
    %c0_i32 = arith.constant 0 : i32
    %c0_i32_0 = arith.constant 0 : i32
    %c0_i32_1 = arith.constant 0 : i32
    return %c0_i32, %c0_i32_0 : i32, i32
  }
  func.func @transform_8(%arg0: i32) -> (i32, i32) {
    %c0_i32 = arith.constant 0 : i32
    %c0_i32_0 = arith.constant 0 : i32
    %c0_i32_1 = arith.constant 0 : i32
    return %c0_i32, %c0_i32_0 : i32, i32
  }
  func.func @transform_9(%arg0: i32) -> (i32, i32) {
    %c0_i32 = arith.constant 0 : i32
    %c0_i32_0 = arith.constant 0 : i32
    %c0_i32_1 = arith.constant 0 : i32
    return %c0_i32, %c0_i32_0 : i32, i32
  }
  func.func @transform_10(%arg0: i32) -> (i32, i32) {
    %c0_i32 = arith.constant 0 : i32
    %c0_i32_0 = arith.constant 0 : i32
    %c0_i32_1 = arith.constant 0 : i32
    return %c0_i32, %c0_i32_0 : i32, i32
  }
  func.func @transform_11(%arg0: i32) -> (i32, i32) {
    %c0_i32 = arith.constant 0 : i32
    %c0_i32_0 = arith.constant 0 : i32
    %c0_i32_1 = arith.constant 0 : i32
    return %c0_i32, %c0_i32_0 : i32, i32
  }
  func.func @transform_12(%arg0: i32) -> (i32, i32) {
    %c0_i32 = arith.constant 0 : i32
    %c0_i32_0 = arith.constant 0 : i32
    %c0_i32_1 = arith.constant 0 : i32
    return %c0_i32, %c0_i32_0 : i32, i32
  }
  func.func @transform_13(%arg0: i32) -> (i32, i32) {
    %c0_i32 = arith.constant 0 : i32
    %c0_i32_0 = arith.constant 0 : i32
    %c0_i32_1 = arith.constant 0 : i32
    return %c0_i32, %c0_i32_0 : i32, i32
  }
}

</mosaic_0001>

<bundles_post_ra>
// kernel: tpu_custom_call.1
= control target key start
LH: loop header
LB: loop body
LE: loop exit
PB: predicated region body
PF: predicated region fallthrough
CT: control target
= control target key end

     0   :  { %18 = vsyncpa [#allocation6], 0  ;;  %s7272_s0 = inlined_call_operand.vmem [shape: f32[64,32], index: 0, kind: input, shape index: {}]   ;;  %s7273_s1 = inlined_call_operand.vmem [shape: f32[64,32], index: 1, kind: input, shape index: {}]   ;;  %s7274_s2 = inlined_call_operand.vmem [shape: s32[8,1], index: 2, kind: input, shape index: {}]   ;;  %s7275_s3 = inlined_call_operand.vmem [shape: f32[32,384], index: 3, kind: input, shape index: {}]   ;;  %s7276_s4 = inlined_call_operand.hbm [shape: f32[32,384], index: 4, kind: input, shape index: {}]   ;;  %s7277_s5 = inlined_call_operand.vmem [shape: f32[1,384], index: 5, kind: input, shape index: {}]   ;;  %s7278_s6 = inlined_call_operand.vmem [shape: f32[1,384], index: 6, kind: input, shape index: {}]   ;;  %s7279_s7 = inlined_call_operand.hbm [shape: f32[256,768], index: 7, kind: input, shape index: {}]   ;;  %s7280_s8 = inlined_call_operand.vmem [shape: f32[1,128], index: 8, kind: input, shape index: {}]   ;;  %s7281_s9 = inlined_call_operand.vmem [shape: f32[1,128], index: 9, kind: input, shape index: {}]   ;;  %s7282_s10 = inlined_call_operand.vmem [shape: f32[128,128], index: 10, kind: input, shape index: {}]   ;;  %s7283_s11 = inlined_call_operand.hbm [shape: f32[128,128], index: 11, kind: input, shape index: {}]   ;;  %s7284_s12 = inlined_call_operand.vmem [shape: f32[1,128], index: 12, kind: input, shape index: {}]   ;;  %s7285_s13 = inlined_call_operand.hbm [shape: f32[8,128], index: 13, kind: output, shape index: {}]  }
   0x1   :  { %19 = vsyncpa [#allocation9], 0 }
   0x2   :  { %20 = vsyncpa [#allocation7], 0  ;;  %s5605_s25 = smov [#allocation8]   ;;  %s5511_s29 = scalar_lea.hbm %s7279_s7, 24576 }
   0x3   :  { %s58_s26 = sshll.u32 %s5605_s25, 4  ;;  %p5512_p0 = scmp.ne.s32.totalorder %s7279_s7, %s5511_s29  ;;  %s59_s26 = int_to_ptr.vmem [resolvable:$true] %s58_s26 }
   0x4   :  { %p5515_p1 = scmp.lt.u32.totalorder %s5511_s29, %s7279_s7 }
   0x6   :  { %p5517_p2 = pnand %p5515_p1, %p5512_p0 }
   0x8   :  { %5520 = shalt.err (!%p5517_p2)
}
   0x9   :  { %s5521_s17 = scalar_lea.vmem %s59_s26, 24576  ;;  %p5526_p4 = scmp.lt.s32.totalorder %s59_s26, %s59_s26 }
   0xa   :  { %p5522_p3 = scmp.ne.s32.totalorder %s59_s26, %s5521_s17  ;;  %p5527_p5 = scmp.lt.s32.totalorder %s5521_s17, %s5521_s17 }
   0xc   :  { %p5528_p6 = por %p5527_p5, %p5526_p4 }
   0xe   :  { %p5529_p7 = pnand %p5528_p6, %p5522_p3 }
  0x10   :  { %5532 = shalt.err (!%p5529_p7)
}
  0x11   :  { %s5606_s18 = smov 768   ;;  %s5607_s19 = smov 48  }
  0x12   :  { %64 = dma.hbm_to_vmem [thread:$0]  %s7279_s7, 24576, %s59_s26, [#allocation9], %s5606_s18, %s5606_s18, %s5607_s19  }
  0x13   :  { %s5608_s22 = smov [#allocation5]   ;;  %s5533_s27 = scalar_lea.hbm %s7276_s4, 1536 }
  0x14   :  { %s42_s23 = sshll.u32 %s5608_s22, 4  ;;  %p5534_p8 = scmp.ne.s32.totalorder %s7276_s4, %s5533_s27  ;;  %s43_s23 = int_to_ptr.vmem [resolvable:$true] %s42_s23 }
  0x15   :  { %p5537_p9 = scmp.lt.u32.totalorder %s5533_s27, %s7276_s4 }
  0x17   :  { %p5539_p10 = pnand %p5537_p9, %p5534_p8 }
  0x19   :  { %5542 = shalt.err (!%p5539_p10)
}
  0x1a   :  { %s5543_s15 = scalar_lea.vmem %s43_s23, 1536  ;;  %p5548_p12 = scmp.lt.s32.totalorder %s43_s23, %s43_s23 }
  0x1b   :  { %p5544_p11 = scmp.ne.s32.totalorder %s43_s23, %s5543_s15  ;;  %p5549_p13 = scmp.lt.s32.totalorder %s5543_s15, %s5543_s15 }
  0x1d   :  { %p5550_p0 = por %p5549_p13, %p5548_p12 }
  0x1f   :  { %p5551_p1 = pnand %p5550_p0, %p5544_p11 }
  0x21   :  { %5554 = shalt.err (!%p5551_p1)
}
  0x22   :  { %s5609_s7 = smov 384   ;;  %s5610_s26 = smov 24  }
  0x23   :  { %48 = dma.hbm_to_vmem [thread:$0]  %s7276_s4, 1536, %s43_s23, [#allocation6], %s5609_s7, %s5609_s7, %s5610_s26  }
  0x24   :  { %s5611_s18 = smov [#allocation10]   ;;  %s5555_s22 = scalar_lea.hbm %s7283_s11, 2048 }
  0x25   :  { %s76_s19 = sshll.u32 %s5611_s18, 4  ;;  %p5556_p2 = scmp.ne.s32.totalorder %s7283_s11, %s5555_s22  ;;  %s77_s19 = int_to_ptr.vmem [resolvable:$true] %s76_s19 }
  0x26   :  { %p5559_p3 = scmp.lt.u32.totalorder %s5555_s22, %s7283_s11 }
  0x28   :  { %p5561_p4 = pnand %p5559_p3, %p5556_p2 }
  0x2a   :  { %5564 = shalt.err (!%p5561_p4)
}
  0x2b   :  { %s5565_s29 = scalar_lea.vmem %s77_s19, 2048  ;;  %p5570_p6 = scmp.lt.s32.totalorder %s77_s19, %s77_s19 }
  0x2c   :  { %p5566_p5 = scmp.ne.s32.totalorder %s77_s19, %s5565_s29  ;;  %p5571_p7 = scmp.lt.s32.totalorder %s5565_s29, %s5565_s29 }
  0x2e   :  { %p5572_p8 = por %p5571_p7, %p5570_p6 }
  0x30   :  { %p5573_p9 = pnand %p5572_p8, %p5566_p5 }
  0x32   :  { %5576 = shalt.err (!%p5573_p9)
}
  0x33   :  { %s5612_s4 = smov 128   ;;  %s5613_s23 = smov 8  }
  0x34   :  { %82 = dma.hbm_to_vmem [thread:$0]  %s7283_s11, 2048, %s77_s19, [#allocation9], %s5612_s4, %s5612_s4, %s5613_s23  }
  0x35   :  { %5599 = dma.done.wait [#allocation6], 1536  }
  0x36   :  { %5600 = vsyncadd [#allocation6], 4294965760 }
  0x37   :  { %5601 = dma.done.wait [#allocation9], 26624  }
  0x38   :  { %5602 = vsyncadd [#allocation9], 4294940672  ;;  %v7286_v0 = vmov 0.0   ;;  %v123_v1 = vld [vmem:[%s7275_s3 + $0x8] sm:$0xff]  ;;  %v126_v2 = vld [vmem:[%s7275_s3 + $0x20] sm:$0xff]  ;;  %vm151_vm0 = vcmask 261120  }
  0x39   :  { %240 = vmatprep.mubr.f32.mxu0 %v7286_v0  ;;  %276 = vmatprep.mubr.f32.mxu1 %v7286_v0  ;;  %v122_v3 = vld [vmem:[%s7275_s3] sm:$0xff]  ;;  %v3681_v4 = vpack.c.bf16 %v126_v2, %v123_v1  ;;  %v125_v5 = vld [vmem:[%s7275_s3 + $0x18] sm:$0xff]  ;;  %v132_v7 = vld [vmem:[%s7275_s3 + $0x50] sm:$0xff]  ;;  %s5618_s18 = smov [#allocation11]  }
  0x3a   :  { %v129_v6 = vld [vmem:[%s7275_s3 + $0x38] sm:$0xff]  ;;  %v3683_v8 = vpack.c.bf16 %v125_v5, %v122_v3  ;;  %v128_v10 = vld [vmem:[%s7275_s3 + $0x30] sm:$0xff]  ;;  %v131_v11 = vld [vmem:[%s7275_s3 + $0x48] sm:$0xff]  ;;  %s3410_s11 = sshll.u32 %s5618_s18, 4  ;;  %s3411_s11 = int_to_ptr.vmem [resolvable:$true] %s3410_s11 }
  0x3b   :  { %v3685_v9 = vpack.c.bf16 %v132_v7, %v129_v6  ;;  %3682 = vmatprep.subr.bf16.mxu0 %v3681_v4  ;;  %5297 = vmatprep.subr.bf16.mxu1 %v3681_v4  ;;  %v124_v12 = vld [vmem:[%s7275_s3 + $0x10] sm:$0xff]  ;;  %v127_v13 = vld [vmem:[%s7275_s3 + $0x28] sm:$0xff]  ;;  %v3687_v14 = vpack.c.bf16 %v131_v11, %v128_v10  ;;  %v130_v16 = vld [vmem:[%s7275_s3 + $0x40] sm:$0xff]  ;;  %s5577_s19 = scalar_lea.vmem %s3411_s11, 128  ;;  %p5582_p11 = scmp.lt.s32.totalorder %s3411_s11, %s3411_s11 }
  0x3c   :  { %3684 = vmatpush1.bf16.msra.mxu0 %v3683_v8  ;;  %5299 = vmatpush1.bf16.msra.mxu1 %v3683_v8  ;;  %v3689_v15 = vpack.c.bf16 %v127_v13, %v124_v12  ;;  %v133_v17 = vld [vmem:[%s7275_s3 + $0x58] sm:$0xff]  ;;  %v428_v18 = vld [vmem:[#allocation5 + $0x10] sm:$0xff]  ;;  %v114_v19 = vld [vmem:[%s7272_s0] sm:$0xff]  ;;  %p5578_p10 = scmp.ne.s32.totalorder %s3411_s11, %s5577_s19  ;;  %p5583_p12 = scmp.lt.s32.totalorder %s5577_s19, %s5577_s19 }
  0x3d   :  { %3686 = vmatprep.subr.bf16.mxu0 %v3685_v9  ;;  %5298 = vmatprep.subr.bf16.mxu1 %v3685_v9  ;;  %v5769_v20 = vld [vmem:[%s7272_s0 + $0x30] sm:$0xff]  ;;  %v431_v21 = vld [vmem:[#allocation5 + $0x28] sm:$0xff]  ;;  %v3693_v22 = vpack.c.bf16 %v133_v17, %v130_v16  ;;  %v430_v24 = vld [vmem:[#allocation5 + $0x20] sm:$0xff] }
  0x3e   :  { %v427_v23 = vld [vmem:[#allocation5 + $0x8] sm:$0xff]  ;;  %v3705_v25 = vpack.c.bf16 %v431_v21, %v428_v18  ;;  %v5781_v27 = vld [vmem:[%s7272_s0 + $0x38] sm:$0xff]  ;;  %v426_v29 = vld [vmem:[#allocation5] sm:$0xff]  ;;  %p5584_p13 = por %p5583_p12, %p5582_p11 }
  0x3f   :  { %v115_v26 = vld [vmem:[%s7272_s0 + $0x8] sm:$0xff]  ;;  %v3697_v28 = vpack.c.bf16 %v430_v24, %v427_v23  ;;  %v429_v30 = vld [vmem:[#allocation5 + $0x18] sm:$0xff]  ;;  %v436_v32 = vld [vmem:[#allocation5 + $0x50] sm:$0xff] }
  0x40   :  { %3688 = vmatpush1.bf16.msra.mxu0 %v3687_v14  ;;  %5300 = vmatpush1.bf16.msra.mxu1 %v3687_v14  ;;  %v433_v31 = vld [vmem:[#allocation5 + $0x38] sm:$0xff]  ;;  %v434_v33 = vld [vmem:[#allocation5 + $0x40] sm:$0xff]  ;;  %v116_v35 = vld [vmem:[%s7272_s0 + $0x10] sm:$0xff]  ;;  %v3699_v36 = vpack.c.bf16 %v429_v30, %v426_v29  ;;  %p5585_p0 = pnand %p5584_p13, %p5578_p10 }
  0x41   :  { %3690 = vmatprep.subr.bf16.mxu1 %v3689_v15  ;;  %3706 = vmatprep.subr.bf16.mxu0 %v3705_v25  ;;  %v437_v34 = vld [vmem:[#allocation5 + $0x58] sm:$0xff]  ;;  %v3701_v37 = vpack.c.bf16 %v436_v32, %v433_v31  ;;  %v432_v38 = vld [vmem:[#allocation5 + $0x30] sm:$0xff]  ;;  %v435_v39 = vld [vmem:[#allocation5 + $0x48] sm:$0xff] }
  0x42   :  { %v3709_v40 = vpack.c.bf16 %v437_v34, %v434_v33  ;;  %v722_v41 = vld [vmem:[#allocation8 + $0x8] sm:$0xff]  ;;  %v728_v42 = vld [vmem:[#allocation8 + $0x38] sm:$0xff]  ;;  %v118_v46 = vld [vmem:[%s7272_s0 + $0x20] sm:$0xff]  ;;  %v3703_v47 = vpack.c.bf16 %v435_v39, %v432_v38 }
  0x43   :  { %3440 = vmatmul.mubr.msk.f32.vlgmr.msra.gmra.mrb[0].mxu0 %vm151_vm0, %v114_v19  ;;  %3446 = vmatmul.mubr.msk.f32.vlgmr.msra.gmra.mrb[0].mxu1 %vm151_vm0, %v5769_v20  ;;  %v724_v43 = vld [vmem:[#allocation8 + $0x18] sm:$0xff]  ;;  %v730_v44 = vld [vmem:[#allocation8 + $0x48] sm:$0xff]  ;;  %v5802_v48 = vpack.c.bf16 %v728_v42, %v722_v41  ;;  %v418_v51 = vld [vmem:[%s7273_s1] sm:$0xff] }
  0x44   :  { %3692 = vmatpush3.bf16.msra.mxu1 %v3689_v15  ;;  %246 = vmatprep.mubr.f32.mxu0 %v7286_v0  ;;  %v117_v45 = vld [vmem:[%s7272_s0 + $0x18] sm:$0xff]  ;;  %v5804_v49 = vpack.c.bf16 %v730_v44, %v724_v43  ;;  %v119_v50 = vld [vmem:[%s7272_s0 + $0x28] sm:$0xff]  ;;  %v721_v52 = vld [vmem:[#allocation8] sm:$0xff] }
  0x45   :  { %282 = vmatprep.mubr.f32.mxu1 %v7286_v0  ;;  %3694 = vmatprep.subr.bf16.mxu1 %v3693_v22  ;;  %7553 = vst [vmem:[#allocation15_spill] sm:$0xff] %v5802_v48  ;;  %v727_v53 = vld [vmem:[#allocation8 + $0x30] sm:$0xff]  ;;  %v729_v55 = vld [vmem:[#allocation8 + $0x40] sm:$0xff]  ;;  %v734_v56 = vld [vmem:[#allocation8 + $0x68] sm:$0xff] }
  0x46   :  { %3708 = vmatpush3.bf16.msra.mxu0 %v3705_v25  ;;  %7554 = vst [vmem:[#allocation16_spill] sm:$0xff] %v5804_v49  ;;  %v723_v54 = vld [vmem:[#allocation8 + $0x10] sm:$0xff]  ;;  %v740_v57 = vld [vmem:[#allocation8 + $0x98] sm:$0xff]  ;;  %v742_v59 = vld [vmem:[#allocation8 + $0xa8] sm:$0xff]  ;;  %v5831_v61 = vpack.c.bf16 %v727_v53, %v721_v52 }
  0x47   :  { %3441 = vmatmul.mubr.msk.f32.gmra.mrb[2].mxu0 %vm151_vm0, %v115_v26  ;;  %3447 = vmatmul.mubr.msk.f32.gmra.mrb[2].mxu1 %vm151_vm0, %v5781_v27  ;;  %v736_v58 = vld [vmem:[#allocation8 + $0x78] sm:$0xff]  ;;  %v419_v60 = vld [vmem:[%s7273_s1 + $0x8] sm:$0xff]  ;;  %v5833_v62 = vpack.c.bf16 %v729_v55, %v723_v54  ;;  %v733_v63 = vld [vmem:[#allocation8 + $0x60] sm:$0xff]  ;;  %v5835_v2 = vpack.c.bf16 %v740_v57, %v734_v56 }
  0x48   :  { %3696 = vmatpush3.bf16.msra.mxu1 %v3693_v22  ;;  %252 = vmatprep.mubr.f32.mxu0 %v7286_v0  ;;  %7555 = vst [vmem:[#allocation17_spill] sm:$0xff] %v5831_v61  ;;  %v739_v1 = vld [vmem:[#allocation8 + $0x90] sm:$0xff]  ;;  %v5837_v3 = vpack.c.bf16 %v742_v59, %v736_v58  ;;  %v741_v5 = vld [vmem:[#allocation8 + $0xa0] sm:$0xff]  ;;  %v746_v6 = vld [vmem:[#allocation8 + $0xc8] sm:$0xff] }
  0x49   :  { %3579 = vmatprep.mubr.msk.f32.mxu1 %vm151_vm0, %v114_v19  ;;  %3698 = vmatprep.subr.bf16.mxu1 %v3697_v28  ;;  %7556 = vst [vmem:[#allocation18_spill] sm:$0xff] %v5833_v62  ;;  %7557 = vst [vmem:[#allocation19_spill] sm:$0xff] %v5835_v2  ;;  %v735_v4 = vld [vmem:[#allocation8 + $0x70] sm:$0xff]  ;;  %v752_v7 = vld [vmem:[#allocation8 + $0xf8] sm:$0xff]  ;;  %v5843_v10 = vpack.c.bf16 %v739_v1, %v733_v63 }
  0x4a   :  { %3710 = vmatprep.subr.bf16.mxu0 %v3709_v40  ;;  %7558 = vst [vmem:[#allocation20_spill] sm:$0xff] %v5837_v3  ;;  %v748_v8 = vld [vmem:[#allocation8 + $0xd8] sm:$0xff]  ;;  %v754_v9 = vld [vmem:[#allocation8 + $0x108] sm:$0xff]  ;;  %v5845_v11 = vpack.c.bf16 %v741_v5, %v735_v4  ;;  %v745_v12 = vld [vmem:[#allocation8 + $0xc0] sm:$0xff]  ;;  %v5849_v15 = vpack.c.bf16 %v752_v7, %v746_v6 }
  0x4b   :  { %3442 = vmatmul.mubr.msk.f32.gmra.mrb[4].mxu0 %vm151_vm0, %v116_v35  ;;  %3580 = vmatmul.mubr.msk.f32.vlgmr.msra.gmra.mrb[4].mxu1 %vm151_vm0, %v115_v26  ;;  %7559 = vst [vmem:[#allocation21_spill] sm:$0xff] %v5843_v10  ;;  %v751_v13 = vld [vmem:[#allocation8 + $0xf0] sm:$0xff]  ;;  %v5851_v16 = vpack.c.bf16 %v754_v9, %v748_v8  ;;  %v753_v17 = vld [vmem:[#allocation8 + $0x100] sm:$0xff]  ;;  %v758_v18 = vld [vmem:[#allocation8 + $0x128] sm:$0xff] }
  0x4c   :  { %3700 = vmatpush1.bf16.msra.mxu1 %v3699_v36  ;;  %258 = vmatprep.mubr.f32.mxu0 %v7286_v0  ;;  %7560 = vst [vmem:[#allocation22_spill] sm:$0xff] %v5845_v11  ;;  %v747_v14 = vld [vmem:[#allocation8 + $0xd0] sm:$0xff]  ;;  %7561 = vst [vmem:[#allocation23_spill] sm:$0xff] %v5849_v15  ;;  %v764_v19 = vld [vmem:[#allocation8 + $0x158] sm:$0xff]  ;;  %v5861_v23 = vpack.c.bf16 %v751_v13, %v745_v12 }
  0x4d   :  { %3582 = vmatprep.mubr.msk.f32.mxu1 %vm151_vm0, %v116_v35  ;;  %3702 = vmatprep.subr.bf16.mxu1 %v3701_v37  ;;  %7562 = vst [vmem:[#allocation24_spill] sm:$0xff] %v5851_v16  ;;  %v766_v21 = vld [vmem:[#allocation8 + $0x168] sm:$0xff]  ;;  %v420_v22 = vld [vmem:[%s7273_s1 + $0x10] sm:$0xff]  ;;  %v5863_v24 = vpack.c.bf16 %v753_v17, %v747_v14  ;;  %v757_v25 = vld [vmem:[#allocation8 + $0x120] sm:$0xff]  ;;  %v5867_v28 = vpack.c.bf16 %v764_v19, %v758_v18 }
  0x4e   :  { %3712 = vmatpush3.bf16.msra.mxu0 %v3709_v40  ;;  %7563 = vst [vmem:[#allocation25_spill] sm:$0xff] %v5861_v23  ;;  %v763_v26 = vld [vmem:[#allocation8 + $0x150] sm:$0xff]  ;;  %v765_v30 = vld [vmem:[#allocation8 + $0x160] sm:$0xff]  ;;  %v770_v31 = vld [vmem:[#allocation8 + $0x188] sm:$0xff] }
  0x4f   :  { %3443 = vmatmul.mubr.msk.f32.gmra.mrb[6].mxu0 %vm151_vm0, %v117_v45  ;;  %3583 = vmatmul.mubr.msk.f32.gmra.mrb[6].mxu1 %vm151_vm0, %v117_v45  ;;  %7564 = vst [vmem:[#allocation26_spill] sm:$0xff] %v5863_v24  ;;  %7565 = vst [vmem:[#allocation27_spill] sm:$0xff] %v5867_v28  ;;  %v421_v32 = vld [vmem:[%s7273_s1 + $0x18] sm:$0xff]  ;;  %v778_v35 = vld [vmem:[#allocation8 + $0x1c8] sm:$0xff]  ;;  %v5879_v36 = vpack.c.bf16 %v763_v26, %v757_v25 }
  0x50   :  { %264 = vmatprep.mubr.f32.mxu0 %v7286_v0  ;;  %3585 = vmatprep.mubr.msk.f32.mxu1 %vm151_vm0, %v118_v46  ;;  %v776_v33 = vld [vmem:[#allocation8 + $0x1b8] sm:$0xff]  ;;  %v769_v38 = vld [vmem:[#allocation8 + $0x180] sm:$0xff]  ;;  %v775_v39 = vld [vmem:[#allocation8 + $0x1b0] sm:$0xff] }
  0x51   :  { %3704 = vmatpush1.bf16.msra.mxu1 %v3703_v47  ;;  %3714 = vmatprep.subr.bf16.mxu0 %v5802_v48  ;;  %v772_v34 = vld [vmem:[#allocation8 + $0x198] sm:$0xff]  ;;  %7567 = vst [vmem:[#allocation29_spill] sm:$0xff] %v5879_v36  ;;  %v771_v40 = vld [vmem:[#allocation8 + $0x190] sm:$0xff]  ;;  %v5885_v41 = vpack.c.bf16 %v776_v33, %v770_v31  ;;  %v777_v43 = vld [vmem:[#allocation8 + $0x1c0] sm:$0xff]  ;;  %v5897_v52 = vpack.c.bf16 %v775_v39, %v769_v38 }
  0x52   :  { %3778 = vmatprep.subr.bf16.mxu1 %v5804_v49  ;;  %v5887_v42 = vpack.c.bf16 %v778_v35, %v772_v34  ;;  %v782_v44 = vld [vmem:[#allocation8 + $0x1e8] sm:$0xff]  ;;  %v422_v45 = vld [vmem:[%s7273_s1 + $0x20] sm:$0xff]  ;;  %v784_v47 = vld [vmem:[#allocation8 + $0x1f8] sm:$0xff]  ;;  %v5899_v53 = vpack.c.bf16 %v777_v43, %v771_v40 }
  0x53   :  { %3444 = vmatmul.mubr.msk.f32.gmra.mrb[8].mxu0 %vm151_vm0, %v118_v46  ;;  %3586 = vmatmul.mubr.msk.f32.gmra.mrb[8].mxu1 %vm151_vm0, %v119_v50  ;;  %7569 = vst [vmem:[#allocation31_spill] sm:$0xff] %v5885_v41  ;;  %v788_v46 = vld [vmem:[#allocation8 + $0x218] sm:$0xff]  ;;  %7571 = vst [vmem:[#allocation33_spill] sm:$0xff] %v5897_v52  ;;  %v787_v54 = vld [vmem:[#allocation8 + $0x210] sm:$0xff] }
  0x54   :  { %270 = vmatprep.mubr.f32.mxu0 %v7286_v0  ;;  %3588 = vmatprep.mubr.msk.f32.mxu1 %vm151_vm0, %v5769_v20  ;;  %v760_v20 = vld [vmem:[#allocation8 + $0x138] sm:$0xff]  ;;  %7570 = vst [vmem:[#allocation32_spill] sm:$0xff] %v5887_v42  ;;  %7572 = vst [vmem:[#allocation34_spill] sm:$0xff] %v5899_v53  ;;  %v783_v55 = vld [vmem:[#allocation8 + $0x1f0] sm:$0xff]  ;;  %v5903_v57 = vpack.c.bf16 %v788_v46, %v782_v44 }
  0x55   :  { %v5869_v29 = vpack.c.bf16 %v766_v21, %v760_v20  ;;  %v789_v56 = vld [vmem:[#allocation8 + $0x220] sm:$0xff]  ;;  %v794_v59 = vld [vmem:[#allocation8 + $0x248] sm:$0xff]  ;;  %v796_v1 = vld [vmem:[#allocation8 + $0x258] sm:$0xff] }
  0x56   :  { %7573 = vst [vmem:[#allocation35_spill] sm:$0xff] %v5903_v57  ;;  %v423_v63 = vld [vmem:[%s7273_s1 + $0x28] sm:$0xff]  ;;  %v424_v5 = vld [vmem:[%s7273_s1 + $0x30] sm:$0xff]  ;;  %v5921_v7 = vpack.c.bf16 %v789_v56, %v783_v55  ;;  %v793_v8 = vld [vmem:[#allocation8 + $0x240] sm:$0xff] }
  0x57   :  { %3445 = vmatmul.mubr.msk.f32.gmra.mrb[10].mxu0 %vm151_vm0, %v119_v50  ;;  %3589 = vmatmul.mubr.msk.f32.gmra.mrb[10].mxu1 %vm151_vm0, %v5781_v27  ;;  %v759_v27 = vld [vmem:[#allocation8 + $0x130] sm:$0xff]  ;;  %7566 = vst [vmem:[#allocation28_spill] sm:$0xff] %v5869_v29  ;;  %v790_v50 = vld [vmem:[#allocation8 + $0x228] sm:$0xff]  ;;  %v801_v17 = vld [vmem:[#allocation8 + $0x280] sm:$0xff] }
  0x58   :  { %543 = vmatprep.mubr.f32.mxu1 %v7286_v0  ;;  %3599 = vmatprep.mubr.msk.f32.mxu0 %vm151_vm0, %v418_v51  ;;  %v5881_v37 = vpack.c.bf16 %v765_v30, %v759_v27  ;;  %v5905_v58 = vpack.c.bf16 %v790_v50, %v784_v47  ;;  %v802_v4 = vld [vmem:[#allocation8 + $0x288] sm:$0xff]  ;;  %7576 = vst [vmem:[#allocation38_spill] sm:$0xff] %v5921_v7  ;;  %v799_v9 = vld [vmem:[#allocation8 + $0x270] sm:$0xff]  ;;  %v425_v19 = vld [vmem:[%s7273_s1 + $0x38] sm:$0xff] }
  0x59   :  { %v795_v12 = vld [vmem:[#allocation8 + $0x250] sm:$0xff]  ;;  %v5927_v14 = vpack.c.bf16 %v802_v4, %v796_v1  ;;  %v806_v18 = vld [vmem:[#allocation8 + $0x2a8] sm:$0xff]  ;;  %v812_v20 = vld [vmem:[#allocation8 + $0x2d8] sm:$0xff]  ;;  %v5938_v25 = vpack.c.bf16 %v799_v9, %v793_v8 }
  0x5a   :  { %7568 = vst [vmem:[#allocation30_spill] sm:$0xff] %v5881_v37  ;;  %7574 = vst [vmem:[#allocation36_spill] sm:$0xff] %v5905_v58  ;;  %v808_v21 = vld [vmem:[#allocation8 + $0x2b8] sm:$0xff]  ;;  %v5940_v26 = vpack.c.bf16 %v801_v17, %v795_v12  ;;  %v805_v27 = vld [vmem:[#allocation8 + $0x2a0] sm:$0xff]  ;;  %v5944_v31 = vpack.c.bf16 %v812_v20, %v806_v18 }
  0x5b   :  { %3456 = vmatmul.mubr.msk.f32.vlgmr.msra.gmra.mrb[12].mxu1 %vm151_vm0, %v418_v51  ;;  %3600 = vmatmul.mubr.msk.f32.vlgmr.msra.gmra.mrb[12].mxu0 %vm151_vm0, %v419_v60  ;;  %v781_v51 = vld [vmem:[#allocation8 + $0x1e0] sm:$0xff]  ;;  %7578 = vst [vmem:[#allocation40_spill] sm:$0xff] %v5927_v14  ;;  %7579 = vst [vmem:[#allocation41_spill] sm:$0xff] %v5938_v25  ;;  %v811_v30 = vld [vmem:[#allocation8 + $0x2d0] sm:$0xff] }
  0x5c   :  { %3716 = vmatpush1.bf16.msra.mxu0 %v5831_v61  ;;  %3780 = vmatpush1.bf16.msra.mxu1 %v5833_v62  ;;  %v5919_v6 = vpack.c.bf16 %v787_v54, %v781_v51  ;;  %7580 = vst [vmem:[#allocation42_spill] sm:$0xff] %v5940_v26  ;;  %7581 = vst [vmem:[#allocation43_spill] sm:$0xff] %v5944_v31  ;;  %v807_v33 = vld [vmem:[#allocation8 + $0x2b0] sm:$0xff]  ;;  %v813_v34 = vld [vmem:[#allocation8 + $0x2e0] sm:$0xff]  ;;  %v5952_v43 = vpack.c.bf16 %v811_v30, %v805_v27 }
  0x5d   :  { %3718 = vmatprep.subr.bf16.mxu0 %v5835_v2  ;;  %3782 = vmatprep.subr.bf16.mxu1 %v5837_v3  ;;  %v818_v35 = vld [vmem:[#allocation8 + $0x308] sm:$0xff]  ;;  %v824_v38 = vld [vmem:[#allocation8 + $0x338] sm:$0xff]  ;;  %v5954_v44 = vpack.c.bf16 %v813_v34, %v807_v33  ;;  %v823_v46 = vld [vmem:[#allocation8 + $0x330] sm:$0xff] }
  0x5e   :  { %549 = vmatprep.mubr.f32.mxu1 %v7286_v0  ;;  %3602 = vmatprep.mubr.msk.f32.mxu0 %vm151_vm0, %v420_v22  ;;  %7575 = vst [vmem:[#allocation37_spill] sm:$0xff] %v5919_v6  ;;  %v820_v39 = vld [vmem:[#allocation8 + $0x318] sm:$0xff]  ;;  %v826_v40 = vld [vmem:[#allocation8 + $0x348] sm:$0xff]  ;;  %7583 = vst [vmem:[#allocation45_spill] sm:$0xff] %v5952_v43  ;;  %v5958_v47 = vpack.c.bf16 %v824_v38, %v818_v35 }
  0x5f   :  { %3457 = vmatmul.mubr.msk.f32.gmra.mrb[14].mxu1 %vm151_vm0, %v419_v60  ;;  %3603 = vmatmul.mubr.msk.f32.gmra.mrb[14].mxu0 %vm151_vm0, %v421_v32  ;;  %v800_v60 = vld [vmem:[#allocation8 + $0x278] sm:$0xff]  ;;  %7584 = vst [vmem:[#allocation46_spill] sm:$0xff] %v5954_v44  ;;  %v5960_v50 = vpack.c.bf16 %v826_v40, %v820_v39  ;;  %v819_v51 = vld [vmem:[#allocation8 + $0x310] sm:$0xff]  ;;  %v825_v54 = vld [vmem:[#allocation8 + $0x340] sm:$0xff] }
  0x60   :  { %3720 = vmatpush1.bf16.msra.mxu0 %v5843_v10  ;;  %3784 = vmatpush1.bf16.msra.mxu1 %v5845_v11  ;;  %v5925_v13 = vpack.c.bf16 %v800_v60, %v794_v59  ;;  %7585 = vst [vmem:[#allocation47_spill] sm:$0xff] %v5958_v47  ;;  %v830_v55 = vld [vmem:[#allocation8 + $0x368] sm:$0xff]  ;;  %v836_v56 = vld [vmem:[#allocation8 + $0x398] sm:$0xff]  ;;  %v5968_v1 = vpack.c.bf16 %v825_v54, %v819_v51  ;;  %v829_v4 = vld [vmem:[#allocation8 + $0x360] sm:$0xff] }
  0x61   :  { %3722 = vmatprep.subr.bf16.mxu0 %v5849_v15  ;;  %3786 = vmatprep.subr.bf16.mxu1 %v5851_v16  ;;  %7586 = vst [vmem:[#allocation48_spill] sm:$0xff] %v5960_v50  ;;  %v832_v59 = vld [vmem:[#allocation8 + $0x378] sm:$0xff]  ;;  %v838_v60 = vld [vmem:[#allocation8 + $0x3a8] sm:$0xff]  ;;  %v5972_v8 = vpack.c.bf16 %v836_v56, %v830_v55  ;;  %v831_v12 = vld [vmem:[#allocation8 + $0x370] sm:$0xff] }
  0x62   :  { %555 = vmatprep.mubr.f32.mxu1 %v7286_v0  ;;  %3605 = vmatprep.mubr.msk.f32.mxu0 %vm151_vm0, %v422_v45  ;;  %7577 = vst [vmem:[#allocation39_spill] sm:$0xff] %v5925_v13  ;;  %7588 = vst [vmem:[#allocation50_spill] sm:$0xff] %v5968_v1  ;;  %v5974_v9 = vpack.c.bf16 %v838_v60, %v832_v59  ;;  %v837_v17 = vld [vmem:[#allocation8 + $0x3a0] sm:$0xff]  ;;  %v842_v18 = vld [vmem:[#allocation8 + $0x3c8] sm:$0xff] }
  0x63   :  { %3458 = vmatmul.mubr.msk.f32.gmra.mrb[16].mxu1 %vm151_vm0, %v420_v22  ;;  %3606 = vmatmul.mubr.msk.f32.gmra.mrb[16].mxu0 %vm151_vm0, %v423_v63  ;;  %v814_v22 = vld [vmem:[#allocation8 + $0x2e8] sm:$0xff]  ;;  %7589 = vst [vmem:[#allocation51_spill] sm:$0xff] %v5972_v8  ;;  %v844_v20 = vld [vmem:[#allocation8 + $0x3d8] sm:$0xff]  ;;  %v5981_v27 = vpack.c.bf16 %v837_v17, %v831_v12  ;;  %v841_v30 = vld [vmem:[#allocation8 + $0x3c0] sm:$0xff] }
  0x64   :  { %3724 = vmatpush1.bf16.msra.mxu0 %v5861_v23  ;;  %3788 = vmatpush1.bf16.msra.mxu1 %v5863_v24  ;;  %7590 = vst [vmem:[#allocation52_spill] sm:$0xff] %v5974_v9  ;;  %v847_v33 = vld [vmem:[#allocation8 + $0x3f0] sm:$0xff]  ;;  %v849_v39 = vld [vmem:[#allocation8 + $0x400] sm:$0xff]  ;;  %v854_v40 = vld [vmem:[#allocation8 + $0x428] sm:$0xff] }
  0x65   :  { %3726 = vmatprep.subr.bf16.mxu0 %v5867_v28  ;;  %3790 = vmatprep.subr.bf16.mxu1 %v5869_v29  ;;  %7592 = vst [vmem:[#allocation54_spill] sm:$0xff] %v5981_v27  ;;  %v843_v38 = vld [vmem:[#allocation8 + $0x3d0] sm:$0xff]  ;;  %v862_v51 = vld [vmem:[#allocation8 + $0x468] sm:$0xff]  ;;  %v5991_v54 = vpack.c.bf16 %v847_v33, %v841_v30  ;;  %v853_v56 = vld [vmem:[#allocation8 + $0x420] sm:$0xff] }
  0x66   :  { %561 = vmatprep.mubr.f32.mxu1 %v7286_v0  ;;  %3608 = vmatprep.mubr.msk.f32.mxu0 %vm151_vm0, %v424_v5  ;;  %v5993_v55 = vpack.c.bf16 %v849_v39, %v843_v38  ;;  %v859_v59 = vld [vmem:[#allocation8 + $0x450] sm:$0xff]  ;;  %v861_v12 = vld [vmem:[#allocation8 + $0x460] sm:$0xff]  ;;  %v866_v17 = vld [vmem:[#allocation8 + $0x488] sm:$0xff] }
  0x67   :  { %3459 = vmatmul.mubr.msk.f32.gmra.mrb[18].mxu1 %vm151_vm0, %v421_v32  ;;  %3609 = vmatmul.mubr.msk.f32.gmra.mrb[18].mxu0 %vm151_vm0, %v425_v19  ;;  %v5946_v32 = vpack.c.bf16 %v814_v22, %v808_v21  ;;  %v850_v21 = vld [vmem:[#allocation8 + $0x408] sm:$0xff]  ;;  %7595 = vst [vmem:[#allocation57_spill] sm:$0xff] %v5991_v54  ;;  %v865_v33 = vld [vmem:[#allocation8 + $0x480] sm:$0xff]  ;;  %v871_v38 = vld [vmem:[#allocation8 + $0x4b0] sm:$0xff] }
  0x68   :  { %3728 = vmatpush1.bf16.msra.mxu0 %v5879_v36  ;;  %3792 = vmatpush1.bf16.msra.mxu1 %v5881_v37  ;;  %v5987_v35 = vpack.c.bf16 %v850_v21, %v844_v20  ;;  %7596 = vst [vmem:[#allocation58_spill] sm:$0xff] %v5993_v55  ;;  %v874_v20 = vld [vmem:[#allocation8 + $0x4c8] sm:$0xff]  ;;  %v6003_v21 = vpack.c.bf16 %v859_v59, %v853_v56 }
  0x69   :  { %3730 = vmatprep.subr.bf16.mxu0 %v5885_v41  ;;  %3794 = vmatprep.subr.bf16.mxu1 %v5887_v42  ;;  %7582 = vst [vmem:[#allocation44_spill] sm:$0xff] %v5946_v32  ;;  %v6015_v56 = vpack.c.bf16 %v871_v38, %v865_v33 }
  0x6a   :  { %567 = vmatprep.mubr.f32.mxu1 %v7286_v0  ;;  %996 = vmatprep.mubr.f32.mxu0 %v7286_v0  ;;  %7594 = vst [vmem:[#allocation56_spill] sm:$0xff] %v5987_v35  ;;  %7599 = vst [vmem:[#allocation61_spill] sm:$0xff] %v6003_v21 }
  0x6b   :  { %3460 = vmatmul.mubr.msk.f32.gmra.mrb[20].mxu1 %vm151_vm0, %v422_v45  ;;  %v817_v45 = vld [vmem:[#allocation8 + $0x300] sm:$0xff]  ;;  %7603 = vst [vmem:[#allocation65_spill] sm:$0xff] %v6015_v56 }
  0x6c   :  { %3732 = vmatpush1.bf16.msra.mxu0 %v5897_v52  ;;  %3796 = vmatpush1.bf16.msra.mxu1 %v5899_v53 }
  0x6d   :  { %3734 = vmatprep.subr.bf16.mxu0 %v5903_v57  ;;  %3798 = vmatprep.subr.bf16.mxu1 %v5905_v58 }
  0x6e   :  { %573 = vmatprep.mubr.f32.mxu1 %v7286_v0 }
  0x6f   :  { %3461 = vmatmul.mubr.msk.f32.gmra.mrb[22].mxu1 %vm151_vm0, %v423_v63  ;;  %v5966_v63 = vpack.c.bf16 %v823_v46, %v817_v45  ;;  %v860_v45 = vld [vmem:[#allocation8 + $0x458] sm:$0xff] }
  0x70   :  { %3736 = vmatpush1.bf16.msra.mxu0 %v5919_v6  ;;  %3800 = vmatpush1.bf16.msra.mxu1 %v5921_v7  ;;  %v856_v46 = vld [vmem:[#allocation8 + $0x438] sm:$0xff]  ;;  %v5997_v60 = vpack.c.bf16 %v860_v45, %v854_v40  ;;  %v867_v45 = vld [vmem:[#allocation8 + $0x490] sm:$0xff] }
  0x71   :  { %3738 = vmatprep.subr.bf16.mxu0 %v5925_v13  ;;  %3802 = vmatprep.subr.bf16.mxu1 %v5927_v14  ;;  %7587 = vst [vmem:[#allocation49_spill] sm:$0xff] %v5966_v63 }
  0x72   :  { %579 = vmatprep.mubr.f32.mxu1 %v7286_v0  ;;  %7597 = vst [vmem:[#allocation59_spill] sm:$0xff] %v5997_v60 }
  0x73   :  { %3462 = vmatmul.mubr.msk.f32.gmra.mrb[24].mxu1 %vm151_vm0, %v424_v5  ;;  %v835_v5 = vld [vmem:[#allocation8 + $0x390] sm:$0xff] }
  0x74   :  { %3740 = vmatpush1.bf16.msra.mxu0 %v5938_v25  ;;  %3804 = vmatpush1.bf16.msra.mxu1 %v5940_v26  ;;  %v5979_v22 = vpack.c.bf16 %v835_v5, %v829_v4  ;;  %v5999_v4 = vpack.c.bf16 %v862_v51, %v856_v46  ;;  %v855_v5 = vld [vmem:[#allocation8 + $0x430] sm:$0xff]  ;;  %v873_v46 = vld [vmem:[#allocation8 + $0x4c0] sm:$0xff]  ;;  %v878_v51 = vld [vmem:[#allocation8 + $0x4e8] sm:$0xff] }
  0x75   :  { %3742 = vmatprep.subr.bf16.mxu0 %v5944_v31  ;;  %3806 = vmatprep.subr.bf16.mxu1 %v5946_v32  ;;  %v6005_v30 = vpack.c.bf16 %v861_v12, %v855_v5  ;;  %v6017_v59 = vpack.c.bf16 %v873_v46, %v867_v45  ;;  %v877_v5 = vld [vmem:[#allocation8 + $0x4e0] sm:$0xff]  ;;  %v883_v12 = vld [vmem:[#allocation8 + $0x510] sm:$0xff] }
  0x76   :  { %585 = vmatprep.mubr.f32.mxu1 %v7286_v0  ;;  %7591 = vst [vmem:[#allocation53_spill] sm:$0xff] %v5979_v22  ;;  %7598 = vst [vmem:[#allocation60_spill] sm:$0xff] %v5999_v4  ;;  %v6027_v33 = vpack.c.bf16 %v883_v12, %v877_v5  ;;  %v889_v45 = vld [vmem:[#allocation8 + $0x540] sm:$0xff]  ;;  %v895_v46 = vld [vmem:[#allocation8 + $0x570] sm:$0xff] }
  0x77   :  { %3463 = vmatmul.mubr.msk.f32.gmra.mrb[26].mxu1 %vm151_vm0, %v425_v19  ;;  %v848_v19 = vld [vmem:[#allocation8 + $0x3f8] sm:$0xff]  ;;  %7600 = vst [vmem:[#allocation62_spill] sm:$0xff] %v6005_v30  ;;  %7604 = vst [vmem:[#allocation66_spill] sm:$0xff] %v6017_v59  ;;  %v6039_v5 = vpack.c.bf16 %v895_v46, %v889_v45 }
  0x78   :  { %3744 = vmatpush1.bf16.msra.mxu0 %v5952_v43  ;;  %3808 = vmatpush1.bf16.msra.mxu1 %v5954_v44  ;;  %v5985_v34 = vpack.c.bf16 %v848_v19, %v842_v18  ;;  %v872_v18 = vld [vmem:[#allocation8 + $0x4b8] sm:$0xff]  ;;  %7607 = vst [vmem:[#allocation69_spill] sm:$0xff] %v6027_v33 }
  0x79   :  { %3746 = vmatprep.subr.bf16.mxu0 %v5958_v47  ;;  %3810 = vmatprep.subr.bf16.mxu1 %v5960_v50  ;;  %v868_v19 = vld [vmem:[#allocation8 + $0x498] sm:$0xff]  ;;  %v6009_v39 = vpack.c.bf16 %v872_v18, %v866_v17  ;;  %7611 = vst [vmem:[#allocation73_spill] sm:$0xff] %v6039_v5 }
  0x7a   :  { %1067 = vmatprep.mubr.f32.mxu1 %v7286_v0  ;;  %7593 = vst [vmem:[#allocation55_spill] sm:$0xff] %v5985_v34  ;;  %v6011_v40 = vpack.c.bf16 %v874_v20, %v868_v19  ;;  %v884_v0 = vld [vmem:[#allocation8 + $0x518] sm:$0xff]  ;;  %v879_v19 = vld [vmem:[#allocation8 + $0x4f0] sm:$0xff]  ;;  %v885_v20 = vld [vmem:[#allocation8 + $0x520] sm:$0xff] }
  0x7b   :  { %7601 = vst [vmem:[#allocation63_spill] sm:$0xff] %v6009_v39  ;;  %v6021_v17 = vpack.c.bf16 %v884_v0, %v878_v51  ;;  %v6029_v38 = vpack.c.bf16 %v885_v20, %v879_v19  ;;  %v897_v51 = vld [vmem:[#allocation8 + $0x580] sm:$0xff]  ;;  %v904_v50 = vld [vmem:[#allocation8 + $0x5b8] sm:$0xff] }
  0x7c   :  { %3748 = vmatpush1.bf16.msra.mxu0 %v5966_v63  ;;  %3812 = vmatpush1.bf16.msra.mxu1 %v5968_v1  ;;  %7602 = vst [vmem:[#allocation64_spill] sm:$0xff] %v6011_v40  ;;  %v908_v1 = vld [vmem:[#allocation8 + $0x5d8] sm:$0xff]  ;;  %v901_v19 = vld [vmem:[#allocation8 + $0x5a0] sm:$0xff] }
  0x7d   :  { %3750 = vmatprep.subr.bf16.mxu0 %v5972_v8  ;;  %3814 = vmatprep.subr.bf16.mxu1 %v5974_v9  ;;  %7605 = vst [vmem:[#allocation67_spill] sm:$0xff] %v6021_v17  ;;  %v892_v9 = vld [vmem:[#allocation8 + $0x558] sm:$0xff]  ;;  %7608 = vst [vmem:[#allocation70_spill] sm:$0xff] %v6029_v38  ;;  %v909_v20 = vld [vmem:[#allocation8 + $0x5e0] sm:$0xff] }
  0x7e   :  { %v732_v44 = vld [vmem:[#allocation8 + $0x58] sm:$0xff] }
  0x80   :  { %3752 = vmatpush1.bf16.msra.mxu0 %v5979_v22  ;;  %3816 = vmatpush1.bf16.msra.mxu1 %v5981_v27  ;;  %v896_v27 = vld [vmem:[#allocation8 + $0x578] sm:$0xff] }
  0x81   :  { %3754 = vmatprep.subr.bf16.mxu0 %v5985_v34  ;;  %3818 = vmatprep.subr.bf16.mxu1 %v5987_v35  ;;  %v880_v35 = vld [vmem:[#allocation8 + $0x4f8] sm:$0xff] }
  0x84   :  { %3756 = vmatpush1.bf16.msra.mxu0 %v5991_v54  ;;  %3820 = vmatpush1.bf16.msra.mxu1 %v5993_v55  ;;  %v886_v55 = vld [vmem:[#allocation8 + $0x528] sm:$0xff] }
  0x85   :  { %3758 = vmatprep.subr.bf16.mxu0 %v5997_v60  ;;  %3822 = vmatprep.subr.bf16.mxu1 %v5999_v4  ;;  %v6023_v18 = vpack.c.bf16 %v886_v55, %v880_v35  ;;  %v890_v4 = vld [vmem:[#allocation8 + $0x548] sm:$0xff]  ;;  %v891_v55 = vld [vmem:[#allocation8 + $0x550] sm:$0xff] }
  0x86   :  { %v6033_v0 = vpack.c.bf16 %v896_v27, %v890_v4  ;;  %v6041_v12 = vpack.c.bf16 %v897_v51, %v891_v55  ;;  %v907_v4 = vld [vmem:[#allocation8 + $0x5d0] sm:$0xff]  ;;  %v744_v55 = vld [vmem:[#allocation8 + $0xb8] sm:$0xff]  ;;  %v6062_v51 = vld [vmem:[%s7274_s2] sm:$0xff] }
  0x87   :  { %7606 = vst [vmem:[#allocation68_spill] sm:$0xff] %v6023_v18  ;;  %v6051_v45 = vpack.c.bf16 %v907_v4, %v901_v19  ;;  %vm1210_vm1 = vcmp.gt.s32.totalorder %v6062_v51, 7  ;;  %v7330_v4 = vmov 0   ;;  %vm1202_vm2 = vcmp.gt.s32.totalorder %v6062_v51, 0 }
  0x88   :  { %3760 = vmatpush1.bf16.msra.mxu0 %v6003_v21  ;;  %3824 = vmatpush1.bf16.msra.mxu1 %v6005_v30  ;;  %v898_v30 = vld [vmem:[#allocation8 + $0x588] sm:$0xff]  ;;  %7609 = vst [vmem:[#allocation71_spill] sm:$0xff] %v6033_v0  ;;  %7612 = vst [vmem:[#allocation74_spill] sm:$0xff] %v6041_v12  ;;  %vm1784_vm3 = vcmp.gt.s32.totalorder %v6062_v51, 5  ;;  %vm2071_vm4 = vcmp.gt.s32.totalorder %v6062_v51, 4  ;;  %vm2063_vm5 = vcmp.gt.s32.totalorder %v6062_v51, 3 }
  0x89   :  { %3762 = vmatprep.subr.bf16.mxu0 %v6009_v39  ;;  %3826 = vmatprep.subr.bf16.mxu1 %v6011_v40  ;;  %v6035_v35 = vpack.c.bf16 %v898_v30, %v892_v9  ;;  %v902_v40 = vld [vmem:[#allocation8 + $0x5a8] sm:$0xff]  ;;  %v903_v30 = vld [vmem:[#allocation8 + $0x5b0] sm:$0xff]  ;;  %7615 = vst [vmem:[#allocation77_spill] sm:$0xff] %v6051_v45  ;;  %vm1776_vm6 = vcmp.gt.s32.totalorder %v6062_v51, 2  ;;  %vm1489_vm7 = vcmp.gt.s32.totalorder %v6062_v51, 1  ;;  %vm1497_vm8 = vcmp.gt.s32.totalorder %v6062_v51, 6 }
  0x8a   :  { %v6045_v9 = vpack.c.bf16 %v908_v1, %v902_v40  ;;  %v6053_v46 = vpack.c.bf16 %v909_v20, %v903_v30  ;;  %v731_v40 = vld [vmem:[#allocation8 + $0x50] sm:$0xff]  ;;  %v737_v30 = vld [vmem:[#allocation8 + $0x80] sm:$0xff]  ;;  %5347 = vset.pattern.permute.xlu0 %v7330_v4  ;;  %5348 = vset.pattern.permute.xlu1 %v7330_v4 }
  0x8b   :  { %7610 = vst [vmem:[#allocation72_spill] sm:$0xff] %v6035_v35  ;;  %v743_v20 = vld [vmem:[#allocation8 + $0xb0] sm:$0xff] }
  0x8c   :  { %3764 = vmatpush1.bf16.msra.mxu0 %v6015_v56  ;;  %3828 = vmatpush1.bf16.msra.mxu1 %v6017_v59  ;;  %v910_v59 = vld [vmem:[#allocation8 + $0x5e8] sm:$0xff]  ;;  %7613 = vst [vmem:[#allocation75_spill] sm:$0xff] %v6045_v9  ;;  %7616 = vst [vmem:[#allocation78_spill] sm:$0xff] %v6053_v46 }
  0x8d   :  { %3766 = vmatprep.subr.bf16.mxu0 %v6021_v17  ;;  %3830 = vmatprep.subr.bf16.mxu1 %v6023_v18  ;;  %v6047_v27 = vpack.c.bf16 %v910_v59, %v904_v50  ;;  %v726_v18 = vld [vmem:[#allocation8 + $0x28] sm:$0xff]  ;;  %v725_v50 = vld [vmem:[#allocation8 + $0x20] sm:$0xff] }
  0x8e   :  { %v6057_v1 = vpack.c.bf16 %v732_v44, %v726_v18  ;;  %v738_v59 = vld [vmem:[#allocation8 + $0x88] sm:$0xff]  ;;  %v6067_v19 = vpack.c.bf16 %v731_v40, %v725_v50  ;;  %v6070_v44 = vsel %vm1210_vm1, 1, %v7330_v4  ;;  %v7619_v50 = vmov 0.0  }
  0x8f   :  { %7614 = vst [vmem:[#allocation76_spill] sm:$0xff] %v6047_v27  ;;  %v6073_v18 = vpack.c.bf16 %v744_v55, %v738_v59  ;;  %1213 = vperm.xlu0 %5347, %v6070_v44   ;;  %v6082_v40 = vpack.c.bf16 %v743_v20, %v737_v30  ;;  %v6086_v59 = vsel %vm1202_vm2, 1, %v7330_v4  ;;  %v767_v20 = vld [vmem:[#allocation8 + $0x170] sm:$0xff] }
  0x90   :  { %3768 = vmatpush1.bf16.msra.mxu0 %v6027_v33  ;;  %3832 = vmatpush1.bf16.msra.mxu1 %v6029_v38  ;;  %7617 = vst [vmem:[#allocation79_spill] sm:$0xff] %v6057_v1  ;;  %v768_v38 = vld [vmem:[#allocation8 + $0x178] sm:$0xff]  ;;  %v779_v4 = vld [vmem:[#allocation8 + $0x1d0] sm:$0xff] }
  0x91   :  { %3770 = vmatprep.subr.bf16.mxu0 %v6033_v0  ;;  %3834 = vmatprep.subr.bf16.mxu1 %v6035_v35  ;;  %7618 = vst [vmem:[#allocation80_spill] sm:$0xff] %v6073_v18  ;;  %v762_v35 = vld [vmem:[#allocation8 + $0x148] sm:$0xff] }
  0x93   :  { %1205 = vperm.xlu0 %5347, %v6086_v59  }
  0x94   :  { %3772 = vmatpush1.bf16.msra.mxu0 %v6039_v5  ;;  %3836 = vmatpush1.bf16.msra.mxu1 %v6041_v12  ;;  %v756_v12 = vld [vmem:[#allocation8 + $0x118] sm:$0xff] }
  0x95   :  { %3774 = vmatprep.subr.bf16.mxu0 %v6045_v9  ;;  %3838 = vmatprep.subr.bf16.mxu1 %v6047_v27  ;;  %v750_v27 = vld [vmem:[#allocation8 + $0xe8] sm:$0xff] }
  0x96   :  { %v6089_v55 = vpack.c.bf16 %v756_v12, %v750_v27  ;;  %v6099_v12 = vpack.c.bf16 %v768_v38, %v762_v35  ;;  %v761_v27 = vld [vmem:[#allocation8 + $0x140] sm:$0xff]  ;;  %v786_v38 = vld [vmem:[#allocation8 + $0x208] sm:$0xff]  ;;  %v792_v35 = vld [vmem:[#allocation8 + $0x238] sm:$0xff] }
  0x98   :  { %3776 = vmatpush1.bf16.msra.mxu0 %v6051_v45  ;;  %3840 = vmatpush1.bf16.msra.mxu1 %v6053_v46  ;;  %v755_v46 = vld [vmem:[#allocation8 + $0x110] sm:$0xff] }
  0x99   :  { %3842 = vmatprep.subr.bf16.mxu1 %v6057_v1  ;;  %3906 = vmatprep.subr.bf16.mxu0 %v5802_v48  ;;  %v749_v48 = vld [vmem:[#allocation8 + $0xe0] sm:$0xff] }
  0x9a   :  { %v6096_v30 = vpack.c.bf16 %v755_v46, %v749_v48  ;;  %v773_v46 = vld [vmem:[#allocation8 + $0x1a0] sm:$0xff] }
  0x9b   :  { %997 = vmatmul.mubr.f32.vlgmr.msra.gmra.mrb[0].mxu0 %v7619_v50  ;;  %1068 = vmatmul.mubr.f32.vlgmr.msra.gmra.mrb[28].mxu1 %v7619_v50 }
  0x9c   :  { %3844 = vmatpush1.bf16.msra.mxu1 %v6067_v19  ;;  %1138 = vmatprep.mubr.f32.mxu1 %v7619_v50 }
  0x9d   :  { %3846 = vmatprep.subr.bf16.mxu1 %v6073_v18  ;;  %3908 = vmatpush1.bf16.msra.mxu0 %v5831_v61  ;;  %v774_v61 = vld [vmem:[#allocation8 + $0x1a8] sm:$0xff]  ;;  %v780_v18 = vld [vmem:[#allocation8 + $0x1d8] sm:$0xff] }
  0x9e   :  { %3910 = vmatprep.subr.bf16.mxu0 %v5835_v2  ;;  %v6104_v2 = vpack.c.bf16 %v767_v20, %v761_v27  ;;  %v6107_v48 = vpack.c.bf16 %v780_v18, %v774_v61  ;;  %v6115_v27 = vpack.c.bf16 %v792_v35, %v786_v38  ;;  %v785_v20 = vld [vmem:[#allocation8 + $0x200] sm:$0xff]  ;;  %v798_v61 = vld [vmem:[#allocation8 + $0x268] sm:$0xff]  ;;  %v804_v18 = vld [vmem:[#allocation8 + $0x298] sm:$0xff] }
  0x9f   :  { %v810_v38 = vld [vmem:[#allocation8 + $0x2c8] sm:$0xff]  ;;  %v816_v35 = vld [vmem:[#allocation8 + $0x2f8] sm:$0xff] }
  0xa0   :  { %3848 = vmatpush1.bf16.msra.mxu1 %v6082_v40 }
  0xa1   :  { %3850 = vmatprep.subr.bf16.mxu1 %v6089_v55  ;;  %3912 = vmatpush1.bf16.msra.mxu0 %v5843_v10  ;;  %v6112_v10 = vpack.c.bf16 %v779_v4, %v773_v46  ;;  %v6123_v4 = vpack.c.bf16 %v804_v18, %v798_v61  ;;  %v797_v46 = vld [vmem:[#allocation8 + $0x260] sm:$0xff]  ;;  %v815_v61 = vld [vmem:[#allocation8 + $0x2f0] sm:$0xff]  ;;  %v7623_v18 = vmov 0  }
  0xa2   :  { %3914 = vmatprep.subr.bf16.mxu0 %v5849_v15  ;;  %v791_v15 = vld [vmem:[#allocation8 + $0x230] sm:$0xff] }
  0xa3   :  { %7621 = vst [vmem:[#allocation82_spill] sm:$0xff] %v6123_v4 }
  0xa4   :  { %3852 = vmatpush1.bf16.msra.mxu1 %v6096_v30 }
  0xa5   :  { %3854 = vmatprep.subr.bf16.mxu1 %v6099_v12  ;;  %3916 = vmatpush1.bf16.msra.mxu0 %v5861_v23  ;;  %v6120_v23 = vpack.c.bf16 %v791_v15, %v785_v20  ;;  %v6133_v15 = vpack.c.bf16 %v816_v35, %v810_v38  ;;  %v809_v20 = vld [vmem:[#allocation8 + $0x2c0] sm:$0xff] }
  0xa6   :  { %3918 = vmatprep.subr.bf16.mxu0 %v5867_v28  ;;  %v803_v28 = vld [vmem:[#allocation8 + $0x290] sm:$0xff]  ;;  %v821_v35 = vld [vmem:[#allocation8 + $0x320] sm:$0xff] }
  0xa7   :  { %7620 = vst [vmem:[#allocation81_spill] sm:$0xff] %v6120_v23  ;;  %7622 = vst [vmem:[#allocation83_spill] sm:$0xff] %v6133_v15 }
  0xa8   :  { %3856 = vmatpush1.bf16.msra.mxu1 %v6104_v2 }
  0xa9   :  { %3858 = vmatprep.subr.bf16.mxu1 %v6107_v48  ;;  %3920 = vmatpush1.bf16.msra.mxu0 %v5879_v36  ;;  %v6128_v36 = vpack.c.bf16 %v803_v28, %v797_v46  ;;  %v6142_v28 = vsel %vm2071_vm4, 1, %v7623_v18  ;;  %v6145_v46 = vpack.c.bf16 %v815_v61, %v809_v20  ;;  %v839_v61 = vld [vmem:[#allocation8 + $0x3b0] sm:$0xff] }
  0xaa   :  { %3922 = vmatprep.subr.bf16.mxu0 %v5885_v41  ;;  %v828_v41 = vld [vmem:[#allocation8 + $0x358] sm:$0xff] }
  0xac   :  { %3860 = vmatpush1.bf16.msra.mxu1 %v6112_v10 }
  0xad   :  { %3862 = vmatprep.subr.bf16.mxu1 %v6115_v27  ;;  %3924 = vmatpush1.bf16.msra.mxu0 %v5897_v52  ;;  %v6136_v52 = vsel %vm1784_vm3, 1, %v7623_v18 }
  0xae   :  { %3926 = vmatprep.subr.bf16.mxu0 %v5903_v57  ;;  %v822_v57 = vld [vmem:[#allocation8 + $0x328] sm:$0xff]  ;;  %1787 = vperm.xlu0 %5347, %v6136_v52  }
  0xaf   :  { %v6149_v38 = vpack.c.bf16 %v828_v41, %v822_v57  ;;  %v833_v57 = vld [vmem:[#allocation8 + $0x380] sm:$0xff] }
  0xb0   :  { %3864 = vmatpush1.bf16.msra.mxu1 %v6120_v23  ;;  %v840_v23 = vld [vmem:[#allocation8 + $0x3b8] sm:$0xff] }
  0xb1   :  { %3866 = vmatprep.subr.bf16.mxu1 %v6123_v4  ;;  %3928 = vmatpush1.bf16.msra.mxu0 %v5919_v6  ;;  %7624 = vst [vmem:[#allocation84_spill] sm:$0xff] %v6149_v38  ;;  %v827_v6 = vld [vmem:[#allocation8 + $0x350] sm:$0xff]  ;;  %v834_v4 = vld [vmem:[#allocation8 + $0x388] sm:$0xff] }
  0xb2   :  { %3930 = vmatprep.subr.bf16.mxu0 %v5925_v13  ;;  %2074 = vperm.xlu0 %5347, %v6142_v28   ;;  %v6155_v13 = vsel %vm2063_vm5, 1, %v7623_v18  ;;  %v6158_v20 = vpack.c.bf16 %v827_v6, %v821_v35  ;;  %v6162_v41 = vpack.c.bf16 %v840_v23, %v834_v4  ;;  %v6171_v6 = vpack.c.bf16 %v839_v61, %v833_v57  ;;  %v845_v4 = vld [vmem:[#allocation8 + $0x3e0] sm:$0xff]  ;;  %v851_v35 = vld [vmem:[#allocation8 + $0x410] sm:$0xff] }
  0xb3   :  { %v6184_v57 = vpack.c.bf16 %v851_v35, %v845_v4  ;;  %v863_v61 = vld [vmem:[#allocation8 + $0x470] sm:$0xff]  ;;  %v882_v35 = vld [vmem:[#allocation8 + $0x508] sm:$0xff] }
  0xb4   :  { %3868 = vmatpush1.bf16.msra.mxu1 %v6128_v36  ;;  %7625 = vst [vmem:[#allocation85_spill] sm:$0xff] %v6162_v41 }
  0xb5   :  { %3870 = vmatprep.subr.bf16.mxu1 %v6133_v15  ;;  %3932 = vmatpush1.bf16.msra.mxu0 %v5938_v25  ;;  %v846_v25 = vld [vmem:[#allocation8 + $0x3e8] sm:$0xff]  ;;  %v852_v15 = vld [vmem:[#allocation8 + $0x418] sm:$0xff]  ;;  %7626 = vst [vmem:[#allocation86_spill] sm:$0xff] %v6184_v57 }
  0xb6   :  { %3934 = vmatprep.subr.bf16.mxu0 %v5944_v31  ;;  %2359 = vperm.xlu0 %5347, %v6155_v13   ;;  %v6168_v31 = vsel %vm1776_vm6, 1, %v7623_v18  ;;  %v6175_v23 = vpack.c.bf16 %v852_v15, %v846_v25  ;;  %v857_v15 = vld [vmem:[#allocation8 + $0x440] sm:$0xff] }
  0xb8   :  { %3872 = vmatpush1.bf16.msra.mxu1 %v6145_v46 }
  0xb9   :  { %3874 = vmatprep.subr.bf16.mxu1 %v6149_v38  ;;  %3936 = vmatpush1.bf16.msra.mxu0 %v5952_v43  ;;  %v858_v43 = vld [vmem:[#allocation8 + $0x448] sm:$0xff]  ;;  %v864_v38 = vld [vmem:[#allocation8 + $0x478] sm:$0xff] }
  0xba   :  { %3938 = vmatprep.subr.bf16.mxu0 %v5958_v47  ;;  %2644 = vperm.xlu0 %5347, %v6168_v31   ;;  %v6181_v47 = vsel %vm1489_vm7, 1, %v7623_v18  ;;  %v6187_v25 = vpack.c.bf16 %v864_v38, %v858_v43  ;;  %v869_v43 = vld [vmem:[#allocation8 + $0x4a0] sm:$0xff]  ;;  %v875_v38 = vld [vmem:[#allocation8 + $0x4d0] sm:$0xff]  ;;  %vm5617_vm7 = vmmov 0  }
  0xbc   :  { %3876 = vmatpush1.bf16.msra.mxu1 %v6158_v20  ;;  %7627 = vst [vmem:[#allocation87_spill] sm:$0xff] %v6187_v25 }
  0xbd   :  { %3878 = vmatprep.subr.bf16.mxu1 %v6162_v41  ;;  %3940 = vmatpush1.bf16.msra.mxu0 %v5966_v63  ;;  %v870_v63 = vld [vmem:[#allocation8 + $0x4a8] sm:$0xff]  ;;  %v876_v41 = vld [vmem:[#allocation8 + $0x4d8] sm:$0xff] }
  0xbe   :  { %3942 = vmatprep.subr.bf16.mxu0 %v5972_v8  ;;  %2929 = vperm.xlu0 %5347, %v6181_v47   ;;  %v6193_v8 = vpack.c.bf16 %v863_v61, %v857_v15  ;;  %v6196_v4 = vpack.c.bf16 %v876_v41, %v870_v63  ;;  %v881_v63 = vld [vmem:[#allocation8 + $0x500] sm:$0xff]  ;;  %v887_v41 = vld [vmem:[#allocation8 + $0x530] sm:$0xff]  ;;  %v894_v61 = vld [vmem:[#allocation8 + $0x568] sm:$0xff] }
  0xc0   :  { %3880 = vmatpush1.bf16.msra.mxu1 %v6171_v6  ;;  %7628 = vst [vmem:[#allocation88_spill] sm:$0xff] %v6193_v8  ;;  %7629 = vst [vmem:[#allocation89_spill] sm:$0xff] %v6196_v4 }
  0xc1   :  { %3882 = vmatprep.subr.bf16.mxu1 %v6175_v23  ;;  %3944 = vmatpush1.bf16.msra.mxu0 %v5979_v22  ;;  %v888_v22 = vld [vmem:[#allocation8 + $0x538] sm:$0xff] }
  0xc2   :  { %3946 = vmatprep.subr.bf16.mxu0 %v5985_v34  ;;  %3206 = vperm.xlu0 %5347, %v6070_v44   ;;  %v6202_v34 = vpack.c.bf16 %v875_v38, %v869_v43  ;;  %v6205_v15 = vpack.c.bf16 %v888_v22, %v882_v35  ;;  %v6210_v44 = vpack.c.bf16 %v887_v41, %v881_v63  ;;  %v893_v38 = vld [vmem:[#allocation8 + $0x560] sm:$0xff]  ;;  %v906_v22 = vld [vmem:[#allocation8 + $0x5c8] sm:$0xff]  ;;  %v912_v35 = vld [vmem:[#allocation8 + $0x5f8] sm:$0xff] }
  0xc3   :  { %v6221_v63 = vpack.c.bf16 %v912_v35, %v906_v22  ;;  %v905_v41 = vld [vmem:[#allocation8 + $0x5c0] sm:$0xff]  ;;  %v7642_v35 = vld [vmem:[#allocation56_spill] sm:$0xff] }
  0xc4   :  { %3884 = vmatpush1.bf16.msra.mxu1 %v6184_v57  ;;  %7630 = vst [vmem:[#allocation90_spill] sm:$0xff] %v6202_v34  ;;  %7631 = vst [vmem:[#allocation91_spill] sm:$0xff] %v6205_v15  ;;  %v7641_v22 = vld [vmem:[#allocation54_spill] sm:$0xff] }
  0xc5   :  { %3886 = vmatprep.subr.bf16.mxu1 %v6187_v25  ;;  %3948 = vmatpush1.bf16.msra.mxu0 %v5991_v54  ;;  %v900_v54 = vld [vmem:[#allocation8 + $0x598] sm:$0xff]  ;;  %7632 = vst [vmem:[#allocation92_spill] sm:$0xff] %v6210_v44  ;;  %7635 = vst [vmem:[#allocation95_spill] sm:$0xff] %v6221_v63 }
  0xc6   :  { %3950 = vmatprep.subr.bf16.mxu0 %v5997_v60  ;;  %v6213_v43 = vpack.c.bf16 %v900_v54, %v894_v61  ;;  %v899_v60 = vld [vmem:[#allocation8 + $0x590] sm:$0xff]  ;;  %v7639_v61 = vld [vmem:[#allocation50_spill] sm:$0xff] }
  0xc8   :  { %3888 = vmatpush1.bf16.msra.mxu1 %v6193_v8  ;;  %7633 = vst [vmem:[#allocation93_spill] sm:$0xff] %v6213_v43 }
  0xc9   :  { %3890 = vmatprep.subr.bf16.mxu1 %v6196_v4  ;;  %3952 = vmatpush1.bf16.msra.mxu0 %v6003_v21  ;;  %v6218_v21 = vpack.c.bf16 %v899_v60, %v893_v38  ;;  %v7637_v60 = vld [vmem:[#allocation46_spill] sm:$0xff]  ;;  %v7640_v38 = vld [vmem:[#allocation52_spill] sm:$0xff] }
  0xca   :  { %3954 = vmatprep.subr.bf16.mxu0 %v6009_v39  ;;  %v911_v39 = vld [vmem:[#allocation8 + $0x5f0] sm:$0xff] }
  0xcb   :  { %7634 = vst [vmem:[#allocation94_spill] sm:$0xff] %v6218_v21  ;;  %v6226_v54 = vpack.c.bf16 %v911_v39, %v905_v41  ;;  %v7638_v39 = vld [vmem:[#allocation48_spill] sm:$0xff]  ;;  %v7643_v41 = vld [vmem:[#allocation58_spill] sm:$0xff] }
  0xcc   :  { %3892 = vmatpush1.bf16.msra.mxu1 %v6202_v34 }
  0xcd   :  { %3894 = vmatprep.subr.bf16.mxu1 %v6205_v15  ;;  %3956 = vmatpush1.bf16.msra.mxu0 %v6015_v56  ;;  %7636 = vst [vmem:[#allocation96_spill] sm:$0xff] %v6226_v54  ;;  %v7650_v56 = vld [vmem:[#allocation72_spill] sm:$0xff] }
  0xce   :  { %3958 = vmatprep.subr.bf16.mxu0 %v6021_v17  ;;  %v136_v17 = vlaneseq }
  0xd0   :  { %3896 = vmatpush1.bf16.msra.mxu1 %v6210_v44 }
  0xd1   :  { %3898 = vmatprep.subr.bf16.mxu1 %v6213_v43  ;;  %3960 = vmatpush1.bf16.msra.mxu0 %v6027_v33  ;;  %v7649_v33 = vld [vmem:[#allocation70_spill] sm:$0xff] }
  0xd2   :  { %3962 = vmatprep.subr.bf16.mxu0 %v6033_v0  ;;  %v7648_v0 = vld [vmem:[#allocation68_spill] sm:$0xff] }
  0xd4   :  { %3900 = vmatpush1.bf16.msra.mxu1 %v6218_v21 }
  0xd5   :  { %3902 = vmatprep.subr.bf16.mxu1 %v6221_v63  ;;  %3964 = vmatpush1.bf16.msra.mxu0 %v6039_v5  ;;  %v7647_v5 = vld [vmem:[#allocation66_spill] sm:$0xff]  ;;  %v7652_v63 = vld [vmem:[#allocation76_spill] sm:$0xff] }
  0xd6   :  { %3966 = vmatprep.subr.bf16.mxu0 %v6045_v9  ;;  %v7646_v9 = vld [vmem:[#allocation64_spill] sm:$0xff] }
  0xd8   :  { %3904 = vmatpush1.bf16.msra.mxu1 %v6226_v54  ;;  %v6265_v54 = vshrl.u32 %v136_v17, 7 }
  0xd9   :  { %3970 = vmatprep.subr.bf16.mxu1 %v5804_v49  ;;  %3968 = vmatpush1.bf16.msra.mxu0 %v6051_v45  ;;  %v7645_v45 = vld [vmem:[#allocation62_spill] sm:$0xff] }
  0xda   :  { %4034 = vmatprep.subr.bf16.mxu0 %v6057_v1  ;;  %v7651_v1 = vld [vmem:[#allocation74_spill] sm:$0xff]  ;;  %v146_v44 = vsub.s32 2, %v6265_v54 }
  0xdb   :  { %1139 = vmatmul.mubr.f32.vlgmr.msra.gmra.mrb[30].mxu1 %v7619_v50  ;;  %v7644_v50 = vld [vmem:[#allocation60_spill] sm:$0xff] }
  0xdc   :  { %3972 = vmatpush1.bf16.msra.mxu1 %v5833_v62 }
  0xdd   :  { %3974 = vmatprep.subr.bf16.mxu1 %v5837_v3 }
  0xe0   :  { %3976 = vmatpush1.bf16.msra.mxu1 %v5845_v11 }
  0xe1   :  { %3978 = vmatprep.subr.bf16.mxu1 %v5851_v16 }
  0xe4   :  { %3980 = vmatpush1.bf16.msra.mxu1 %v5863_v24 }
  0xe5   :  { %3982 = vmatprep.subr.bf16.mxu1 %v5869_v29 }
  0xe8   :  { %3984 = vmatpush1.bf16.msra.mxu1 %v5881_v37 }
  0xe9   :  { %3986 = vmatprep.subr.bf16.mxu1 %v5887_v42 }
  0xec   :  { %3988 = vmatpush1.bf16.msra.mxu1 %v5899_v53 }
  0xed   :  { %3990 = vmatprep.subr.bf16.mxu1 %v5905_v58 }
  0xf0   :  { %3992 = vmatpush1.bf16.msra.mxu1 %v5921_v7 }
  0xf1   :  { %3994 = vmatprep.subr.bf16.mxu1 %v5927_v14 }
  0xf4   :  { %3996 = vmatpush1.bf16.msra.mxu1 %v5940_v26 }
  0xf5   :  { %3998 = vmatprep.subr.bf16.mxu1 %v5946_v32 }
  0xf8   :  { %4000 = vmatpush1.bf16.msra.mxu1 %v7637_v60 }
  0xf9   :  { %4002 = vmatprep.subr.bf16.mxu1 %v7638_v39 }
  0xfc   :  { %4004 = vmatpush1.bf16.msra.mxu1 %v7639_v61 }
  0xfd   :  { %4006 = vmatprep.subr.bf16.mxu1 %v7640_v38 }
 0x100   :  { %4008 = vmatpush1.bf16.msra.mxu1 %v7641_v22 }
 0x101   :  { %4010 = vmatprep.subr.bf16.mxu1 %v7642_v35 }
 0x104   :  { %4012 = vmatpush1.bf16.msra.mxu1 %v7643_v41 }
 0x105   :  { %4014 = vmatprep.subr.bf16.mxu1 %v7644_v50 }
 0x108   :  { %4016 = vmatpush1.bf16.msra.mxu1 %v7645_v45 }
 0x109   :  { %4018 = vmatprep.subr.bf16.mxu1 %v7646_v9 }
 0x10c   :  { %4020 = vmatpush1.bf16.msra.mxu1 %v7647_v5  ;;  %v7655_v5 = vld [vmem:[#allocation78_spill] sm:$0xff] }
 0x10d   :  { %4022 = vmatprep.subr.bf16.mxu1 %v7648_v0 }
 0x110   :  { %4024 = vmatpush1.bf16.msra.mxu1 %v7649_v33 }
 0x111   :  { %4026 = vmatprep.subr.bf16.mxu1 %v7650_v56  ;;  %v6278_v56 = vld [vmem:[%s7277_s5] sm:$0x7] }
 0x114   :  { %4028 = vmatpush1.bf16.msra.mxu1 %v7651_v1 }
 0x115   :  { %4030 = vmatprep.subr.bf16.mxu1 %v7652_v63  ;;  %v6285_v63 = vrot.slane %v6278_v56, %v146_v44 }
 0x116   :  { %v6268_v21 = vpop.f32.mrb[0].mxu1 }
 0x117   :  { %7653 = vst [vmem:[#allocation97_spill] sm:$0xff] %v6268_v21  ;;  %v6270_v43 = vpop.f32.mrb[1].mxu1 }
 0x118   :  { %7654 = vst [vmem:[#allocation98_spill] sm:$0xff] %v6270_v43  ;;  %4032 = vmatpush1.bf16.msra.mxu1 %v7655_v5 }
 0x119   :  { %4162 = vmatprep.subr.bf16.mxu1 %v5804_v49 }
 0x11a   :  { %v6280_v1 = vpop.f32.mrb[2].mxu1 }
 0x11b   :  { %7656 = vst [vmem:[#allocation99_spill] sm:$0xff] %v6280_v1  ;;  %v6282_v17 = vpop.f32.mrb[3].mxu1 }
 0x11c   :  { %7657 = vst [vmem:[#allocation100_spill] sm:$0xff] %v6282_v17 }
 0x11e   :  { %v3581_v21 = vpop.f32.mrb[4].mxu1 }
 0x11f   :  { %v6288_v43 = vadd.f32 %v3581_v21, %v6285_v63  ;;  %v6290_v33 = vpop.f32.mrb[5].mxu1  ;;  %v438_v21 = vld [vmem:[%s7278_s6] sm:$0x7] }
 0x121   :  { %7658 = vst [vmem:[#allocation101_spill] sm:$0xff] %v6288_v43  ;;  %v138_v43 = vsub.s32 0, %v6265_v54 }
 0x122   :  { %v3584_v5 = vpop.f32.mrb[6].mxu1 }
 0x123   :  { %v6293_v49 = vadd.f32 %v3584_v5, %v6285_v63  ;;  %v365_v0 = vpop.f32.mrb[7].mxu1  ;;  %v142_v5 = vsub.s32 1, %v6265_v54  ;;  %v443_v45 = vrot.slane %v438_v21, %v138_v43  ;;  %v6378_v57 = vrot.slane %v6278_v56, %v138_v43 }
 0x124   :  { %v6296_v15 = vadd.f32 %v365_v0, %v6285_v63 }
 0x125   :  { %7659 = vst [vmem:[#allocation102_spill] sm:$0xff] %v6293_v49  ;;  %7686 = vst [vmem:[#allocation129_spill] sm:$0xff] %v6378_v57 }
 0x126   :  { %7660 = vst [vmem:[#allocation103_spill] sm:$0xff] %v6296_v15  ;;  %v3587_v1 = vpop.f32.mrb[8].mxu1 }
 0x127   :  { %v6299_v17 = vadd.f32 %v3587_v1, %v6285_v63  ;;  %v375_v34 = vpop.f32.mrb[9].mxu1  ;;  %v6312_v1 = vrot.slane %v438_v21, %v146_v44 }
 0x128   :  { %v6302_v9 = vadd.f32 %v375_v34, %v6285_v63  ;;  %v6317_v34 = vrot.slane %v438_v21, %v142_v5 }
 0x129   :  { %7661 = vst [vmem:[#allocation104_spill] sm:$0xff] %v6299_v17 }
 0x12a   :  { %7662 = vst [vmem:[#allocation105_spill] sm:$0xff] %v6302_v9  ;;  %v3590_v49 = vpop.f32.mrb[10].mxu1 }
 0x12b   :  { %v6310_v0 = vadd.f32 %v3590_v49, %v6285_v63  ;;  %v385_v15 = vpop.f32.mrb[11].mxu1 }
 0x12c   :  { %v6315_v17 = vadd.f32 %v385_v15, %v6285_v63 }
 0x12d   :  { %7663 = vst [vmem:[#allocation106_spill] sm:$0xff] %v6310_v0 }
 0x12e   :  { %7664 = vst [vmem:[#allocation107_spill] sm:$0xff] %v6315_v17  ;;  %v545_v9 = vpop.f32.mrb[12].mxu1  ;;  %v3601_v4 = vpop.f32.mrb[12].mxu0 }
 0x12f   :  { %v6319_v8 = vadd.f32 %v545_v9, %v443_v45  ;;  %v547_v50 = vpop.f32.mrb[13].mxu1  ;;  %v6322_v54 = vadd.f32 %v3601_v4, %v6312_v1  ;;  %v658_v41 = vpop.f32.mrb[13].mxu0 }
 0x130   :  { %v6325_v49 = vadd.f32 %v547_v50, %v6317_v34  ;;  %v6328_v44 = vadd.f32 %v658_v41, %v6312_v1 }
 0x131   :  { %7665 = vst [vmem:[#allocation108_spill] sm:$0xff] %v6319_v8  ;;  %7666 = vst [vmem:[#allocation109_spill] sm:$0xff] %v6322_v54 }
 0x132   :  { %7667 = vst [vmem:[#allocation110_spill] sm:$0xff] %v6325_v49  ;;  %7668 = vst [vmem:[#allocation111_spill] sm:$0xff] %v6328_v44  ;;  %v551_v0 = vpop.f32.mrb[14].mxu1  ;;  %v3604_v9 = vpop.f32.mrb[14].mxu0 }
 0x133   :  { %v6330_v15 = vadd.f32 %v551_v0, %v443_v45  ;;  %v553_v21 = vpop.f32.mrb[15].mxu1  ;;  %v6336_v25 = vadd.f32 %v3604_v9, %v6312_v1  ;;  %v668_v4 = vpop.f32.mrb[15].mxu0 }
 0x134   :  { %v6333_v17 = vadd.f32 %v553_v21, %v6317_v34  ;;  %v6341_v49 = vadd.f32 %v668_v4, %v6312_v1 }
 0x135   :  { %7669 = vst [vmem:[#allocation112_spill] sm:$0xff] %v6330_v15  ;;  %7671 = vst [vmem:[#allocation114_spill] sm:$0xff] %v6336_v25 }
 0x136   :  { %7670 = vst [vmem:[#allocation113_spill] sm:$0xff] %v6333_v17  ;;  %v557_v8 = vpop.f32.mrb[16].mxu1  ;;  %7673 = vst [vmem:[#allocation116_spill] sm:$0xff] %v6341_v49  ;;  %v3607_v15 = vpop.f32.mrb[16].mxu0 }
 0x137   :  { %v6338_v54 = vadd.f32 %v557_v8, %v443_v45  ;;  %v559_v50 = vpop.f32.mrb[17].mxu1  ;;  %v6352_v25 = vadd.f32 %v3607_v15, %v6312_v1  ;;  %v678_v8 = vpop.f32.mrb[17].mxu0 }
 0x138   :  { %v6344_v41 = vadd.f32 %v559_v50, %v6317_v34  ;;  %v6357_v49 = vadd.f32 %v678_v8, %v6312_v1 }
 0x139   :  { %7672 = vst [vmem:[#allocation115_spill] sm:$0xff] %v6338_v54  ;;  %7677 = vst [vmem:[#allocation120_spill] sm:$0xff] %v6352_v25 }
 0x13a   :  { %7674 = vst [vmem:[#allocation117_spill] sm:$0xff] %v6344_v41  ;;  %v563_v0 = vpop.f32.mrb[18].mxu1  ;;  %7679 = vst [vmem:[#allocation122_spill] sm:$0xff] %v6357_v49 }
 0x13b   :  { %v6346_v44 = vadd.f32 %v563_v0, %v443_v45  ;;  %v565_v21 = vpop.f32.mrb[19].mxu1  ;;  %v6362_v0 = vpop.f32.mrb[18].mxu0 }
 0x13c   :  { %v6349_v17 = vadd.f32 %v565_v21, %v6317_v34  ;;  %v688_v21 = vpop.f32.mrb[19].mxu0 }
 0x13d   :  { %7675 = vst [vmem:[#allocation118_spill] sm:$0xff] %v6346_v44  ;;  %v6367_v15 = vadd.f32 %v688_v21, %v6312_v1 }
 0x13e   :  { %7676 = vst [vmem:[#allocation119_spill] sm:$0xff] %v6349_v17  ;;  %v569_v9 = vpop.f32.mrb[20].mxu1 }
 0x13f   :  { %v6354_v54 = vadd.f32 %v569_v9, %v443_v45  ;;  %v571_v4 = vpop.f32.mrb[21].mxu1  ;;  %7682 = vst [vmem:[#allocation125_spill] sm:$0xff] %v6367_v15 }
 0x140   :  { %v6360_v50 = vadd.f32 %v571_v4, %v6317_v34 }
 0x141   :  { %7678 = vst [vmem:[#allocation121_spill] sm:$0xff] %v6354_v54 }
 0x142   :  { %7680 = vst [vmem:[#allocation123_spill] sm:$0xff] %v6360_v50  ;;  %v575_v41 = vpop.f32.mrb[22].mxu1 }
 0x143   :  { %v6364_v17 = vadd.f32 %v575_v41, %v443_v45  ;;  %v577_v44 = vpop.f32.mrb[23].mxu1 }
 0x144   :  { %v6370_v9 = vadd.f32 %v577_v44, %v6317_v34 }
 0x145   :  { %7681 = vst [vmem:[#allocation124_spill] sm:$0xff] %v6364_v17 }
 0x146   :  { %7683 = vst [vmem:[#allocation126_spill] sm:$0xff] %v6370_v9  ;;  %v581_v54 = vpop.f32.mrb[24].mxu1  ;;  %v6382_v9 = vrot.slane %v6278_v56, %v142_v5 }
 0x147   :  { %v6372_v25 = vadd.f32 %v581_v54, %v443_v45  ;;  %v583_v8 = vpop.f32.mrb[25].mxu1 }
 0x148   :  { %v6375_v4 = vadd.f32 %v583_v8, %v6317_v34  ;;  %7687 = vst [vmem:[#allocation130_spill] sm:$0xff] %v6382_v9 }
 0x149   :  { %7684 = vst [vmem:[#allocation127_spill] sm:$0xff] %v6372_v25 }
 0x14a   :  { %7685 = vst [vmem:[#allocation128_spill] sm:$0xff] %v6375_v4  ;;  %v587_v49 = vpop.f32.mrb[26].mxu1 }
 0x14b   :  { %v589_v50 = vpop.f32.mrb[27].mxu1  ;;  %v588_v41 = vadd.f32 %v587_v49, %v443_v45 }
 0x14c   :  { %v590_v51 = vadd.f32 %v589_v50, %v6317_v34 }
 0x16e   :  { %v998_v17 = vpop.f32.mrb[0].mxu0  ;;  %v1069_v35 = vpop.f32.mrb[28].mxu1 }
 0x16f   :  { %v5301_v21 = vadd.f32 %v998_v17, %v6378_v57  ;;  %v1000_v15 = vpop.f32.mrb[1].mxu0  ;;  %v1071_v44 = vpop.f32.mrb[29].mxu1  ;;  %v6388_v17 = vld [vmem:[%s7280_s8] ss:$0 sm:$0xff] }
 0x170   :  { %v1173_v54 = vadd.f32 %v1071_v44, %v588_v41  ;;  %v5302_v8 = vadd.f32 %v1000_v15, %v6382_v9  ;;  %7688 = vst [vmem:[#allocation131_spill] sm:$0xff] %v6388_v17  ;;  %v1165_v56 = vadd.f32 %v6388_v17, %v1069_v35  ;;  %v356_v41 = vadd.f32 %v6290_v33, %v6285_v63 }
 0x171   :  { %v3472_v25 = vmul.f32 -1.442695, %v5301_v21 }
 0x172   :  { %v3473_v4 = vmul.f32 -1.442695, %v5302_v8 }
 0x173   :  { %5349 = vpow2.f32 %v3472_v25 }
 0x174   :  { %5351 = vpow2.f32 %v3473_v4  ;;  %v3475_v4 = vmul.f32 -1.442695, %v1173_v54 }
 0x17d   :  { %v5350_v22 = vpop.eup %5349 }
 0x17e   :  { %v1149_v43 = vadd.f32 1.0, %v5350_v22  ;;  %v5352_v45 = vpop.eup %5351  ;;  %v1498_v22 = vsel %vm1497_vm8, 1, %v7623_v18 }
 0x17f   :  { %v1156_v49 = vadd.f32 1.0, %v5352_v45  ;;  %1500 = vperm.xlu1 %5348, %v1498_v22  }
 0x180   :  { %5353 = vrcp.f32 %v1149_v43 }
 0x181   :  { %5355 = vrcp.f32 %v1156_v49 }
 0x183   :  { %1492 = vperm.xlu1 %5348, %v6181_v47   ;;  %v6406_v47 = vld [vmem:[%s7281_s9] ss:$0 sm:$0xff] }
 0x187   :  { %1779 = vperm.xlu1 %5348, %v6168_v31  }
 0x18a   :  { %v5354_v5 = vpop.eup %5353 }
 0x18b   :  { %v1166_v15 = vmul.f32 %v5354_v5, %v1165_v56  ;;  %v5356_v21 = vpop.eup %5355  ;;  %2066 = vperm.xlu1 %5348, %v6155_v13  }
 0x18c   :  { %v1169_v44 = vsub.f32 1.0, %v5356_v21  ;;  %v1171_v43 = vmul.f32 0.0, %v5356_v21 }
 0x18d   :  { %v1167_v25 = vadd.f32 %v1166_v15, %v356_v41  ;;  %v1214_v41 = vpop.permute.xlu0 %1213 }
 0x18e   :  { %vm1215_vm9 = vcmp.eq.s32.totalorder %v1214_v41, 1  ;;  %v7707_v41 = vld [vmem:[#allocation66_spill] sm:$0xff] }
 0x18f   :  { %5357 = vtanh.f32 %v1167_v25  ;;  %2351 = vperm.xlu1 %5348, %v6142_v28  }
 0x190   :  { %5359 = vpow2.f32 %v3475_v4 }
 0x193   :  { %2636 = vperm.xlu1 %5348, %v6136_v52   ;;  %v694_v52 = vadd.f32 %v6362_v0, %v6312_v1  ;;  %v7689_v0 = vld [vmem:[#allocation80_spill] sm:$0xff] }
 0x197   :  { %2921 = vperm.xlu1 %5348, %v1498_v22  }
 0x199   :  { %v5358_v35 = vpop.eup %5357 }
 0x19a   :  { %v1170_v8 = vmul.f32 %v5358_v35, %v1169_v44  ;;  %v5360_v33 = vpop.eup %5359  ;;  %v6412_v44 = vpop.permute.xlu0 %1205  ;;  %v7690_v35 = vld [vmem:[#allocation81_spill] sm:$0xff] }
 0x19b   :  { %v1177_v63 = vadd.f32 1.0, %v5360_v33  ;;  %3214 = vperm.xlu1 %5348, %v6086_v59   ;;  %vm1207_vm10 = vcmp.eq.s32.totalorder %v6412_v44, 1  ;;  %v7693_v33 = vld [vmem:[#allocation84_spill] sm:$0xff] }
 0x19c   :  { %v6396_v45 = vadd.f32 %v1171_v43, %v1170_v8  ;;  %v7691_v8 = vld [vmem:[#allocation82_spill] sm:$0xff]  ;;  %v7692_v43 = vld [vmem:[#allocation83_spill] sm:$0xff] }
 0x19d   :  { %5361 = vrcp.f32 %v1177_v63  ;;  %v7694_v63 = vld [vmem:[#allocation85_spill] sm:$0xff] }
 0x1a7   :  { %v5362_v13 = vpop.eup %5361 }
 0x1ae   :  { %v1140_v18 = vpop.f32.mrb[30].mxu1 }
 0x1af   :  { %v1180_v54 = vadd.f32 %v1140_v18, %v590_v51  ;;  %v1142_v31 = vpop.f32.mrb[31].mxu1  ;;  %v7695_v51 = vld [vmem:[#allocation54_spill] sm:$0xff]  ;;  %v7696_v18 = vld [vmem:[#allocation56_spill] sm:$0xff] }
 0x1b0   :  { %v1193_v49 = vadd.f32 %v6406_v47, %v1142_v31  ;;  %v7698_v31 = vld [vmem:[#allocation87_spill] sm:$0xff] }
 0x1b1   :  { %v3476_v28 = vmul.f32 -1.442695, %v1180_v54  ;;  %v7697_v54 = vld [vmem:[#allocation86_spill] sm:$0xff] }
 0x1b2   :  { %v1194_v56 = vmul.f32 %v5362_v13, %v1193_v49  ;;  %v7699_v49 = vld [vmem:[#allocation58_spill] sm:$0xff]  ;;  %v7700_v13 = vld [vmem:[#allocation60_spill] sm:$0xff] }
 0x1b3   :  { %5363 = vpow2.f32 %v3476_v28  ;;  %v7701_v28 = vld [vmem:[#allocation88_spill] sm:$0xff] }
 0x1b4   :  { %v1195_v34 = vadd.f32 %v1194_v56, %v694_v52  ;;  %v7702_v52 = vld [vmem:[#allocation89_spill] sm:$0xff]  ;;  %v7703_v56 = vld [vmem:[#allocation62_spill] sm:$0xff] }
 0x1bd   :  { %v5364_v50 = vpop.eup %5363 }
 0x1be   :  { %v1184_v5 = vadd.f32 1.0, %v5364_v50  ;;  %v7705_v50 = vld [vmem:[#allocation90_spill] sm:$0xff] }
 0x1c0   :  { %5365 = vrcp.f32 %v1184_v5  ;;  %v7706_v5 = vld [vmem:[#allocation91_spill] sm:$0xff] }
 0x1c1   :  { %5367 = vtanh.f32 %v1195_v34  ;;  %v7704_v34 = vld [vmem:[#allocation64_spill] sm:$0xff] }
 0x1ca   :  { %v5366_v15 = vpop.eup %5365 }
 0x1cb   :  { %v1197_v25 = vsub.f32 1.0, %v5366_v15  ;;  %v5368_v4 = vpop.eup %5367  ;;  %v1199_v21 = vmul.f32 0.0, %v5366_v15  ;;  %v7708_v15 = vld [vmem:[#allocation68_spill] sm:$0xff] }
 0x1cd   :  { %v1198_v22 = vmul.f32 %v5368_v4, %v1197_v25  ;;  %v7709_v25 = vld [vmem:[#allocation92_spill] sm:$0xff]  ;;  %v7710_v4 = vld [vmem:[#allocation93_spill] sm:$0xff] }
 0x1cf   :  { %v1200_v59 = vadd.f32 %v1199_v21, %v1198_v22  ;;  %v7711_v22 = vld [vmem:[#allocation70_spill] sm:$0xff]  ;;  %v7712_v21 = vld [vmem:[#allocation72_spill] sm:$0xff] }
 0x1d1   :  { %3507 = vmatprep.mubr.msk.f32.mxu0 %vm1215_vm9, %v1200_v59  ;;  %3509 = vmatprep.mubr.msk.f32.mxu1 %vm1215_vm9, %v1200_v59  ;;  %v6415_v1 = vsel %vm1215_vm9, %v1200_v59, 0.0 }
 0x1d2   :  { %3508 = vmatmul.mubr.msk.f32.vlgmr.msra.gmra.mrb[2].mxu0 %vm1207_vm10, %v6396_v45  ;;  %3510 = vmatmul.mubr.msk.f32.vlgmr.msra.gmra.mrb[32].mxu1 %vm1207_vm10, %v6396_v45 }
 0x1d3   :  { %4036 = vmatpush1.bf16.msra.mxu0 %v6067_v19  ;;  %3511 = vmatprep.mubr.msk.f32.mxu0 %vm1215_vm9, %v1200_v59  ;;  %v7713_v59 = vld [vmem:[#allocation94_spill] sm:$0xff] }
 0x1d4   :  { %4038 = vmatprep.subr.bf16.mxu0 %v7689_v0  ;;  %4164 = vmatpush1.bf16.msra.mxu1 %v5833_v62  ;;  %v7744_v62 = vld [vmem:[#allocation63_spill] sm:$0xff] }
 0x1d5   :  { %4166 = vmatprep.subr.bf16.mxu1 %v5837_v3  ;;  %v7743_v3 = vld [vmem:[#allocation61_spill] sm:$0xff] }
 0x1d7   :  { %4040 = vmatpush1.bf16.msra.mxu0 %v6082_v40 }
 0x1d8   :  { %4042 = vmatprep.subr.bf16.mxu0 %v6089_v55  ;;  %4168 = vmatpush1.bf16.msra.mxu1 %v5845_v11  ;;  %v7742_v11 = vld [vmem:[#allocation59_spill] sm:$0xff] }
 0x1d9   :  { %4170 = vmatprep.subr.bf16.mxu1 %v5851_v16  ;;  %v7741_v16 = vld [vmem:[#allocation57_spill] sm:$0xff] }
 0x1db   :  { %4044 = vmatpush1.bf16.msra.mxu0 %v6096_v30 }
 0x1dc   :  { %4046 = vmatprep.subr.bf16.mxu0 %v6099_v12  ;;  %4172 = vmatpush1.bf16.msra.mxu1 %v5863_v24  ;;  %v7740_v24 = vld [vmem:[#allocation55_spill] sm:$0xff] }
 0x1dd   :  { %4174 = vmatprep.subr.bf16.mxu1 %v5869_v29  ;;  %v7739_v29 = vld [vmem:[#allocation53_spill] sm:$0xff] }
 0x1df   :  { %4048 = vmatpush1.bf16.msra.mxu0 %v6104_v2 }
 0x1e0   :  { %4050 = vmatprep.subr.bf16.mxu0 %v6107_v48  ;;  %4176 = vmatpush1.bf16.msra.mxu1 %v5881_v37  ;;  %v7738_v37 = vld [vmem:[#allocation51_spill] sm:$0xff] }
 0x1e1   :  { %4178 = vmatprep.subr.bf16.mxu1 %v5887_v42  ;;  %v7737_v42 = vld [vmem:[#allocation49_spill] sm:$0xff] }
 0x1e3   :  { %4052 = vmatpush1.bf16.msra.mxu0 %v6112_v10 }
 0x1e4   :  { %4054 = vmatprep.subr.bf16.mxu0 %v6115_v27  ;;  %4180 = vmatpush1.bf16.msra.mxu1 %v5899_v53  ;;  %v7736_v53 = vld [vmem:[#allocation47_spill] sm:$0xff] }
 0x1e5   :  { %4182 = vmatprep.subr.bf16.mxu1 %v5905_v58  ;;  %v7735_v58 = vld [vmem:[#allocation45_spill] sm:$0xff] }
 0x1e7   :  { %4056 = vmatpush1.bf16.msra.mxu0 %v7690_v35 }
 0x1e8   :  { %4058 = vmatprep.subr.bf16.mxu0 %v7691_v8  ;;  %4184 = vmatpush1.bf16.msra.mxu1 %v5921_v7  ;;  %v7734_v7 = vld [vmem:[#allocation43_spill] sm:$0xff] }
 0x1e9   :  { %4186 = vmatprep.subr.bf16.mxu1 %v5927_v14  ;;  %v7733_v14 = vld [vmem:[#allocation41_spill] sm:$0xff] }
 0x1eb   :  { %4060 = vmatpush1.bf16.msra.mxu0 %v6128_v36 }
 0x1ec   :  { %4062 = vmatprep.subr.bf16.mxu0 %v7692_v43  ;;  %4188 = vmatpush1.bf16.msra.mxu1 %v5940_v26  ;;  %v7732_v26 = vld [vmem:[#allocation39_spill] sm:$0xff] }
 0x1ed   :  { %4190 = vmatprep.subr.bf16.mxu1 %v5946_v32  ;;  %v7731_v32 = vld [vmem:[#allocation37_spill] sm:$0xff] }
 0x1ef   :  { %4064 = vmatpush1.bf16.msra.mxu0 %v6145_v46 }
 0x1f0   :  { %4066 = vmatprep.subr.bf16.mxu0 %v7693_v33  ;;  %4192 = vmatpush1.bf16.msra.mxu1 %v7637_v60  ;;  %v7730_v60 = vld [vmem:[#allocation35_spill] sm:$0xff] }
 0x1f1   :  { %4194 = vmatprep.subr.bf16.mxu1 %v7638_v39  ;;  %v7729_v39 = vld [vmem:[#allocation33_spill] sm:$0xff] }
 0x1f3   :  { %4068 = vmatpush1.bf16.msra.mxu0 %v6158_v20 }
 0x1f4   :  { %4070 = vmatprep.subr.bf16.mxu0 %v7694_v63  ;;  %4196 = vmatpush1.bf16.msra.mxu1 %v7639_v61  ;;  %v7727_v61 = vld [vmem:[#allocation29_spill] sm:$0xff] }
 0x1f5   :  { %4198 = vmatprep.subr.bf16.mxu1 %v7640_v38  ;;  %v7726_v38 = vld [vmem:[#allocation27_spill] sm:$0xff] }
 0x1f7   :  { %4072 = vmatpush1.bf16.msra.mxu0 %v6171_v6 }
 0x1f8   :  { %4074 = vmatprep.subr.bf16.mxu0 %v6175_v23  ;;  %4200 = vmatpush1.bf16.msra.mxu1 %v7695_v51  ;;  %v7723_v51 = vld [vmem:[#allocation21_spill] sm:$0xff] }
 0x1f9   :  { %4202 = vmatprep.subr.bf16.mxu1 %v7696_v18  ;;  %v7720_v18 = vld [vmem:[#allocation79_spill] sm:$0xff] }
 0x1fb   :  { %4076 = vmatpush1.bf16.msra.mxu0 %v7697_v54 }
 0x1fc   :  { %4078 = vmatprep.subr.bf16.mxu0 %v7698_v31  ;;  %4204 = vmatpush1.bf16.msra.mxu1 %v7699_v49  ;;  %v7717_v49 = vld [vmem:[#allocation96_spill] sm:$0xff] }
 0x1fd   :  { %4206 = vmatprep.subr.bf16.mxu1 %v7700_v13  ;;  %v7716_v13 = vld [vmem:[#allocation76_spill] sm:$0xff] }
 0x1ff   :  { %4080 = vmatpush1.bf16.msra.mxu0 %v7701_v28  ;;  %v7752_v28 = vld [vmem:[#allocation127_spill] sm:$0xff] }
 0x200   :  { %4082 = vmatprep.subr.bf16.mxu0 %v7702_v52  ;;  %4208 = vmatpush1.bf16.msra.mxu1 %v7703_v56  ;;  %v7714_v56 = vld [vmem:[#allocation95_spill] sm:$0xff] }
 0x201   :  { %4210 = vmatprep.subr.bf16.mxu1 %v7704_v34  ;;  %v7715_v34 = vld [vmem:[#allocation74_spill] sm:$0xff] }
 0x203   :  { %4084 = vmatpush1.bf16.msra.mxu0 %v7705_v50 }
 0x204   :  { %4086 = vmatprep.subr.bf16.mxu0 %v7706_v5  ;;  %4212 = vmatpush1.bf16.msra.mxu1 %v7707_v41  ;;  %v7718_v41 = vld [vmem:[#allocation15_spill] sm:$0xff]  ;;  %v7751_v5 = vld [vmem:[#allocation77_spill] sm:$0xff] }
 0x205   :  { %4214 = vmatprep.subr.bf16.mxu1 %v7708_v15  ;;  %v7719_v15 = vld [vmem:[#allocation78_spill] sm:$0xff] }
 0x207   :  { %4088 = vmatpush1.bf16.msra.mxu0 %v7709_v25  ;;  %v7750_v25 = vld [vmem:[#allocation75_spill] sm:$0xff] }
 0x208   :  { %4090 = vmatprep.subr.bf16.mxu0 %v7710_v4  ;;  %4216 = vmatpush1.bf16.msra.mxu1 %v7711_v22  ;;  %v7722_v22 = vld [vmem:[#allocation19_spill] sm:$0xff]  ;;  %v7749_v4 = vld [vmem:[#allocation73_spill] sm:$0xff] }
 0x209   :  { %4218 = vmatprep.subr.bf16.mxu1 %v7712_v21  ;;  %v7721_v21 = vld [vmem:[#allocation17_spill] sm:$0xff] }
 0x20b   :  { %4092 = vmatpush1.bf16.msra.mxu0 %v7713_v59  ;;  %v7748_v59 = vld [vmem:[#allocation71_spill] sm:$0xff] }
 0x20c   :  { %4094 = vmatprep.subr.bf16.mxu0 %v7714_v56  ;;  %4220 = vmatpush1.bf16.msra.mxu1 %v7715_v34  ;;  %v7724_v34 = vld [vmem:[#allocation23_spill] sm:$0xff]  ;;  %v7747_v56 = vld [vmem:[#allocation69_spill] sm:$0xff] }
 0x20d   :  { %4222 = vmatprep.subr.bf16.mxu1 %v7716_v13  ;;  %v7725_v13 = vld [vmem:[#allocation25_spill] sm:$0xff] }
 0x20f   :  { %4096 = vmatpush1.bf16.msra.mxu0 %v7717_v49  ;;  %v7746_v49 = vld [vmem:[#allocation67_spill] sm:$0xff] }
 0x210   :  { %4098 = vmatprep.subr.bf16.mxu0 %v7718_v41  ;;  %4224 = vmatpush1.bf16.msra.mxu1 %v7719_v15  ;;  %v7728_v15 = vld [vmem:[#allocation31_spill] sm:$0xff] }
 0x211   :  { %4226 = vmatprep.subr.bf16.mxu1 %v7720_v18  ;;  %v7745_v18 = vld [vmem:[#allocation65_spill] sm:$0xff] }
 0x212   :  { %3512 = vmatmul.mubr.msk.f32.vlgmr.msra.gmra.mrb[20].mxu0 %vm1207_vm10, %v6396_v45 }
 0x213   :  { %4100 = vmatpush1.bf16.msra.mxu0 %v7721_v21 }
 0x214   :  { %4102 = vmatprep.subr.bf16.mxu0 %v7722_v22 }
 0x217   :  { %4104 = vmatpush1.bf16.msra.mxu0 %v7723_v51 }
 0x218   :  { %4106 = vmatprep.subr.bf16.mxu0 %v7724_v34 }
 0x21b   :  { %4108 = vmatpush1.bf16.msra.mxu0 %v7725_v13 }
 0x21c   :  { %4110 = vmatprep.subr.bf16.mxu0 %v7726_v38 }
 0x21f   :  { %4112 = vmatpush1.bf16.msra.mxu0 %v7727_v61 }
 0x220   :  { %4114 = vmatprep.subr.bf16.mxu0 %v7728_v15 }
 0x223   :  { %4116 = vmatpush1.bf16.msra.mxu0 %v7729_v39 }
 0x224   :  { %4118 = vmatprep.subr.bf16.mxu0 %v7730_v60 }
 0x227   :  { %4120 = vmatpush1.bf16.msra.mxu0 %v7731_v32 }
 0x228   :  { %4122 = vmatprep.subr.bf16.mxu0 %v7732_v26 }
 0x22b   :  { %4124 = vmatpush1.bf16.msra.mxu0 %v7733_v14 }
 0x22c   :  { %4126 = vmatprep.subr.bf16.mxu0 %v7734_v7 }
 0x22f   :  { %4128 = vmatpush1.bf16.msra.mxu0 %v7735_v58 }
 0x230   :  { %4130 = vmatprep.subr.bf16.mxu0 %v7736_v53 }
 0x233   :  { %4132 = vmatpush1.bf16.msra.mxu0 %v7737_v42 }
 0x234   :  { %4134 = vmatprep.subr.bf16.mxu0 %v7738_v37 }
 0x237   :  { %4136 = vmatpush1.bf16.msra.mxu0 %v7739_v29 }
 0x238   :  { %4138 = vmatprep.subr.bf16.mxu0 %v7740_v24 }
 0x23b   :  { %4140 = vmatpush1.bf16.msra.mxu0 %v7741_v16 }
 0x23c   :  { %4142 = vmatprep.subr.bf16.mxu0 %v7742_v11 }
 0x23f   :  { %4144 = vmatpush1.bf16.msra.mxu0 %v7743_v3 }
 0x240   :  { %4146 = vmatprep.subr.bf16.mxu0 %v7744_v62 }
 0x243   :  { %4148 = vmatpush1.bf16.msra.mxu0 %v7745_v18 }
 0x244   :  { %4150 = vmatprep.subr.bf16.mxu0 %v7746_v49 }
 0x247   :  { %4152 = vmatpush1.bf16.msra.mxu0 %v7747_v56 }
 0x248   :  { %4154 = vmatprep.subr.bf16.mxu0 %v7748_v59 }
 0x24b   :  { %4156 = vmatpush1.bf16.msra.mxu0 %v7749_v4 }
 0x24c   :  { %4158 = vmatprep.subr.bf16.mxu0 %v7750_v25 }
 0x24f   :  { %4160 = vmatpush1.bf16.msra.mxu0 %v7751_v5 }
 0x250   :  { %4290 = vmatprep.subr.bf16.mxu0 %v7718_v41 }
 0x2a5   :  { %v1297_v50 = vpop.f32.mrb[2].mxu0  ;;  %v1368_v3 = vpop.f32.mrb[32].mxu1 }
 0x2a6   :  { %v5303_v62 = vadd.f32 %v1297_v50, %v6378_v57  ;;  %v1299_v52 = vpop.f32.mrb[3].mxu0  ;;  %v1370_v18 = vpop.f32.mrb[33].mxu1  ;;  %v1458_v41 = vadd.f32 %v6388_v17, %v1368_v3  ;;  %v7753_v50 = vld [vmem:[#allocation101_spill] sm:$0xff] }
 0x2a7   :  { %v1466_v49 = vadd.f32 %v1370_v18, %v7752_v28  ;;  %v5304_v56 = vadd.f32 %v1299_v52, %v6382_v9  ;;  %v1208_v52 = vsel %vm1207_vm10, %v6396_v45, 0.0 }
 0x2a8   :  { %v3478_v11 = vmul.f32 -1.442695, %v5303_v62 }
 0x2a9   :  { %v3479_v59 = vmul.f32 -1.442695, %v5304_v56  ;;  %v3480_v18 = vmul.f32 -1.442695, %v1466_v49 }
 0x2aa   :  { %5369 = vpow2.f32 %v3478_v11 }
 0x2ab   :  { %5371 = vpow2.f32 %v3479_v59 }
 0x2b4   :  { %v5370_v4 = vpop.eup %5369 }
 0x2b5   :  { %v1448_v25 = vadd.f32 1.0, %v5370_v4  ;;  %v5372_v5 = vpop.eup %5371 }
 0x2b6   :  { %v1455_v16 = vadd.f32 1.0, %v5372_v5 }
 0x2b7   :  { %5373 = vrcp.f32 %v1448_v25 }
 0x2b8   :  { %5375 = vrcp.f32 %v1455_v16  ;;  %v7754_v16 = vld [vmem:[#allocation128_spill] sm:$0xff] }
 0x2c1   :  { %v5374_v31 = vpop.eup %5373 }
 0x2c2   :  { %v1459_v54 = vmul.f32 %v5374_v31, %v1458_v41  ;;  %v5376_v62 = vpop.eup %5375 }
 0x2c3   :  { %v1462_v28 = vsub.f32 1.0, %v5376_v62  ;;  %v1464_v25 = vmul.f32 %v5376_v62, %v1208_v52  ;;  %v1501_v62 = vpop.permute.xlu1 %1500 }
 0x2c4   :  { %v1460_v57 = vadd.f32 %v1459_v54, %v7753_v50  ;;  %vm1502_vm12 = vcmp.eq.s32.totalorder %v1501_v62, 1  ;;  %v7768_v62 = vld [vmem:[#allocation92_spill] sm:$0xff] }
 0x2c6   :  { %5377 = vtanh.f32 %v1460_v57 }
 0x2c7   :  { %5379 = vpow2.f32 %v3480_v18  ;;  %v7755_v18 = vld [vmem:[#allocation125_spill] sm:$0xff] }
 0x2d0   :  { %v5378_v11 = vpop.eup %5377 }
 0x2d1   :  { %v1463_v56 = vmul.f32 %v5378_v11, %v1462_v28  ;;  %v5380_v4 = vpop.eup %5379 }
 0x2d2   :  { %v1470_v3 = vadd.f32 1.0, %v5380_v4  ;;  %v1493_v4 = vpop.permute.xlu1 %1492 }
 0x2d3   :  { %v1465_v5 = vadd.f32 %v1464_v25, %v1463_v56  ;;  %vm1494_vm11 = vcmp.eq.s32.totalorder %v1493_v4, 1  ;;  %v7773_v4 = vld [vmem:[#allocation95_spill] sm:$0xff] }
 0x2d4   :  { %5381 = vrcp.f32 %v1470_v3 }
 0x2de   :  { %v5382_v49 = vpop.eup %5381 }
 0x2e5   :  { %v1439_v31 = vpop.f32.mrb[20].mxu0 }
 0x2e6   :  { %v1473_v41 = vadd.f32 %v1439_v31, %v7754_v16  ;;  %v1441_v54 = vpop.f32.mrb[21].mxu0 }
 0x2e7   :  { %v1480_v57 = vadd.f32 %v6406_v47, %v1441_v54  ;;  %v7760_v54 = vld [vmem:[#allocation88_spill] sm:$0xff] }
 0x2e8   :  { %v3481_v59 = vmul.f32 -1.442695, %v1473_v41  ;;  %v6537_v41 = vsel %vm1494_vm11, %v1465_v5, %v1208_v52  ;;  %v7758_v52 = vld [vmem:[#allocation57_spill] sm:$0xff]  ;;  %v7759_v5 = vld [vmem:[#allocation59_spill] sm:$0xff] }
 0x2e9   :  { %v1481_v50 = vmul.f32 %v5382_v49, %v1480_v57  ;;  %v7761_v57 = vld [vmem:[#allocation89_spill] sm:$0xff] }
 0x2ea   :  { %5383 = vpow2.f32 %v3481_v59  ;;  %v7762_v49 = vld [vmem:[#allocation61_spill] sm:$0xff]  ;;  %v7763_v59 = vld [vmem:[#allocation63_spill] sm:$0xff] }
 0x2eb   :  { %v1482_v17 = vadd.f32 %v1481_v50, %v7755_v18  ;;  %v7764_v50 = vld [vmem:[#allocation90_spill] sm:$0xff]  ;;  %v7765_v18 = vld [vmem:[#allocation91_spill] sm:$0xff] }
 0x2f4   :  { %v5384_v44 = vpop.eup %5383 }
 0x2f5   :  { %v1477_v45 = vadd.f32 1.0, %v5384_v44  ;;  %v7766_v44 = vld [vmem:[#allocation65_spill] sm:$0xff] }
 0x2f7   :  { %5385 = vrcp.f32 %v1477_v45  ;;  %v7767_v45 = vld [vmem:[#allocation67_spill] sm:$0xff] }
 0x2f8   :  { %5387 = vtanh.f32 %v1482_v17  ;;  %v7756_v17 = vld [vmem:[#allocation86_spill] sm:$0xff] }
 0x301   :  { %v5386_v28 = vpop.eup %5385 }
 0x302   :  { %v1484_v11 = vsub.f32 1.0, %v5386_v28  ;;  %v1486_v56 = vmul.f32 %v5386_v28, %v6415_v1  ;;  %v5388_v25 = vpop.eup %5387  ;;  %v7769_v28 = vld [vmem:[#allocation93_spill] sm:$0xff] }
 0x304   :  { %v1485_v3 = vmul.f32 %v5388_v25, %v1484_v11  ;;  %v7770_v11 = vld [vmem:[#allocation69_spill] sm:$0xff]  ;;  %v7772_v25 = vld [vmem:[#allocation94_spill] sm:$0xff] }
 0x306   :  { %v1487_v31 = vadd.f32 %v1486_v56, %v1485_v3  ;;  %v7771_v56 = vld [vmem:[#allocation71_spill] sm:$0xff]  ;;  %v7774_v3 = vld [vmem:[#allocation73_spill] sm:$0xff] }
 0x308   :  { %v6535_v16 = vsel %vm1502_vm12, %v1487_v31, %v6415_v1  ;;  %v7757_v1 = vld [vmem:[#allocation87_spill] sm:$0xff] }
 0x309   :  { %1582 = vmatprep.mubr.f32.mxu0 %v6535_v16  ;;  %1653 = vmatprep.mubr.f32.mxu1 %v6535_v16  ;;  %v7775_v31 = vld [vmem:[#allocation75_spill] sm:$0xff] }
 0x30a   :  { %1583 = vmatmul.mubr.f32.vlgmr.msra.gmra.mrb[4].mxu0 %v6537_v41  ;;  %1654 = vmatmul.mubr.f32.vlgmr.msra.gmra.mrb[34].mxu1 %v6537_v41 }
 0x30b   :  { %4228 = vmatpush1.bf16.msra.mxu1 %v6067_v19  ;;  %1724 = vmatprep.mubr.f32.mxu1 %v6535_v16 }
 0x30c   :  { %4230 = vmatprep.subr.bf16.mxu1 %v7689_v0  ;;  %4292 = vmatpush1.bf16.msra.mxu0 %v7721_v21  ;;  %v7806_v21 = vld [vmem:[#allocation70_spill] sm:$0xff] }
 0x30d   :  { %4294 = vmatprep.subr.bf16.mxu0 %v7722_v22  ;;  %v7805_v22 = vld [vmem:[#allocation68_spill] sm:$0xff] }
 0x30f   :  { %4232 = vmatpush1.bf16.msra.mxu1 %v6082_v40 }
 0x310   :  { %4234 = vmatprep.subr.bf16.mxu1 %v6089_v55  ;;  %4296 = vmatpush1.bf16.msra.mxu0 %v7723_v51  ;;  %v7804_v51 = vld [vmem:[#allocation66_spill] sm:$0xff] }
 0x311   :  { %4298 = vmatprep.subr.bf16.mxu0 %v7724_v34  ;;  %v7803_v34 = vld [vmem:[#allocation64_spill] sm:$0xff] }
 0x313   :  { %4236 = vmatpush1.bf16.msra.mxu1 %v6096_v30 }
 0x314   :  { %4238 = vmatprep.subr.bf16.mxu1 %v6099_v12  ;;  %4300 = vmatpush1.bf16.msra.mxu0 %v7725_v13  ;;  %v7802_v13 = vld [vmem:[#allocation62_spill] sm:$0xff] }
 0x315   :  { %4302 = vmatprep.subr.bf16.mxu0 %v7726_v38  ;;  %v7801_v38 = vld [vmem:[#allocation60_spill] sm:$0xff] }
 0x317   :  { %4240 = vmatpush1.bf16.msra.mxu1 %v6104_v2 }
 0x318   :  { %4242 = vmatprep.subr.bf16.mxu1 %v6107_v48  ;;  %4304 = vmatpush1.bf16.msra.mxu0 %v7727_v61  ;;  %v7800_v61 = vld [vmem:[#allocation58_spill] sm:$0xff] }
 0x319   :  { %4306 = vmatprep.subr.bf16.mxu0 %v7728_v15  ;;  %v7799_v15 = vld [vmem:[#allocation56_spill] sm:$0xff] }
 0x31b   :  { %4244 = vmatpush1.bf16.msra.mxu1 %v6112_v10 }
 0x31c   :  { %4246 = vmatprep.subr.bf16.mxu1 %v6115_v27  ;;  %4308 = vmatpush1.bf16.msra.mxu0 %v7729_v39  ;;  %v7798_v39 = vld [vmem:[#allocation54_spill] sm:$0xff] }
 0x31d   :  { %4310 = vmatprep.subr.bf16.mxu0 %v7730_v60  ;;  %v7797_v60 = vld [vmem:[#allocation52_spill] sm:$0xff] }
 0x31f   :  { %4248 = vmatpush1.bf16.msra.mxu1 %v7690_v35 }
 0x320   :  { %4250 = vmatprep.subr.bf16.mxu1 %v7691_v8  ;;  %4312 = vmatpush1.bf16.msra.mxu0 %v7731_v32  ;;  %v7796_v32 = vld [vmem:[#allocation50_spill] sm:$0xff] }
 0x321   :  { %4314 = vmatprep.subr.bf16.mxu0 %v7732_v26  ;;  %v7795_v26 = vld [vmem:[#allocation48_spill] sm:$0xff] }
 0x323   :  { %4252 = vmatpush1.bf16.msra.mxu1 %v6128_v36 }
 0x324   :  { %4254 = vmatprep.subr.bf16.mxu1 %v7692_v43  ;;  %4316 = vmatpush1.bf16.msra.mxu0 %v7733_v14  ;;  %v7794_v14 = vld [vmem:[#allocation46_spill] sm:$0xff] }
 0x325   :  { %4318 = vmatprep.subr.bf16.mxu0 %v7734_v7  ;;  %v7793_v7 = vld [vmem:[#allocation44_spill] sm:$0xff] }
 0x327   :  { %4256 = vmatpush1.bf16.msra.mxu1 %v6145_v46 }
 0x328   :  { %4258 = vmatprep.subr.bf16.mxu1 %v7693_v33  ;;  %4320 = vmatpush1.bf16.msra.mxu0 %v7735_v58  ;;  %v7792_v58 = vld [vmem:[#allocation42_spill] sm:$0xff] }
 0x329   :  { %4322 = vmatprep.subr.bf16.mxu0 %v7736_v53  ;;  %v7791_v53 = vld [vmem:[#allocation40_spill] sm:$0xff] }
 0x32b   :  { %4260 = vmatpush1.bf16.msra.mxu1 %v6158_v20 }
 0x32c   :  { %4262 = vmatprep.subr.bf16.mxu1 %v7694_v63  ;;  %4324 = vmatpush1.bf16.msra.mxu0 %v7737_v42  ;;  %v7790_v42 = vld [vmem:[#allocation38_spill] sm:$0xff] }
 0x32d   :  { %4326 = vmatprep.subr.bf16.mxu0 %v7738_v37  ;;  %v7789_v37 = vld [vmem:[#allocation36_spill] sm:$0xff] }
 0x32f   :  { %4264 = vmatpush1.bf16.msra.mxu1 %v6171_v6 }
 0x330   :  { %4266 = vmatprep.subr.bf16.mxu1 %v6175_v23  ;;  %4328 = vmatpush1.bf16.msra.mxu0 %v7739_v29  ;;  %v7787_v29 = vld [vmem:[#allocation32_spill] sm:$0xff] }
 0x331   :  { %4330 = vmatprep.subr.bf16.mxu0 %v7740_v24  ;;  %v7786_v24 = vld [vmem:[#allocation30_spill] sm:$0xff] }
 0x333   :  { %4268 = vmatpush1.bf16.msra.mxu1 %v7756_v17 }
 0x334   :  { %4270 = vmatprep.subr.bf16.mxu1 %v7757_v1  ;;  %4332 = vmatpush1.bf16.msra.mxu0 %v7758_v52  ;;  %v7783_v52 = vld [vmem:[#allocation24_spill] sm:$0xff] }
 0x335   :  { %4334 = vmatprep.subr.bf16.mxu0 %v7759_v5  ;;  %v7782_v5 = vld [vmem:[#allocation22_spill] sm:$0xff] }
 0x337   :  { %4272 = vmatpush1.bf16.msra.mxu1 %v7760_v54 }
 0x338   :  { %4274 = vmatprep.subr.bf16.mxu1 %v7761_v57  ;;  %4336 = vmatpush1.bf16.msra.mxu0 %v7762_v49  ;;  %v7779_v49 = vld [vmem:[#allocation79_spill] sm:$0xff] }
 0x339   :  { %4338 = vmatprep.subr.bf16.mxu0 %v7763_v59  ;;  %v7776_v59 = vld [vmem:[#allocation96_spill] sm:$0xff] }
 0x33b   :  { %4276 = vmatpush1.bf16.msra.mxu1 %v7764_v50 }
 0x33c   :  { %4278 = vmatprep.subr.bf16.mxu1 %v7765_v18  ;;  %4340 = vmatpush1.bf16.msra.mxu0 %v7766_v44  ;;  %v7777_v44 = vld [vmem:[#allocation16_spill] sm:$0xff]  ;;  %v7811_v18 = vld [vmem:[#allocation129_spill] sm:$0xff] }
 0x33d   :  { %4342 = vmatprep.subr.bf16.mxu0 %v7767_v45  ;;  %v7778_v45 = vld [vmem:[#allocation77_spill] sm:$0xff] }
 0x33f   :  { %4280 = vmatpush1.bf16.msra.mxu1 %v7768_v62 }
 0x340   :  { %4282 = vmatprep.subr.bf16.mxu1 %v7769_v28  ;;  %4344 = vmatpush1.bf16.msra.mxu0 %v7770_v11  ;;  %v7780_v11 = vld [vmem:[#allocation18_spill] sm:$0xff] }
 0x341   :  { %4346 = vmatprep.subr.bf16.mxu0 %v7771_v56  ;;  %v7781_v56 = vld [vmem:[#allocation20_spill] sm:$0xff] }
 0x343   :  { %4284 = vmatpush1.bf16.msra.mxu1 %v7772_v25  ;;  %v7810_v25 = vld [vmem:[#allocation78_spill] sm:$0xff] }
 0x344   :  { %4286 = vmatprep.subr.bf16.mxu1 %v7773_v4  ;;  %4348 = vmatpush1.bf16.msra.mxu0 %v7774_v3  ;;  %v7784_v3 = vld [vmem:[#allocation26_spill] sm:$0xff]  ;;  %v7809_v4 = vld [vmem:[#allocation76_spill] sm:$0xff] }
 0x345   :  { %4350 = vmatprep.subr.bf16.mxu0 %v7775_v31  ;;  %v7785_v31 = vld [vmem:[#allocation28_spill] sm:$0xff] }
 0x347   :  { %4288 = vmatpush1.bf16.msra.mxu1 %v7776_v59  ;;  %v7808_v59 = vld [vmem:[#allocation74_spill] sm:$0xff] }
 0x348   :  { %4354 = vmatprep.subr.bf16.mxu1 %v7777_v44  ;;  %4352 = vmatpush1.bf16.msra.mxu0 %v7778_v45  ;;  %v7788_v45 = vld [vmem:[#allocation34_spill] sm:$0xff] }
 0x349   :  { %4418 = vmatprep.subr.bf16.mxu0 %v7779_v49  ;;  %v7807_v49 = vld [vmem:[#allocation72_spill] sm:$0xff] }
 0x34a   :  { %1725 = vmatmul.mubr.f32.vlgmr.msra.gmra.mrb[36].mxu1 %v6537_v41 }
 0x34b   :  { %4356 = vmatpush1.bf16.msra.mxu1 %v7780_v11 }
 0x34c   :  { %4358 = vmatprep.subr.bf16.mxu1 %v7781_v56 }
 0x34f   :  { %4360 = vmatpush1.bf16.msra.mxu1 %v7782_v5 }
 0x350   :  { %4362 = vmatprep.subr.bf16.mxu1 %v7783_v52 }
 0x353   :  { %4364 = vmatpush1.bf16.msra.mxu1 %v7784_v3 }
 0x354   :  { %4366 = vmatprep.subr.bf16.mxu1 %v7785_v31 }
 0x357   :  { %4368 = vmatpush1.bf16.msra.mxu1 %v7786_v24 }
 0x358   :  { %4370 = vmatprep.subr.bf16.mxu1 %v7787_v29 }
 0x35b   :  { %4372 = vmatpush1.bf16.msra.mxu1 %v7788_v45 }
 0x35c   :  { %4374 = vmatprep.subr.bf16.mxu1 %v7789_v37 }
 0x35f   :  { %4376 = vmatpush1.bf16.msra.mxu1 %v7790_v42 }
 0x360   :  { %4378 = vmatprep.subr.bf16.mxu1 %v7791_v53 }
 0x363   :  { %4380 = vmatpush1.bf16.msra.mxu1 %v7792_v58 }
 0x364   :  { %4382 = vmatprep.subr.bf16.mxu1 %v7793_v7 }
 0x367   :  { %4384 = vmatpush1.bf16.msra.mxu1 %v7794_v14 }
 0x368   :  { %4386 = vmatprep.subr.bf16.mxu1 %v7795_v26 }
 0x36b   :  { %4388 = vmatpush1.bf16.msra.mxu1 %v7796_v32 }
 0x36c   :  { %4390 = vmatprep.subr.bf16.mxu1 %v7797_v60 }
 0x36f   :  { %4392 = vmatpush1.bf16.msra.mxu1 %v7798_v39 }
 0x370   :  { %4394 = vmatprep.subr.bf16.mxu1 %v7799_v15 }
 0x373   :  { %4396 = vmatpush1.bf16.msra.mxu1 %v7800_v61 }
 0x374   :  { %4398 = vmatprep.subr.bf16.mxu1 %v7801_v38 }
 0x377   :  { %4400 = vmatpush1.bf16.msra.mxu1 %v7802_v13  ;;  %v7812_v13 = vld [vmem:[#allocation124_spill] sm:$0xff] }
 0x378   :  { %4402 = vmatprep.subr.bf16.mxu1 %v7803_v34 }
 0x37b   :  { %4404 = vmatpush1.bf16.msra.mxu1 %v7804_v51 }
 0x37c   :  { %4406 = vmatprep.subr.bf16.mxu1 %v7805_v22 }
 0x37f   :  { %4408 = vmatpush1.bf16.msra.mxu1 %v7806_v21 }
 0x380   :  { %4410 = vmatprep.subr.bf16.mxu1 %v7807_v49 }
 0x383   :  { %4412 = vmatpush1.bf16.msra.mxu1 %v7808_v59 }
 0x384   :  { %4414 = vmatprep.subr.bf16.mxu1 %v7809_v4 }
 0x387   :  { %4416 = vmatpush1.bf16.msra.mxu1 %v7810_v25 }
 0x388   :  { %4546 = vmatprep.subr.bf16.mxu1 %v7777_v44  ;;  %v7813_v44 = vld [vmem:[#allocation131_spill] sm:$0xff] }
 0x3dd   :  { %v1584_v28 = vpop.f32.mrb[4].mxu0  ;;  %v1655_v62 = vpop.f32.mrb[34].mxu1 }
 0x3de   :  { %v5305_v50 = vadd.f32 %v1584_v28, %v7811_v18  ;;  %v1586_v34 = vpop.f32.mrb[5].mxu0  ;;  %v1657_v51 = vpop.f32.mrb[35].mxu1  ;;  %v1745_v38 = vadd.f32 %v7813_v44, %v1655_v62  ;;  %v7814_v28 = vld [vmem:[#allocation103_spill] sm:$0xff]  ;;  %v7815_v62 = vld [vmem:[#allocation126_spill] sm:$0xff] }
 0x3df   :  { %v1753_v22 = vadd.f32 %v1657_v51, %v7812_v13  ;;  %v5306_v21 = vadd.f32 %v1586_v34, %v6382_v9 }
 0x3e0   :  { %v3482_v57 = vmul.f32 -1.442695, %v5305_v50 }
 0x3e1   :  { %v3483_v49 = vmul.f32 -1.442695, %v5306_v21  ;;  %v3484_v51 = vmul.f32 -1.442695, %v1753_v22 }
 0x3e2   :  { %5389 = vpow2.f32 %v3482_v57 }
 0x3e3   :  { %5391 = vpow2.f32 %v3483_v49 }
 0x3ec   :  { %v5390_v59 = vpop.eup %5389 }
 0x3ed   :  { %v1735_v4 = vadd.f32 1.0, %v5390_v59  ;;  %v5392_v25 = vpop.eup %5391 }
 0x3ee   :  { %v1742_v54 = vadd.f32 1.0, %v5392_v25 }
 0x3ef   :  { %5393 = vrcp.f32 %v1735_v4 }
 0x3f0   :  { %5395 = vrcp.f32 %v1742_v54 }
 0x3f9   :  { %v5394_v61 = vpop.eup %5393 }
 0x3fa   :  { %v1746_v1 = vmul.f32 %v5394_v61, %v1745_v38  ;;  %v5396_v13 = vpop.eup %5395 }
 0x3fb   :  { %v1749_v34 = vsub.f32 1.0, %v5396_v13  ;;  %v1751_v49 = vmul.f32 %v5396_v13, %v6537_v41 }
 0x3fc   :  { %v1747_v18 = vadd.f32 %v1746_v1, %v7814_v28 }
 0x3fe   :  { %5397 = vtanh.f32 %v1747_v18  ;;  %v7816_v18 = vld [vmem:[#allocation120_spill] sm:$0xff] }
 0x3ff   :  { %5399 = vpow2.f32 %v3484_v51 }
 0x408   :  { %v5398_v57 = vpop.eup %5397 }
 0x409   :  { %v1750_v21 = vmul.f32 %v5398_v57, %v1749_v34  ;;  %v5400_v50 = vpop.eup %5399 }
 0x40a   :  { %v1757_v4 = vadd.f32 1.0, %v5400_v50 }
 0x40b   :  { %v1752_v59 = vadd.f32 %v1751_v49, %v1750_v21 }
 0x40c   :  { %5401 = vrcp.f32 %v1757_v4  ;;  %v1788_v4 = vpop.permute.xlu0 %1787 }
 0x40d   :  { %vm1789_vm13 = vcmp.eq.s32.totalorder %v1788_v4, 1  ;;  %v7833_v4 = vld [vmem:[#allocation95_spill] sm:$0xff] }
 0x416   :  { %v5402_v1 = vpop.eup %5401 }
 0x41d   :  { %v1726_v25 = vpop.f32.mrb[36].mxu1 }
 0x41e   :  { %v1760_v44 = vadd.f32 %v1726_v25, %v7815_v62  ;;  %v1728_v61 = vpop.f32.mrb[37].mxu1  ;;  %v1780_v62 = vpop.permute.xlu1 %1779 }
 0x41f   :  { %v1767_v38 = vadd.f32 %v6406_v47, %v1728_v61  ;;  %vm1781_vm14 = vcmp.eq.s32.totalorder %v1780_v62, 1  ;;  %v7835_v62 = vld [vmem:[#allocation76_spill] sm:$0xff] }
 0x420   :  { %v3485_v54 = vmul.f32 -1.442695, %v1760_v44  ;;  %v6657_v61 = vsel %vm1781_vm14, %v1752_v59, %v6537_v41  ;;  %v7818_v41 = vld [vmem:[#allocation58_spill] sm:$0xff]  ;;  %v7819_v59 = vld [vmem:[#allocation60_spill] sm:$0xff] }
 0x421   :  { %v1768_v22 = vmul.f32 %v5402_v1, %v1767_v38  ;;  %v7820_v38 = vld [vmem:[#allocation88_spill] sm:$0xff]  ;;  %v7821_v1 = vld [vmem:[#allocation89_spill] sm:$0xff] }
 0x422   :  { %5403 = vpow2.f32 %v3485_v54  ;;  %v7822_v54 = vld [vmem:[#allocation62_spill] sm:$0xff] }
 0x423   :  { %v1769_v28 = vadd.f32 %v1768_v22, %v7816_v18  ;;  %v7823_v22 = vld [vmem:[#allocation64_spill] sm:$0xff]  ;;  %v7824_v18 = vld [vmem:[#allocation90_spill] sm:$0xff] }
 0x42c   :  { %v5404_v51 = vpop.eup %5403 }
 0x42d   :  { %v1764_v34 = vadd.f32 1.0, %v5404_v51  ;;  %v7826_v51 = vld [vmem:[#allocation66_spill] sm:$0xff] }
 0x42f   :  { %5405 = vrcp.f32 %v1764_v34  ;;  %v7827_v34 = vld [vmem:[#allocation68_spill] sm:$0xff] }
 0x430   :  { %5407 = vtanh.f32 %v1769_v28  ;;  %v7825_v28 = vld [vmem:[#allocation91_spill] sm:$0xff] }
 0x439   :  { %v5406_v13 = vpop.eup %5405 }
 0x43a   :  { %v1771_v57 = vsub.f32 1.0, %v5406_v13  ;;  %v5408_v21 = vpop.eup %5407  ;;  %v1773_v50 = vmul.f32 %v5406_v13, %v6535_v16  ;;  %v7828_v13 = vld [vmem:[#allocation92_spill] sm:$0xff] }
 0x43c   :  { %v1772_v49 = vmul.f32 %v5408_v21, %v1771_v57  ;;  %v7829_v57 = vld [vmem:[#allocation93_spill] sm:$0xff]  ;;  %v7830_v21 = vld [vmem:[#allocation70_spill] sm:$0xff] }
 0x43e   :  { %v1774_v25 = vadd.f32 %v1773_v50, %v1772_v49  ;;  %v7831_v49 = vld [vmem:[#allocation72_spill] sm:$0xff]  ;;  %v7832_v50 = vld [vmem:[#allocation94_spill] sm:$0xff] }
 0x440   :  { %v6652_v44 = vsel %vm1789_vm13, %v1774_v25, %v6535_v16  ;;  %v7817_v16 = vld [vmem:[#allocation87_spill] sm:$0xff]  ;;  %v7834_v25 = vld [vmem:[#allocation74_spill] sm:$0xff] }
 0x441   :  { %1869 = vmatprep.mubr.f32.mxu0 %v6652_v44  ;;  %1940 = vmatprep.mubr.f32.mxu1 %v6652_v44 }
 0x442   :  { %1870 = vmatmul.mubr.f32.vlgmr.msra.gmra.mrb[6].mxu0 %v6657_v61  ;;  %1941 = vmatmul.mubr.f32.vlgmr.msra.gmra.mrb[38].mxu1 %v6657_v61 }
 0x443   :  { %4420 = vmatpush1.bf16.msra.mxu0 %v6067_v19  ;;  %2011 = vmatprep.mubr.f32.mxu0 %v6652_v44 }
 0x444   :  { %4422 = vmatprep.subr.bf16.mxu0 %v7689_v0  ;;  %4548 = vmatpush1.bf16.msra.mxu1 %v7780_v11  ;;  %v7866_v11 = vld [vmem:[#allocation69_spill] sm:$0xff] }
 0x445   :  { %4550 = vmatprep.subr.bf16.mxu1 %v7781_v56  ;;  %v7865_v56 = vld [vmem:[#allocation67_spill] sm:$0xff] }
 0x447   :  { %4424 = vmatpush1.bf16.msra.mxu0 %v6082_v40 }
 0x448   :  { %4426 = vmatprep.subr.bf16.mxu0 %v6089_v55  ;;  %4552 = vmatpush1.bf16.msra.mxu1 %v7782_v5  ;;  %v7864_v5 = vld [vmem:[#allocation65_spill] sm:$0xff] }
 0x449   :  { %4554 = vmatprep.subr.bf16.mxu1 %v7783_v52  ;;  %v7863_v52 = vld [vmem:[#allocation63_spill] sm:$0xff] }
 0x44b   :  { %4428 = vmatpush1.bf16.msra.mxu0 %v6096_v30 }
 0x44c   :  { %4430 = vmatprep.subr.bf16.mxu0 %v6099_v12  ;;  %4556 = vmatpush1.bf16.msra.mxu1 %v7784_v3  ;;  %v7862_v3 = vld [vmem:[#allocation61_spill] sm:$0xff] }
 0x44d   :  { %4558 = vmatprep.subr.bf16.mxu1 %v7785_v31  ;;  %v7861_v31 = vld [vmem:[#allocation59_spill] sm:$0xff] }
 0x44f   :  { %4432 = vmatpush1.bf16.msra.mxu0 %v6104_v2 }
 0x450   :  { %4434 = vmatprep.subr.bf16.mxu0 %v6107_v48  ;;  %4560 = vmatpush1.bf16.msra.mxu1 %v7786_v24  ;;  %v7860_v24 = vld [vmem:[#allocation57_spill] sm:$0xff] }
 0x451   :  { %4562 = vmatprep.subr.bf16.mxu1 %v7787_v29  ;;  %v7859_v29 = vld [vmem:[#allocation55_spill] sm:$0xff] }
 0x453   :  { %4436 = vmatpush1.bf16.msra.mxu0 %v6112_v10 }
 0x454   :  { %4438 = vmatprep.subr.bf16.mxu0 %v6115_v27  ;;  %4564 = vmatpush1.bf16.msra.mxu1 %v7788_v45  ;;  %v7858_v45 = vld [vmem:[#allocation53_spill] sm:$0xff] }
 0x455   :  { %4566 = vmatprep.subr.bf16.mxu1 %v7789_v37  ;;  %v7857_v37 = vld [vmem:[#allocation51_spill] sm:$0xff] }
 0x457   :  { %4440 = vmatpush1.bf16.msra.mxu0 %v7690_v35 }
 0x458   :  { %4442 = vmatprep.subr.bf16.mxu0 %v7691_v8  ;;  %4568 = vmatpush1.bf16.msra.mxu1 %v7790_v42  ;;  %v7856_v42 = vld [vmem:[#allocation49_spill] sm:$0xff] }
 0x459   :  { %4570 = vmatprep.subr.bf16.mxu1 %v7791_v53  ;;  %v7855_v53 = vld [vmem:[#allocation47_spill] sm:$0xff] }
 0x45b   :  { %4444 = vmatpush1.bf16.msra.mxu0 %v6128_v36 }
 0x45c   :  { %4446 = vmatprep.subr.bf16.mxu0 %v7692_v43  ;;  %4572 = vmatpush1.bf16.msra.mxu1 %v7792_v58  ;;  %v7854_v58 = vld [vmem:[#allocation45_spill] sm:$0xff] }
 0x45d   :  { %4574 = vmatprep.subr.bf16.mxu1 %v7793_v7  ;;  %v7853_v7 = vld [vmem:[#allocation43_spill] sm:$0xff] }
 0x45f   :  { %4448 = vmatpush1.bf16.msra.mxu0 %v6145_v46 }
 0x460   :  { %4450 = vmatprep.subr.bf16.mxu0 %v7693_v33  ;;  %4576 = vmatpush1.bf16.msra.mxu1 %v7794_v14  ;;  %v7852_v14 = vld [vmem:[#allocation41_spill] sm:$0xff] }
 0x461   :  { %4578 = vmatprep.subr.bf16.mxu1 %v7795_v26  ;;  %v7851_v26 = vld [vmem:[#allocation39_spill] sm:$0xff] }
 0x463   :  { %4452 = vmatpush1.bf16.msra.mxu0 %v6158_v20 }
 0x464   :  { %4454 = vmatprep.subr.bf16.mxu0 %v7694_v63  ;;  %4580 = vmatpush1.bf16.msra.mxu1 %v7796_v32  ;;  %v7850_v32 = vld [vmem:[#allocation37_spill] sm:$0xff] }
 0x465   :  { %4582 = vmatprep.subr.bf16.mxu1 %v7797_v60  ;;  %v7849_v60 = vld [vmem:[#allocation35_spill] sm:$0xff] }
 0x467   :  { %4456 = vmatpush1.bf16.msra.mxu0 %v6171_v6 }
 0x468   :  { %4458 = vmatprep.subr.bf16.mxu0 %v6175_v23  ;;  %4584 = vmatpush1.bf16.msra.mxu1 %v7798_v39  ;;  %v7847_v39 = vld [vmem:[#allocation31_spill] sm:$0xff] }
 0x469   :  { %4586 = vmatprep.subr.bf16.mxu1 %v7799_v15  ;;  %v7846_v15 = vld [vmem:[#allocation29_spill] sm:$0xff] }
 0x46b   :  { %4460 = vmatpush1.bf16.msra.mxu0 %v7756_v17 }
 0x46c   :  { %4462 = vmatprep.subr.bf16.mxu0 %v7817_v16  ;;  %4588 = vmatpush1.bf16.msra.mxu1 %v7818_v41  ;;  %v7843_v41 = vld [vmem:[#allocation23_spill] sm:$0xff] }
 0x46d   :  { %4590 = vmatprep.subr.bf16.mxu1 %v7819_v59  ;;  %v7842_v59 = vld [vmem:[#allocation21_spill] sm:$0xff] }
 0x46f   :  { %4464 = vmatpush1.bf16.msra.mxu0 %v7820_v38 }
 0x470   :  { %4466 = vmatprep.subr.bf16.mxu0 %v7821_v1  ;;  %4592 = vmatpush1.bf16.msra.mxu1 %v7822_v54  ;;  %v7839_v54 = vld [vmem:[#allocation79_spill] sm:$0xff] }
 0x471   :  { %4594 = vmatprep.subr.bf16.mxu1 %v7823_v22  ;;  %v7836_v22 = vld [vmem:[#allocation96_spill] sm:$0xff] }
 0x473   :  { %4468 = vmatpush1.bf16.msra.mxu0 %v7824_v18 }
 0x474   :  { %4470 = vmatprep.subr.bf16.mxu0 %v7825_v28  ;;  %4596 = vmatpush1.bf16.msra.mxu1 %v7826_v51  ;;  %v7837_v51 = vld [vmem:[#allocation15_spill] sm:$0xff]  ;;  %v7871_v28 = vld [vmem:[#allocation129_spill] sm:$0xff] }
 0x475   :  { %4598 = vmatprep.subr.bf16.mxu1 %v7827_v34  ;;  %v7838_v34 = vld [vmem:[#allocation78_spill] sm:$0xff] }
 0x477   :  { %4472 = vmatpush1.bf16.msra.mxu0 %v7828_v13 }
 0x478   :  { %4474 = vmatprep.subr.bf16.mxu0 %v7829_v57  ;;  %4600 = vmatpush1.bf16.msra.mxu1 %v7830_v21  ;;  %v7840_v21 = vld [vmem:[#allocation17_spill] sm:$0xff] }
 0x479   :  { %4602 = vmatprep.subr.bf16.mxu1 %v7831_v49  ;;  %v7841_v49 = vld [vmem:[#allocation19_spill] sm:$0xff] }
 0x47b   :  { %4476 = vmatpush1.bf16.msra.mxu0 %v7832_v50  ;;  %v7870_v50 = vld [vmem:[#allocation77_spill] sm:$0xff] }
 0x47c   :  { %4478 = vmatprep.subr.bf16.mxu0 %v7833_v4  ;;  %4604 = vmatpush1.bf16.msra.mxu1 %v7834_v25  ;;  %v7844_v25 = vld [vmem:[#allocation25_spill] sm:$0xff]  ;;  %v7869_v4 = vld [vmem:[#allocation75_spill] sm:$0xff] }
 0x47d   :  { %4606 = vmatprep.subr.bf16.mxu1 %v7835_v62  ;;  %v7845_v62 = vld [vmem:[#allocation27_spill] sm:$0xff] }
 0x47f   :  { %4480 = vmatpush1.bf16.msra.mxu0 %v7836_v22  ;;  %v7868_v22 = vld [vmem:[#allocation73_spill] sm:$0xff] }
 0x480   :  { %4482 = vmatprep.subr.bf16.mxu0 %v7837_v51  ;;  %4608 = vmatpush1.bf16.msra.mxu1 %v7838_v34  ;;  %v7848_v34 = vld [vmem:[#allocation33_spill] sm:$0xff] }
 0x481   :  { %4610 = vmatprep.subr.bf16.mxu1 %v7839_v54  ;;  %v7867_v54 = vld [vmem:[#allocation71_spill] sm:$0xff] }
 0x482   :  { %2012 = vmatmul.mubr.f32.vlgmr.msra.gmra.mrb[22].mxu0 %v6657_v61 }
 0x483   :  { %4484 = vmatpush1.bf16.msra.mxu0 %v7840_v21 }
 0x484   :  { %4486 = vmatprep.subr.bf16.mxu0 %v7841_v49 }
 0x487   :  { %4488 = vmatpush1.bf16.msra.mxu0 %v7842_v59 }
 0x488   :  { %4490 = vmatprep.subr.bf16.mxu0 %v7843_v41 }
 0x48b   :  { %4492 = vmatpush1.bf16.msra.mxu0 %v7844_v25 }
 0x48c   :  { %4494 = vmatprep.subr.bf16.mxu0 %v7845_v62 }
 0x48f   :  { %4496 = vmatpush1.bf16.msra.mxu0 %v7846_v15 }
 0x490   :  { %4498 = vmatprep.subr.bf16.mxu0 %v7847_v39 }
 0x493   :  { %4500 = vmatpush1.bf16.msra.mxu0 %v7848_v34 }
 0x494   :  { %4502 = vmatprep.subr.bf16.mxu0 %v7849_v60 }
 0x497   :  { %4504 = vmatpush1.bf16.msra.mxu0 %v7850_v32 }
 0x498   :  { %4506 = vmatprep.subr.bf16.mxu0 %v7851_v26 }
 0x49b   :  { %4508 = vmatpush1.bf16.msra.mxu0 %v7852_v14 }
 0x49c   :  { %4510 = vmatprep.subr.bf16.mxu0 %v7853_v7 }
 0x49f   :  { %4512 = vmatpush1.bf16.msra.mxu0 %v7854_v58 }
 0x4a0   :  { %4514 = vmatprep.subr.bf16.mxu0 %v7855_v53 }
 0x4a3   :  { %4516 = vmatpush1.bf16.msra.mxu0 %v7856_v42 }
 0x4a4   :  { %4518 = vmatprep.subr.bf16.mxu0 %v7857_v37 }
 0x4a7   :  { %4520 = vmatpush1.bf16.msra.mxu0 %v7858_v45 }
 0x4a8   :  { %4522 = vmatprep.subr.bf16.mxu0 %v7859_v29 }
 0x4ab   :  { %4524 = vmatpush1.bf16.msra.mxu0 %v7860_v24 }
 0x4ac   :  { %4526 = vmatprep.subr.bf16.mxu0 %v7861_v31 }
 0x4af   :  { %4528 = vmatpush1.bf16.msra.mxu0 %v7862_v3  ;;  %v7872_v3 = vld [vmem:[#allocation121_spill] sm:$0xff] }
 0x4b0   :  { %4530 = vmatprep.subr.bf16.mxu0 %v7863_v52 }
 0x4b3   :  { %4532 = vmatpush1.bf16.msra.mxu0 %v7864_v5 }
 0x4b4   :  { %4534 = vmatprep.subr.bf16.mxu0 %v7865_v56 }
 0x4b7   :  { %4536 = vmatpush1.bf16.msra.mxu0 %v7866_v11 }
 0x4b8   :  { %4538 = vmatprep.subr.bf16.mxu0 %v7867_v54 }
 0x4bb   :  { %4540 = vmatpush1.bf16.msra.mxu0 %v7868_v22 }
 0x4bc   :  { %4542 = vmatprep.subr.bf16.mxu0 %v7869_v4 }
 0x4bf   :  { %4544 = vmatpush1.bf16.msra.mxu0 %v7870_v50 }
 0x4c0   :  { %4674 = vmatprep.subr.bf16.mxu0 %v7837_v51  ;;  %v7873_v51 = vld [vmem:[#allocation131_spill] sm:$0xff] }
 0x515   :  { %v1871_v57 = vpop.f32.mrb[6].mxu0  ;;  %v1942_v13 = vpop.f32.mrb[38].mxu1 }
 0x516   :  { %v5307_v18 = vadd.f32 %v1871_v57, %v7871_v28  ;;  %v1873_v52 = vpop.f32.mrb[7].mxu0  ;;  %v1944_v5 = vpop.f32.mrb[39].mxu1  ;;  %v2032_v31 = vadd.f32 %v7873_v51, %v1942_v13  ;;  %v7874_v57 = vld [vmem:[#allocation102_spill] sm:$0xff]  ;;  %v7875_v51 = vld [vmem:[#allocation123_spill] sm:$0xff] }
 0x517   :  { %v2040_v56 = vadd.f32 %v1944_v5, %v7872_v3  ;;  %v5308_v11 = vadd.f32 %v1873_v52, %v6382_v9 }
 0x518   :  { %v3486_v1 = vmul.f32 -1.442695, %v5307_v18 }
 0x519   :  { %v3487_v54 = vmul.f32 -1.442695, %v5308_v11  ;;  %v3488_v5 = vmul.f32 -1.442695, %v2040_v56 }
 0x51a   :  { %5409 = vpow2.f32 %v3486_v1 }
 0x51b   :  { %5411 = vpow2.f32 %v3487_v54 }
 0x524   :  { %v5410_v22 = vpop.eup %5409 }
 0x525   :  { %v2022_v4 = vadd.f32 1.0, %v5410_v22  ;;  %v5412_v50 = vpop.eup %5411 }
 0x526   :  { %v2029_v38 = vadd.f32 1.0, %v5412_v50 }
 0x527   :  { %5413 = vrcp.f32 %v2022_v4 }
 0x528   :  { %5415 = vrcp.f32 %v2029_v38 }
 0x531   :  { %v5414_v24 = vpop.eup %5413 }
 0x532   :  { %v2033_v16 = vmul.f32 %v5414_v24, %v2032_v31  ;;  %v5416_v3 = vpop.eup %5415 }
 0x533   :  { %v2036_v52 = vsub.f32 1.0, %v5416_v3  ;;  %v2038_v54 = vmul.f32 %v5416_v3, %v6657_v61 }
 0x534   :  { %v2034_v28 = vadd.f32 %v2033_v16, %v7874_v57 }
 0x536   :  { %5417 = vtanh.f32 %v2034_v28  ;;  %v7876_v28 = vld [vmem:[#allocation122_spill] sm:$0xff] }
 0x537   :  { %5419 = vpow2.f32 %v3488_v5 }
 0x540   :  { %v5418_v1 = vpop.eup %5417 }
 0x541   :  { %v2037_v11 = vmul.f32 %v5418_v1, %v2036_v52  ;;  %v5420_v18 = vpop.eup %5419 }
 0x542   :  { %v2044_v4 = vadd.f32 1.0, %v5420_v18 }
 0x543   :  { %v2039_v22 = vadd.f32 %v2038_v54, %v2037_v11 }
 0x544   :  { %5421 = vrcp.f32 %v2044_v4  ;;  %v2075_v4 = vpop.permute.xlu0 %2074 }
 0x545   :  { %vm2076_vm15 = vcmp.eq.s32.totalorder %v2075_v4, 1  ;;  %v7894_v4 = vld [vmem:[#allocation73_spill] sm:$0xff] }
 0x54e   :  { %v5422_v16 = vpop.eup %5421 }
 0x555   :  { %v2013_v50 = vpop.f32.mrb[22].mxu0 }
 0x556   :  { %v2047_v13 = vadd.f32 %v2013_v50, %v7875_v51  ;;  %v2015_v24 = vpop.f32.mrb[23].mxu0 }
 0x557   :  { %v2054_v31 = vadd.f32 %v6406_v47, %v2015_v24  ;;  %v2067_v47 = vpop.permute.xlu1 %2066  ;;  %v7880_v24 = vld [vmem:[#allocation88_spill] sm:$0xff] }
 0x558   :  { %v3489_v38 = vmul.f32 -1.442695, %v2047_v13  ;;  %vm2068_vm0 = vcmp.eq.s32.totalorder %v2067_v47, 1  ;;  %v7896_v47 = vld [vmem:[#allocation96_spill] sm:$0xff] }
 0x559   :  { %v2055_v56 = vmul.f32 %v5422_v16, %v2054_v31  ;;  %v6775_v13 = vsel %vm2068_vm0, %v2039_v22, %v6657_v61  ;;  %v7878_v61 = vld [vmem:[#allocation57_spill] sm:$0xff]  ;;  %v7879_v22 = vld [vmem:[#allocation59_spill] sm:$0xff] }
 0x55a   :  { %5423 = vpow2.f32 %v3489_v38  ;;  %v7881_v31 = vld [vmem:[#allocation89_spill] sm:$0xff]  ;;  %v7883_v38 = vld [vmem:[#allocation63_spill] sm:$0xff] }
 0x55b   :  { %v2056_v57 = vadd.f32 %v2055_v56, %v7876_v28  ;;  %v7882_v16 = vld [vmem:[#allocation61_spill] sm:$0xff]  ;;  %v7884_v56 = vld [vmem:[#allocation90_spill] sm:$0xff]  ;;  %v7885_v28 = vld [vmem:[#allocation91_spill] sm:$0xff] }
 0x564   :  { %v5424_v5 = vpop.eup %5423 }
 0x565   :  { %v2051_v52 = vadd.f32 1.0, %v5424_v5  ;;  %v7887_v5 = vld [vmem:[#allocation67_spill] sm:$0xff] }
 0x567   :  { %5425 = vrcp.f32 %v2051_v52  ;;  %v7888_v52 = vld [vmem:[#allocation92_spill] sm:$0xff] }
 0x568   :  { %5427 = vtanh.f32 %v2056_v57  ;;  %v7886_v57 = vld [vmem:[#allocation65_spill] sm:$0xff] }
 0x571   :  { %v5426_v3 = vpop.eup %5425 }
 0x572   :  { %v2058_v1 = vsub.f32 1.0, %v5426_v3  ;;  %v5428_v11 = vpop.eup %5427  ;;  %v2060_v18 = vmul.f32 %v5426_v3, %v6652_v44  ;;  %v7889_v3 = vld [vmem:[#allocation93_spill] sm:$0xff] }
 0x574   :  { %v2059_v54 = vmul.f32 %v5428_v11, %v2058_v1  ;;  %v7890_v1 = vld [vmem:[#allocation69_spill] sm:$0xff]  ;;  %v7891_v11 = vld [vmem:[#allocation71_spill] sm:$0xff] }
 0x576   :  { %v2061_v50 = vadd.f32 %v2060_v18, %v2059_v54  ;;  %v7892_v54 = vld [vmem:[#allocation94_spill] sm:$0xff]  ;;  %v7893_v18 = vld [vmem:[#allocation95_spill] sm:$0xff] }
 0x578   :  { %v6770_v51 = vsel %vm2076_vm15, %v2061_v50, %v6652_v44  ;;  %v7877_v44 = vld [vmem:[#allocation87_spill] sm:$0xff] }
 0x579   :  { %2154 = vmatprep.mubr.f32.mxu0 %v6770_v51  ;;  %2225 = vmatprep.mubr.f32.mxu1 %v6770_v51  ;;  %v7895_v50 = vld [vmem:[#allocation75_spill] sm:$0xff] }
 0x57a   :  { %2155 = vmatmul.mubr.f32.vlgmr.msra.gmra.mrb[8].mxu0 %v6775_v13  ;;  %2226 = vmatmul.mubr.f32.vlgmr.msra.gmra.mrb[40].mxu1 %v6775_v13 }
 0x57b   :  { %4612 = vmatpush1.bf16.msra.mxu1 %v6067_v19  ;;  %2296 = vmatprep.mubr.f32.mxu1 %v6770_v51 }
 0x57c   :  { %4614 = vmatprep.subr.bf16.mxu1 %v7689_v0  ;;  %4676 = vmatpush1.bf16.msra.mxu0 %v7840_v21  ;;  %v7927_v21 = vld [vmem:[#allocation72_spill] sm:$0xff] }
 0x57d   :  { %4678 = vmatprep.subr.bf16.mxu0 %v7841_v49  ;;  %v7926_v49 = vld [vmem:[#allocation70_spill] sm:$0xff] }
 0x57f   :  { %4616 = vmatpush1.bf16.msra.mxu1 %v6082_v40 }
 0x580   :  { %4618 = vmatprep.subr.bf16.mxu1 %v6089_v55  ;;  %4680 = vmatpush1.bf16.msra.mxu0 %v7842_v59  ;;  %v7925_v59 = vld [vmem:[#allocation68_spill] sm:$0xff] }
 0x581   :  { %4682 = vmatprep.subr.bf16.mxu0 %v7843_v41  ;;  %v7924_v41 = vld [vmem:[#allocation66_spill] sm:$0xff] }
 0x583   :  { %4620 = vmatpush1.bf16.msra.mxu1 %v6096_v30 }
 0x584   :  { %4622 = vmatprep.subr.bf16.mxu1 %v6099_v12  ;;  %4684 = vmatpush1.bf16.msra.mxu0 %v7844_v25  ;;  %v7923_v25 = vld [vmem:[#allocation64_spill] sm:$0xff] }
 0x585   :  { %4686 = vmatprep.subr.bf16.mxu0 %v7845_v62  ;;  %v7922_v62 = vld [vmem:[#allocation62_spill] sm:$0xff] }
 0x587   :  { %4624 = vmatpush1.bf16.msra.mxu1 %v6104_v2 }
 0x588   :  { %4626 = vmatprep.subr.bf16.mxu1 %v6107_v48  ;;  %4688 = vmatpush1.bf16.msra.mxu0 %v7846_v15  ;;  %v7921_v15 = vld [vmem:[#allocation60_spill] sm:$0xff] }
 0x589   :  { %4690 = vmatprep.subr.bf16.mxu0 %v7847_v39  ;;  %v7920_v39 = vld [vmem:[#allocation58_spill] sm:$0xff] }
 0x58b   :  { %4628 = vmatpush1.bf16.msra.mxu1 %v6112_v10 }
 0x58c   :  { %4630 = vmatprep.subr.bf16.mxu1 %v6115_v27  ;;  %4692 = vmatpush1.bf16.msra.mxu0 %v7848_v34  ;;  %v7919_v34 = vld [vmem:[#allocation56_spill] sm:$0xff] }
 0x58d   :  { %4694 = vmatprep.subr.bf16.mxu0 %v7849_v60  ;;  %v7918_v60 = vld [vmem:[#allocation54_spill] sm:$0xff] }
 0x58f   :  { %4632 = vmatpush1.bf16.msra.mxu1 %v7690_v35 }
 0x590   :  { %4634 = vmatprep.subr.bf16.mxu1 %v7691_v8  ;;  %4696 = vmatpush1.bf16.msra.mxu0 %v7850_v32  ;;  %v7917_v32 = vld [vmem:[#allocation52_spill] sm:$0xff] }
 0x591   :  { %4698 = vmatprep.subr.bf16.mxu0 %v7851_v26  ;;  %v7916_v26 = vld [vmem:[#allocation50_spill] sm:$0xff] }
 0x593   :  { %4636 = vmatpush1.bf16.msra.mxu1 %v6128_v36 }
 0x594   :  { %4638 = vmatprep.subr.bf16.mxu1 %v7692_v43  ;;  %4700 = vmatpush1.bf16.msra.mxu0 %v7852_v14  ;;  %v7915_v14 = vld [vmem:[#allocation48_spill] sm:$0xff] }
 0x595   :  { %4702 = vmatprep.subr.bf16.mxu0 %v7853_v7  ;;  %v7914_v7 = vld [vmem:[#allocation46_spill] sm:$0xff] }
 0x597   :  { %4640 = vmatpush1.bf16.msra.mxu1 %v6145_v46 }
 0x598   :  { %4642 = vmatprep.subr.bf16.mxu1 %v7693_v33  ;;  %4704 = vmatpush1.bf16.msra.mxu0 %v7854_v58  ;;  %v7913_v58 = vld [vmem:[#allocation44_spill] sm:$0xff] }
 0x599   :  { %4706 = vmatprep.subr.bf16.mxu0 %v7855_v53  ;;  %v7912_v53 = vld [vmem:[#allocation42_spill] sm:$0xff] }
 0x59b   :  { %4644 = vmatpush1.bf16.msra.mxu1 %v6158_v20 }
 0x59c   :  { %4646 = vmatprep.subr.bf16.mxu1 %v7694_v63  ;;  %4708 = vmatpush1.bf16.msra.mxu0 %v7856_v42  ;;  %v7911_v42 = vld [vmem:[#allocation40_spill] sm:$0xff] }
 0x59d   :  { %4710 = vmatprep.subr.bf16.mxu0 %v7857_v37  ;;  %v7910_v37 = vld [vmem:[#allocation38_spill] sm:$0xff] }
 0x59f   :  { %4648 = vmatpush1.bf16.msra.mxu1 %v6171_v6 }
 0x5a0   :  { %4650 = vmatprep.subr.bf16.mxu1 %v6175_v23  ;;  %4712 = vmatpush1.bf16.msra.mxu0 %v7858_v45  ;;  %v7909_v45 = vld [vmem:[#allocation36_spill] sm:$0xff] }
 0x5a1   :  { %4714 = vmatprep.subr.bf16.mxu0 %v7859_v29  ;;  %v7907_v29 = vld [vmem:[#allocation32_spill] sm:$0xff] }
 0x5a3   :  { %4652 = vmatpush1.bf16.msra.mxu1 %v7756_v17 }
 0x5a4   :  { %4654 = vmatprep.subr.bf16.mxu1 %v7877_v44  ;;  %4716 = vmatpush1.bf16.msra.mxu0 %v7878_v61  ;;  %v7906_v61 = vld [vmem:[#allocation30_spill] sm:$0xff] }
 0x5a5   :  { %4718 = vmatprep.subr.bf16.mxu0 %v7879_v22  ;;  %v7903_v22 = vld [vmem:[#allocation24_spill] sm:$0xff] }
 0x5a7   :  { %4656 = vmatpush1.bf16.msra.mxu1 %v7880_v24 }
 0x5a8   :  { %4658 = vmatprep.subr.bf16.mxu1 %v7881_v31  ;;  %4720 = vmatpush1.bf16.msra.mxu0 %v7882_v16  ;;  %v7902_v16 = vld [vmem:[#allocation22_spill] sm:$0xff] }
 0x5a9   :  { %4722 = vmatprep.subr.bf16.mxu0 %v7883_v38  ;;  %v7899_v38 = vld [vmem:[#allocation79_spill] sm:$0xff] }
 0x5ab   :  { %4660 = vmatpush1.bf16.msra.mxu1 %v7884_v56 }
 0x5ac   :  { %4662 = vmatprep.subr.bf16.mxu1 %v7885_v28  ;;  %4724 = vmatpush1.bf16.msra.mxu0 %v7886_v57  ;;  %v7897_v57 = vld [vmem:[#allocation16_spill] sm:$0xff] }
 0x5ad   :  { %4726 = vmatprep.subr.bf16.mxu0 %v7887_v5  ;;  %v7898_v5 = vld [vmem:[#allocation77_spill] sm:$0xff] }
 0x5af   :  { %4664 = vmatpush1.bf16.msra.mxu1 %v7888_v52  ;;  %v7931_v52 = vld [vmem:[#allocation129_spill] sm:$0xff] }
 0x5b0   :  { %4666 = vmatprep.subr.bf16.mxu1 %v7889_v3  ;;  %4728 = vmatpush1.bf16.msra.mxu0 %v7890_v1  ;;  %v7900_v1 = vld [vmem:[#allocation18_spill] sm:$0xff] }
 0x5b1   :  { %4730 = vmatprep.subr.bf16.mxu0 %v7891_v11  ;;  %v7901_v11 = vld [vmem:[#allocation20_spill] sm:$0xff] }
 0x5b3   :  { %4668 = vmatpush1.bf16.msra.mxu1 %v7892_v54 }
 0x5b4   :  { %4670 = vmatprep.subr.bf16.mxu1 %v7893_v18  ;;  %4732 = vmatpush1.bf16.msra.mxu0 %v7894_v4  ;;  %v7904_v4 = vld [vmem:[#allocation26_spill] sm:$0xff] }
 0x5b5   :  { %4734 = vmatprep.subr.bf16.mxu0 %v7895_v50  ;;  %v7905_v50 = vld [vmem:[#allocation28_spill] sm:$0xff]  ;;  %v7930_v18 = vld [vmem:[#allocation78_spill] sm:$0xff] }
 0x5b7   :  { %4672 = vmatpush1.bf16.msra.mxu1 %v7896_v47  ;;  %v7929_v47 = vld [vmem:[#allocation76_spill] sm:$0xff] }
 0x5b8   :  { %4738 = vmatprep.subr.bf16.mxu1 %v7897_v57  ;;  %4736 = vmatpush1.bf16.msra.mxu0 %v7898_v5  ;;  %v7908_v5 = vld [vmem:[#allocation34_spill] sm:$0xff] }
 0x5b9   :  { %4802 = vmatprep.subr.bf16.mxu0 %v7899_v38  ;;  %v7928_v38 = vld [vmem:[#allocation74_spill] sm:$0xff] }
 0x5ba   :  { %2297 = vmatmul.mubr.f32.vlgmr.msra.gmra.mrb[42].mxu1 %v6775_v13 }
 0x5bb   :  { %4740 = vmatpush1.bf16.msra.mxu1 %v7900_v1 }
 0x5bc   :  { %4742 = vmatprep.subr.bf16.mxu1 %v7901_v11 }
 0x5bf   :  { %4744 = vmatpush1.bf16.msra.mxu1 %v7902_v16 }
 0x5c0   :  { %4746 = vmatprep.subr.bf16.mxu1 %v7903_v22 }
 0x5c3   :  { %4748 = vmatpush1.bf16.msra.mxu1 %v7904_v4 }
 0x5c4   :  { %4750 = vmatprep.subr.bf16.mxu1 %v7905_v50 }
 0x5c7   :  { %4752 = vmatpush1.bf16.msra.mxu1 %v7906_v61 }
 0x5c8   :  { %4754 = vmatprep.subr.bf16.mxu1 %v7907_v29 }
 0x5cb   :  { %4756 = vmatpush1.bf16.msra.mxu1 %v7908_v5 }
 0x5cc   :  { %4758 = vmatprep.subr.bf16.mxu1 %v7909_v45 }
 0x5cf   :  { %4760 = vmatpush1.bf16.msra.mxu1 %v7910_v37 }
 0x5d0   :  { %4762 = vmatprep.subr.bf16.mxu1 %v7911_v42 }
 0x5d3   :  { %4764 = vmatpush1.bf16.msra.mxu1 %v7912_v53 }
 0x5d4   :  { %4766 = vmatprep.subr.bf16.mxu1 %v7913_v58 }
 0x5d7   :  { %4768 = vmatpush1.bf16.msra.mxu1 %v7914_v7 }
 0x5d8   :  { %4770 = vmatprep.subr.bf16.mxu1 %v7915_v14 }
 0x5db   :  { %4772 = vmatpush1.bf16.msra.mxu1 %v7916_v26 }
 0x5dc   :  { %4774 = vmatprep.subr.bf16.mxu1 %v7917_v32 }
 0x5df   :  { %4776 = vmatpush1.bf16.msra.mxu1 %v7918_v60 }
 0x5e0   :  { %4778 = vmatprep.subr.bf16.mxu1 %v7919_v34 }
 0x5e3   :  { %4780 = vmatpush1.bf16.msra.mxu1 %v7920_v39 }
 0x5e4   :  { %4782 = vmatprep.subr.bf16.mxu1 %v7921_v15 }
 0x5e7   :  { %4784 = vmatpush1.bf16.msra.mxu1 %v7922_v62 }
 0x5e8   :  { %4786 = vmatprep.subr.bf16.mxu1 %v7923_v25  ;;  %v7932_v25 = vld [vmem:[#allocation118_spill] sm:$0xff] }
 0x5eb   :  { %4788 = vmatpush1.bf16.msra.mxu1 %v7924_v41 }
 0x5ec   :  { %4790 = vmatprep.subr.bf16.mxu1 %v7925_v59 }
 0x5ef   :  { %4792 = vmatpush1.bf16.msra.mxu1 %v7926_v49 }
 0x5f0   :  { %4794 = vmatprep.subr.bf16.mxu1 %v7927_v21 }
 0x5f3   :  { %4796 = vmatpush1.bf16.msra.mxu1 %v7928_v38 }
 0x5f4   :  { %4798 = vmatprep.subr.bf16.mxu1 %v7929_v47 }
 0x5f7   :  { %4800 = vmatpush1.bf16.msra.mxu1 %v7930_v18 }
 0x5f8   :  { %4930 = vmatprep.subr.bf16.mxu1 %v7897_v57  ;;  %v6883_v57 = vld [vmem:[%s7280_s8] ss:$0 sm:$0xff] }
 0x5f9   :  { %7933 = vst [vmem:[#allocation80_spill] sm:$0xff] %v6883_v57 }
 0x64d   :  { %v2156_v54 = vpop.f32.mrb[8].mxu0  ;;  %v2227_v3 = vpop.f32.mrb[40].mxu1 }
 0x64e   :  { %v5309_v28 = vadd.f32 %v2156_v54, %v7931_v52  ;;  %v2158_v56 = vpop.f32.mrb[9].mxu0  ;;  %v2229_v41 = vpop.f32.mrb[41].mxu1  ;;  %v2317_v54 = vadd.f32 %v6883_v57, %v2227_v3  ;;  %v7935_v3 = vld [vmem:[#allocation119_spill] sm:$0xff] }
 0x64f   :  { %v2325_v59 = vadd.f32 %v2229_v41, %v7932_v25  ;;  %v5310_v49 = vadd.f32 %v2158_v56, %v6382_v9  ;;  %v7934_v25 = vld [vmem:[#allocation105_spill] sm:$0xff] }
 0x650   :  { %v3490_v62 = vmul.f32 -1.442695, %v5309_v28 }
 0x651   :  { %v3491_v21 = vmul.f32 -1.442695, %v5310_v49  ;;  %v3492_v49 = vmul.f32 -1.442695, %v2325_v59 }
 0x652   :  { %5429 = vpow2.f32 %v3490_v62 }
 0x653   :  { %5431 = vpow2.f32 %v3491_v21 }
 0x65c   :  { %v5430_v38 = vpop.eup %5429 }
 0x65d   :  { %v2307_v47 = vadd.f32 1.0, %v5430_v38  ;;  %v5432_v18 = vpop.eup %5431 }
 0x65e   :  { %v2314_v31 = vadd.f32 1.0, %v5432_v18 }
 0x65f   :  { %5433 = vrcp.f32 %v2307_v47 }
 0x660   :  { %5435 = vrcp.f32 %v2314_v31  ;;  %v6892_v31 = vld [vmem:[%s7281_s9] ss:$0 sm:$0xff] }
 0x669   :  { %v5434_v52 = vpop.eup %5433 }
 0x66a   :  { %v2318_v41 = vmul.f32 %v5434_v52, %v2317_v54  ;;  %v5436_v21 = vpop.eup %5435 }
 0x66b   :  { %v2321_v62 = vsub.f32 1.0, %v5436_v21  ;;  %v2323_v18 = vmul.f32 %v5436_v21, %v6775_v13 }
 0x66c   :  { %v2319_v56 = vadd.f32 %v2318_v41, %v7934_v25 }
 0x66e   :  { %5437 = vtanh.f32 %v2319_v56  ;;  %v7936_v56 = vld [vmem:[#allocation114_spill] sm:$0xff] }
 0x66f   :  { %5439 = vpow2.f32 %v3492_v49 }
 0x678   :  { %v5438_v38 = vpop.eup %5437 }
 0x679   :  { %v2322_v28 = vmul.f32 %v5438_v38, %v2321_v62  ;;  %v5440_v9 = vpop.eup %5439 }
 0x67a   :  { %v2329_v24 = vadd.f32 1.0, %v5440_v9 }
 0x67b   :  { %v2324_v47 = vadd.f32 %v2323_v18, %v2322_v28  ;;  %v2360_v18 = vpop.permute.xlu0 %2359 }
 0x67c   :  { %5441 = vrcp.f32 %v2329_v24  ;;  %vm2361_vm1 = vcmp.eq.s32.totalorder %v2360_v18, 1  ;;  %v7952_v18 = vld [vmem:[#allocation74_spill] sm:$0xff] }
 0x686   :  { %v5442_v54 = vpop.eup %5441 }
 0x68d   :  { %v2298_v15 = vpop.f32.mrb[42].mxu1 }
 0x68e   :  { %v2332_v57 = vadd.f32 %v2298_v15, %v7935_v3  ;;  %v2300_v52 = vpop.f32.mrb[43].mxu1 }
 0x68f   :  { %v2339_v59 = vadd.f32 %v6892_v31, %v2300_v52  ;;  %v2352_v52 = vpop.permute.xlu1 %2351 }
 0x690   :  { %v3493_v41 = vmul.f32 -1.442695, %v2332_v57  ;;  %vm2353_vm2 = vcmp.eq.s32.totalorder %v2352_v52, 1  ;;  %v7954_v52 = vld [vmem:[#allocation96_spill] sm:$0xff] }
 0x691   :  { %v2340_v25 = vmul.f32 %v5442_v54, %v2339_v59  ;;  %v6903_v59 = vsel %vm2353_vm2, %v2324_v47, %v6775_v13  ;;  %v7938_v13 = vld [vmem:[#allocation88_spill] sm:$0xff]  ;;  %v7939_v47 = vld [vmem:[#allocation89_spill] sm:$0xff]  ;;  %v7940_v54 = vld [vmem:[#allocation62_spill] sm:$0xff] }
 0x692   :  { %5443 = vpow2.f32 %v3493_v41  ;;  %v7941_v41 = vld [vmem:[#allocation64_spill] sm:$0xff] }
 0x693   :  { %v2341_v49 = vadd.f32 %v2340_v25, %v7936_v56  ;;  %v7942_v25 = vld [vmem:[#allocation90_spill] sm:$0xff]  ;;  %v7943_v56 = vld [vmem:[#allocation91_spill] sm:$0xff] }
 0x69c   :  { %v5444_v21 = vpop.eup %5443 }
 0x69d   :  { %v2336_v9 = vadd.f32 1.0, %v5444_v21  ;;  %v7945_v21 = vld [vmem:[#allocation68_spill] sm:$0xff] }
 0x69f   :  { %5445 = vrcp.f32 %v2336_v9  ;;  %v7946_v9 = vld [vmem:[#allocation92_spill] sm:$0xff] }
 0x6a0   :  { %5447 = vtanh.f32 %v2341_v49  ;;  %v7944_v49 = vld [vmem:[#allocation66_spill] sm:$0xff] }
 0x6a9   :  { %v5446_v24 = vpop.eup %5445 }
 0x6aa   :  { %v2343_v15 = vsub.f32 1.0, %v5446_v24  ;;  %v5448_v62 = vpop.eup %5447  ;;  %v2345_v28 = vmul.f32 %v5446_v24, %v6770_v51  ;;  %v7947_v24 = vld [vmem:[#allocation93_spill] sm:$0xff] }
 0x6ac   :  { %v2344_v38 = vmul.f32 %v5448_v62, %v2343_v15  ;;  %v7948_v15 = vld [vmem:[#allocation70_spill] sm:$0xff]  ;;  %v7949_v62 = vld [vmem:[#allocation72_spill] sm:$0xff] }
 0x6ae   :  { %v2346_v3 = vadd.f32 %v2345_v28, %v2344_v38  ;;  %v7950_v38 = vld [vmem:[#allocation94_spill] sm:$0xff]  ;;  %v7951_v28 = vld [vmem:[#allocation95_spill] sm:$0xff] }
 0x6b0   :  { %v6898_v57 = vsel %vm2361_vm1, %v2346_v3, %v6770_v51  ;;  %v7937_v51 = vld [vmem:[#allocation60_spill] sm:$0xff] }
 0x6b1   :  { %2439 = vmatprep.mubr.f32.mxu0 %v6898_v57  ;;  %2510 = vmatprep.mubr.f32.mxu1 %v6898_v57  ;;  %v7953_v3 = vld [vmem:[#allocation76_spill] sm:$0xff] }
 0x6b2   :  { %2440 = vmatmul.mubr.f32.vlgmr.msra.gmra.mrb[10].mxu0 %v6903_v59  ;;  %2511 = vmatmul.mubr.f32.vlgmr.msra.gmra.mrb[44].mxu1 %v6903_v59 }
 0x6b3   :  { %4804 = vmatpush1.bf16.msra.mxu0 %v6067_v19  ;;  %2581 = vmatprep.mubr.f32.mxu0 %v6898_v57 }
 0x6b4   :  { %4806 = vmatprep.subr.bf16.mxu0 %v7689_v0  ;;  %4932 = vmatpush1.bf16.msra.mxu1 %v7900_v1  ;;  %v7985_v1 = vld [vmem:[#allocation71_spill] sm:$0xff] }
 0x6b5   :  { %4934 = vmatprep.subr.bf16.mxu1 %v7901_v11  ;;  %v7984_v11 = vld [vmem:[#allocation69_spill] sm:$0xff] }
 0x6b7   :  { %4808 = vmatpush1.bf16.msra.mxu0 %v6082_v40 }
 0x6b8   :  { %4810 = vmatprep.subr.bf16.mxu0 %v6089_v55  ;;  %4936 = vmatpush1.bf16.msra.mxu1 %v7902_v16  ;;  %v7983_v16 = vld [vmem:[#allocation67_spill] sm:$0xff] }
 0x6b9   :  { %4938 = vmatprep.subr.bf16.mxu1 %v7903_v22  ;;  %v7982_v22 = vld [vmem:[#allocation65_spill] sm:$0xff] }
 0x6bb   :  { %4812 = vmatpush1.bf16.msra.mxu0 %v6096_v30 }
 0x6bc   :  { %4814 = vmatprep.subr.bf16.mxu0 %v6099_v12  ;;  %4940 = vmatpush1.bf16.msra.mxu1 %v7904_v4  ;;  %v7981_v4 = vld [vmem:[#allocation63_spill] sm:$0xff] }
 0x6bd   :  { %4942 = vmatprep.subr.bf16.mxu1 %v7905_v50  ;;  %v7980_v50 = vld [vmem:[#allocation61_spill] sm:$0xff] }
 0x6bf   :  { %4816 = vmatpush1.bf16.msra.mxu0 %v6104_v2 }
 0x6c0   :  { %4818 = vmatprep.subr.bf16.mxu0 %v6107_v48  ;;  %4944 = vmatpush1.bf16.msra.mxu1 %v7906_v61  ;;  %v7979_v61 = vld [vmem:[#allocation59_spill] sm:$0xff] }
 0x6c1   :  { %4946 = vmatprep.subr.bf16.mxu1 %v7907_v29  ;;  %v7978_v29 = vld [vmem:[#allocation57_spill] sm:$0xff] }
 0x6c3   :  { %4820 = vmatpush1.bf16.msra.mxu0 %v6112_v10 }
 0x6c4   :  { %4822 = vmatprep.subr.bf16.mxu0 %v6115_v27  ;;  %4948 = vmatpush1.bf16.msra.mxu1 %v7908_v5  ;;  %v7977_v5 = vld [vmem:[#allocation55_spill] sm:$0xff] }
 0x6c5   :  { %4950 = vmatprep.subr.bf16.mxu1 %v7909_v45  ;;  %v7976_v45 = vld [vmem:[#allocation53_spill] sm:$0xff] }
 0x6c7   :  { %4824 = vmatpush1.bf16.msra.mxu0 %v7690_v35 }
 0x6c8   :  { %4826 = vmatprep.subr.bf16.mxu0 %v7691_v8  ;;  %4952 = vmatpush1.bf16.msra.mxu1 %v7910_v37  ;;  %v7975_v37 = vld [vmem:[#allocation51_spill] sm:$0xff] }
 0x6c9   :  { %4954 = vmatprep.subr.bf16.mxu1 %v7911_v42  ;;  %v7974_v42 = vld [vmem:[#allocation49_spill] sm:$0xff] }
 0x6cb   :  { %4828 = vmatpush1.bf16.msra.mxu0 %v6128_v36 }
 0x6cc   :  { %4830 = vmatprep.subr.bf16.mxu0 %v7692_v43  ;;  %4956 = vmatpush1.bf16.msra.mxu1 %v7912_v53  ;;  %v7973_v53 = vld [vmem:[#allocation47_spill] sm:$0xff] }
 0x6cd   :  { %4958 = vmatprep.subr.bf16.mxu1 %v7913_v58  ;;  %v7972_v58 = vld [vmem:[#allocation45_spill] sm:$0xff] }
 0x6cf   :  { %4832 = vmatpush1.bf16.msra.mxu0 %v6145_v46 }
 0x6d0   :  { %4834 = vmatprep.subr.bf16.mxu0 %v7693_v33  ;;  %4960 = vmatpush1.bf16.msra.mxu1 %v7914_v7  ;;  %v7971_v7 = vld [vmem:[#allocation43_spill] sm:$0xff] }
 0x6d1   :  { %4962 = vmatprep.subr.bf16.mxu1 %v7915_v14  ;;  %v7970_v14 = vld [vmem:[#allocation41_spill] sm:$0xff] }
 0x6d3   :  { %4836 = vmatpush1.bf16.msra.mxu0 %v6158_v20 }
 0x6d4   :  { %4838 = vmatprep.subr.bf16.mxu0 %v7694_v63  ;;  %4964 = vmatpush1.bf16.msra.mxu1 %v7916_v26  ;;  %v7969_v26 = vld [vmem:[#allocation39_spill] sm:$0xff] }
 0x6d5   :  { %4966 = vmatprep.subr.bf16.mxu1 %v7917_v32  ;;  %v7968_v32 = vld [vmem:[#allocation37_spill] sm:$0xff] }
 0x6d7   :  { %4840 = vmatpush1.bf16.msra.mxu0 %v6171_v6 }
 0x6d8   :  { %4842 = vmatprep.subr.bf16.mxu0 %v6175_v23  ;;  %4968 = vmatpush1.bf16.msra.mxu1 %v7918_v60  ;;  %v7967_v60 = vld [vmem:[#allocation35_spill] sm:$0xff] }
 0x6d9   :  { %4970 = vmatprep.subr.bf16.mxu1 %v7919_v34  ;;  %v7965_v34 = vld [vmem:[#allocation31_spill] sm:$0xff] }
 0x6db   :  { %4844 = vmatpush1.bf16.msra.mxu0 %v7756_v17 }
 0x6dc   :  { %4846 = vmatprep.subr.bf16.mxu0 %v7877_v44  ;;  %4972 = vmatpush1.bf16.msra.mxu1 %v7920_v39  ;;  %v7964_v39 = vld [vmem:[#allocation29_spill] sm:$0xff] }
 0x6dd   :  { %4974 = vmatprep.subr.bf16.mxu1 %v7937_v51  ;;  %v7961_v51 = vld [vmem:[#allocation23_spill] sm:$0xff] }
 0x6df   :  { %4848 = vmatpush1.bf16.msra.mxu0 %v7938_v13 }
 0x6e0   :  { %4850 = vmatprep.subr.bf16.mxu0 %v7939_v47  ;;  %4976 = vmatpush1.bf16.msra.mxu1 %v7940_v54  ;;  %v7960_v54 = vld [vmem:[#allocation21_spill] sm:$0xff] }
 0x6e1   :  { %4978 = vmatprep.subr.bf16.mxu1 %v7941_v41  ;;  %v7957_v41 = vld [vmem:[#allocation79_spill] sm:$0xff] }
 0x6e3   :  { %4852 = vmatpush1.bf16.msra.mxu0 %v7942_v25 }
 0x6e4   :  { %4854 = vmatprep.subr.bf16.mxu0 %v7943_v56  ;;  %4980 = vmatpush1.bf16.msra.mxu1 %v7944_v49  ;;  %v7955_v49 = vld [vmem:[#allocation15_spill] sm:$0xff] }
 0x6e5   :  { %4982 = vmatprep.subr.bf16.mxu1 %v7945_v21  ;;  %v7956_v21 = vld [vmem:[#allocation78_spill] sm:$0xff] }
 0x6e7   :  { %4856 = vmatpush1.bf16.msra.mxu0 %v7946_v9  ;;  %v7989_v9 = vld [vmem:[#allocation129_spill] sm:$0xff] }
 0x6e8   :  { %4858 = vmatprep.subr.bf16.mxu0 %v7947_v24  ;;  %4984 = vmatpush1.bf16.msra.mxu1 %v7948_v15  ;;  %v7958_v15 = vld [vmem:[#allocation17_spill] sm:$0xff] }
 0x6e9   :  { %4986 = vmatprep.subr.bf16.mxu1 %v7949_v62  ;;  %v7959_v62 = vld [vmem:[#allocation19_spill] sm:$0xff] }
 0x6eb   :  { %4860 = vmatpush1.bf16.msra.mxu0 %v7950_v38 }
 0x6ec   :  { %4862 = vmatprep.subr.bf16.mxu0 %v7951_v28  ;;  %4988 = vmatpush1.bf16.msra.mxu1 %v7952_v18  ;;  %v7962_v18 = vld [vmem:[#allocation25_spill] sm:$0xff] }
 0x6ed   :  { %4990 = vmatprep.subr.bf16.mxu1 %v7953_v3  ;;  %v7963_v3 = vld [vmem:[#allocation27_spill] sm:$0xff]  ;;  %v7988_v28 = vld [vmem:[#allocation77_spill] sm:$0xff] }
 0x6ef   :  { %4864 = vmatpush1.bf16.msra.mxu0 %v7954_v52  ;;  %v7987_v52 = vld [vmem:[#allocation75_spill] sm:$0xff] }
 0x6f0   :  { %4866 = vmatprep.subr.bf16.mxu0 %v7955_v49  ;;  %4992 = vmatpush1.bf16.msra.mxu1 %v7956_v21  ;;  %v7966_v21 = vld [vmem:[#allocation33_spill] sm:$0xff] }
 0x6f1   :  { %4994 = vmatprep.subr.bf16.mxu1 %v7957_v41  ;;  %v7986_v41 = vld [vmem:[#allocation73_spill] sm:$0xff] }
 0x6f2   :  { %2582 = vmatmul.mubr.f32.vlgmr.msra.gmra.mrb[24].mxu0 %v6903_v59 }
 0x6f3   :  { %4868 = vmatpush1.bf16.msra.mxu0 %v7958_v15 }
 0x6f4   :  { %4870 = vmatprep.subr.bf16.mxu0 %v7959_v62 }
 0x6f7   :  { %4872 = vmatpush1.bf16.msra.mxu0 %v7960_v54 }
 0x6f8   :  { %4874 = vmatprep.subr.bf16.mxu0 %v7961_v51 }
 0x6fb   :  { %4876 = vmatpush1.bf16.msra.mxu0 %v7962_v18 }
 0x6fc   :  { %4878 = vmatprep.subr.bf16.mxu0 %v7963_v3 }
 0x6ff   :  { %4880 = vmatpush1.bf16.msra.mxu0 %v7964_v39 }
 0x700   :  { %4882 = vmatprep.subr.bf16.mxu0 %v7965_v34 }
 0x703   :  { %4884 = vmatpush1.bf16.msra.mxu0 %v7966_v21 }
 0x704   :  { %4886 = vmatprep.subr.bf16.mxu0 %v7967_v60 }
 0x707   :  { %4888 = vmatpush1.bf16.msra.mxu0 %v7968_v32 }
 0x708   :  { %4890 = vmatprep.subr.bf16.mxu0 %v7969_v26 }
 0x70b   :  { %4892 = vmatpush1.bf16.msra.mxu0 %v7970_v14 }
 0x70c   :  { %4894 = vmatprep.subr.bf16.mxu0 %v7971_v7 }
 0x70f   :  { %4896 = vmatpush1.bf16.msra.mxu0 %v7972_v58 }
 0x710   :  { %4898 = vmatprep.subr.bf16.mxu0 %v7973_v53 }
 0x713   :  { %4900 = vmatpush1.bf16.msra.mxu0 %v7974_v42 }
 0x714   :  { %4902 = vmatprep.subr.bf16.mxu0 %v7975_v37 }
 0x717   :  { %4904 = vmatpush1.bf16.msra.mxu0 %v7976_v45 }
 0x718   :  { %4906 = vmatprep.subr.bf16.mxu0 %v7977_v5 }
 0x71b   :  { %4908 = vmatpush1.bf16.msra.mxu0 %v7978_v29 }
 0x71c   :  { %4910 = vmatprep.subr.bf16.mxu0 %v7979_v61 }
 0x71f   :  { %4912 = vmatpush1.bf16.msra.mxu0 %v7980_v50 }
 0x720   :  { %4914 = vmatprep.subr.bf16.mxu0 %v7981_v4  ;;  %v7990_v4 = vld [vmem:[#allocation115_spill] sm:$0xff] }
 0x723   :  { %4916 = vmatpush1.bf16.msra.mxu0 %v7982_v22 }
 0x724   :  { %4918 = vmatprep.subr.bf16.mxu0 %v7983_v16 }
 0x727   :  { %4920 = vmatpush1.bf16.msra.mxu0 %v7984_v11  ;;  %v7991_v11 = vld [vmem:[#allocation130_spill] sm:$0xff] }
 0x728   :  { %4922 = vmatprep.subr.bf16.mxu0 %v7985_v1 }
 0x72b   :  { %4924 = vmatpush1.bf16.msra.mxu0 %v7986_v41 }
 0x72c   :  { %4926 = vmatprep.subr.bf16.mxu0 %v7987_v52 }
 0x72f   :  { %4928 = vmatpush1.bf16.msra.mxu0 %v7988_v28 }
 0x730   :  { %5058 = vmatprep.subr.bf16.mxu0 %v7955_v49  ;;  %v7992_v49 = vld [vmem:[#allocation80_spill] sm:$0xff] }
 0x785   :  { %v2441_v38 = vpop.f32.mrb[10].mxu0  ;;  %v2512_v24 = vpop.f32.mrb[44].mxu1 }
 0x786   :  { %v5311_v56 = vadd.f32 %v2441_v38, %v7989_v9  ;;  %v2443_v25 = vpop.f32.mrb[11].mxu0  ;;  %v2514_v22 = vpop.f32.mrb[45].mxu1  ;;  %v2602_v61 = vadd.f32 %v7992_v49, %v2512_v24  ;;  %v7993_v38 = vld [vmem:[#allocation104_spill] sm:$0xff]  ;;  %v7994_v24 = vld [vmem:[#allocation117_spill] sm:$0xff] }
 0x787   :  { %v2610_v16 = vadd.f32 %v2514_v22, %v7990_v4  ;;  %v5312_v47 = vadd.f32 %v2443_v25, %v7991_v11 }
 0x788   :  { %v3494_v50 = vmul.f32 -1.442695, %v5311_v56 }
 0x789   :  { %v3495_v1 = vmul.f32 -1.442695, %v5312_v47  ;;  %v3496_v22 = vmul.f32 -1.442695, %v2610_v16 }
 0x78a   :  { %5449 = vpow2.f32 %v3494_v50 }
 0x78b   :  { %5451 = vpow2.f32 %v3495_v1 }
 0x794   :  { %v5450_v41 = vpop.eup %5449 }
 0x795   :  { %v2592_v52 = vadd.f32 1.0, %v5450_v41  ;;  %v5452_v28 = vpop.eup %5451 }
 0x796   :  { %v2599_v13 = vadd.f32 1.0, %v5452_v28 }
 0x797   :  { %5453 = vrcp.f32 %v2592_v52 }
 0x798   :  { %5455 = vrcp.f32 %v2599_v13 }
 0x7a1   :  { %v5454_v29 = vpop.eup %5453 }
 0x7a2   :  { %v2603_v44 = vmul.f32 %v5454_v29, %v2602_v61  ;;  %v5456_v4 = vpop.eup %5455 }
 0x7a3   :  { %v2606_v25 = vsub.f32 1.0, %v5456_v4  ;;  %v2608_v1 = vmul.f32 %v5456_v4, %v6903_v59 }
 0x7a4   :  { %v2604_v9 = vadd.f32 %v2603_v44, %v7993_v38 }
 0x7a6   :  { %5457 = vtanh.f32 %v2604_v9  ;;  %v7995_v9 = vld [vmem:[#allocation116_spill] sm:$0xff] }
 0x7a7   :  { %5459 = vpow2.f32 %v3496_v22 }
 0x7b0   :  { %v5458_v50 = vpop.eup %5457 }
 0x7b1   :  { %v2607_v47 = vmul.f32 %v5458_v50, %v2606_v25  ;;  %v5460_v56 = vpop.eup %5459 }
 0x7b2   :  { %v2614_v52 = vadd.f32 1.0, %v5460_v56 }
 0x7b3   :  { %v2609_v41 = vadd.f32 %v2608_v1, %v2607_v47 }
 0x7b4   :  { %5461 = vrcp.f32 %v2614_v52  ;;  %v2645_v52 = vpop.permute.xlu0 %2644 }
 0x7b5   :  { %vm2646_vm3 = vcmp.eq.s32.totalorder %v2645_v52, 1  ;;  %v8032_v52 = vld [vmem:[#allocation44_spill] sm:$0xff] }
 0x7be   :  { %v5462_v44 = vpop.eup %5461 }
 0x7c5   :  { %v2583_v28 = vpop.f32.mrb[24].mxu0 }
 0x7c6   :  { %v2617_v49 = vadd.f32 %v2583_v28, %v7994_v24  ;;  %v2585_v29 = vpop.f32.mrb[25].mxu0  ;;  %v2637_v24 = vpop.permute.xlu1 %2636 }
 0x7c7   :  { %v2624_v61 = vadd.f32 %v6892_v31, %v2585_v29  ;;  %vm2638_vm4 = vcmp.eq.s32.totalorder %v2637_v24, 1  ;;  %v8034_v24 = vld [vmem:[#allocation48_spill] sm:$0xff] }
 0x7c8   :  { %v3497_v13 = vmul.f32 -1.442695, %v2617_v49  ;;  %v7021_v29 = vsel %vm2638_vm4, %v2609_v41, %v6903_v59  ;;  %v8010_v59 = vld [vmem:[#allocation71_spill] sm:$0xff] }
 0x7c9   :  { %v2625_v16 = vmul.f32 %v5462_v44, %v2624_v61  ;;  %v8018_v41 = vld [vmem:[#allocation79_spill] sm:$0xff]  ;;  %v8019_v61 = vld [vmem:[#allocation18_spill] sm:$0xff]  ;;  %v8020_v44 = vld [vmem:[#allocation20_spill] sm:$0xff] }
 0x7ca   :  { %5463 = vpow2.f32 %v3497_v13  ;;  %v8021_v13 = vld [vmem:[#allocation22_spill] sm:$0xff] }
 0x7cb   :  { %v2626_v38 = vadd.f32 %v2625_v16, %v7995_v9  ;;  %v8022_v16 = vld [vmem:[#allocation24_spill] sm:$0xff]  ;;  %v8023_v9 = vld [vmem:[#allocation26_spill] sm:$0xff] }
 0x7d4   :  { %v5464_v22 = vpop.eup %5463 }
 0x7d5   :  { %v2621_v25 = vadd.f32 1.0, %v5464_v22  ;;  %v8025_v22 = vld [vmem:[#allocation30_spill] sm:$0xff] }
 0x7d7   :  { %5465 = vrcp.f32 %v2621_v25  ;;  %v8026_v25 = vld [vmem:[#allocation32_spill] sm:$0xff] }
 0x7d8   :  { %5467 = vtanh.f32 %v2626_v38  ;;  %v8024_v38 = vld [vmem:[#allocation28_spill] sm:$0xff] }
 0x7e1   :  { %v5466_v4 = vpop.eup %5465 }
 0x7e2   :  { %v2628_v50 = vsub.f32 1.0, %v5466_v4  ;;  %v5468_v47 = vpop.eup %5467  ;;  %v2630_v56 = vmul.f32 %v5466_v4, %v6898_v57  ;;  %v8027_v4 = vld [vmem:[#allocation34_spill] sm:$0xff] }
 0x7e4   :  { %v2629_v1 = vmul.f32 %v5468_v47, %v2628_v50  ;;  %v8028_v50 = vld [vmem:[#allocation36_spill] sm:$0xff]  ;;  %v8029_v47 = vld [vmem:[#allocation38_spill] sm:$0xff] }
 0x7e6   :  { %v2631_v28 = vadd.f32 %v2630_v56, %v2629_v1  ;;  %v8030_v1 = vld [vmem:[#allocation40_spill] sm:$0xff]  ;;  %v8031_v56 = vld [vmem:[#allocation42_spill] sm:$0xff] }
 0x7e8   :  { %v7016_v49 = vsel %vm2646_vm3, %v2631_v28, %v6898_v57  ;;  %v8009_v57 = vld [vmem:[#allocation69_spill] sm:$0xff]  ;;  %v8033_v28 = vld [vmem:[#allocation46_spill] sm:$0xff] }
 0x7e9   :  { %2724 = vmatprep.mubr.f32.mxu0 %v7016_v49  ;;  %2795 = vmatprep.mubr.f32.mxu1 %v7016_v49 }
 0x7ea   :  { %2725 = vmatmul.mubr.f32.vlgmr.msra.gmra.mrb[26].mxu0 %v7021_v29  ;;  %2796 = vmatmul.mubr.f32.vlgmr.msra.gmra.mrb[46].mxu1 %v7021_v29 }
 0x7eb   :  { %4996 = vmatpush1.bf16.msra.mxu1 %v6067_v19  ;;  %2866 = vmatprep.mubr.f32.mxu1 %v7016_v49 }
 0x7ec   :  { %4998 = vmatprep.subr.bf16.mxu1 %v7689_v0  ;;  %5060 = vmatpush1.bf16.msra.mxu0 %v7958_v15  ;;  %v8014_v15 = vld [vmem:[#allocation75_spill] sm:$0xff] }
 0x7ed   :  { %5062 = vmatprep.subr.bf16.mxu0 %v7959_v62  ;;  %v8015_v62 = vld [vmem:[#allocation96_spill] sm:$0xff] }
 0x7ef   :  { %5000 = vmatpush1.bf16.msra.mxu1 %v6082_v40 }
 0x7f0   :  { %5002 = vmatprep.subr.bf16.mxu1 %v6089_v55  ;;  %5064 = vmatpush1.bf16.msra.mxu0 %v7960_v54  ;;  %v8012_v54 = vld [vmem:[#allocation95_spill] sm:$0xff] }
 0x7f1   :  { %5066 = vmatprep.subr.bf16.mxu0 %v7961_v51  ;;  %v8011_v51 = vld [vmem:[#allocation94_spill] sm:$0xff] }
 0x7f3   :  { %5004 = vmatpush1.bf16.msra.mxu1 %v6096_v30 }
 0x7f4   :  { %5006 = vmatprep.subr.bf16.mxu1 %v6099_v12  ;;  %5068 = vmatpush1.bf16.msra.mxu0 %v7962_v18  ;;  %v8016_v18 = vld [vmem:[#allocation16_spill] sm:$0xff] }
 0x7f5   :  { %5070 = vmatprep.subr.bf16.mxu0 %v7963_v3  ;;  %v8017_v3 = vld [vmem:[#allocation77_spill] sm:$0xff] }
 0x7f7   :  { %5008 = vmatpush1.bf16.msra.mxu1 %v6104_v2 }
 0x7f8   :  { %5010 = vmatprep.subr.bf16.mxu1 %v6107_v48  ;;  %5072 = vmatpush1.bf16.msra.mxu0 %v7964_v39  ;;  %v8005_v39 = vld [vmem:[#allocation65_spill] sm:$0xff] }
 0x7f9   :  { %5074 = vmatprep.subr.bf16.mxu0 %v7965_v34  ;;  %v8007_v34 = vld [vmem:[#allocation92_spill] sm:$0xff] }
 0x7fb   :  { %5012 = vmatpush1.bf16.msra.mxu1 %v6112_v10 }
 0x7fc   :  { %5014 = vmatprep.subr.bf16.mxu1 %v6115_v27  ;;  %5076 = vmatpush1.bf16.msra.mxu0 %v7966_v21  ;;  %v8013_v21 = vld [vmem:[#allocation73_spill] sm:$0xff] }
 0x7fd   :  { %5078 = vmatprep.subr.bf16.mxu0 %v7967_v60  ;;  %v8004_v60 = vld [vmem:[#allocation91_spill] sm:$0xff] }
 0x7ff   :  { %5016 = vmatpush1.bf16.msra.mxu1 %v7690_v35 }
 0x800   :  { %5018 = vmatprep.subr.bf16.mxu1 %v7691_v8  ;;  %5080 = vmatpush1.bf16.msra.mxu0 %v7968_v32  ;;  %v8003_v32 = vld [vmem:[#allocation90_spill] sm:$0xff] }
 0x801   :  { %5082 = vmatprep.subr.bf16.mxu0 %v7969_v26  ;;  %v8002_v26 = vld [vmem:[#allocation63_spill] sm:$0xff] }
 0x803   :  { %5020 = vmatpush1.bf16.msra.mxu1 %v6128_v36 }
 0x804   :  { %5022 = vmatprep.subr.bf16.mxu1 %v7692_v43  ;;  %5084 = vmatpush1.bf16.msra.mxu0 %v7970_v14  ;;  %v7999_v14 = vld [vmem:[#allocation88_spill] sm:$0xff] }
 0x805   :  { %5086 = vmatprep.subr.bf16.mxu0 %v7971_v7  ;;  %v7998_v7 = vld [vmem:[#allocation59_spill] sm:$0xff] }
 0x807   :  { %5024 = vmatpush1.bf16.msra.mxu1 %v6145_v46 }
 0x808   :  { %5026 = vmatprep.subr.bf16.mxu1 %v7693_v33  ;;  %5088 = vmatpush1.bf16.msra.mxu0 %v7972_v58  ;;  %v7996_v58 = vld [vmem:[#allocation87_spill] sm:$0xff] }
 0x809   :  { %5090 = vmatprep.subr.bf16.mxu0 %v7973_v53  ;;  %v7997_v53 = vld [vmem:[#allocation57_spill] sm:$0xff] }
 0x80b   :  { %5028 = vmatpush1.bf16.msra.mxu1 %v6158_v20 }
 0x80c   :  { %5030 = vmatprep.subr.bf16.mxu1 %v7694_v63  ;;  %5092 = vmatpush1.bf16.msra.mxu0 %v7974_v42  ;;  %v8000_v42 = vld [vmem:[#allocation89_spill] sm:$0xff] }
 0x80d   :  { %5094 = vmatprep.subr.bf16.mxu0 %v7975_v37  ;;  %v8001_v37 = vld [vmem:[#allocation61_spill] sm:$0xff] }
 0x80f   :  { %5032 = vmatpush1.bf16.msra.mxu1 %v6171_v6 }
 0x810   :  { %5034 = vmatprep.subr.bf16.mxu1 %v6175_v23  ;;  %5096 = vmatpush1.bf16.msra.mxu0 %v7976_v45  ;;  %v8006_v45 = vld [vmem:[#allocation67_spill] sm:$0xff] }
 0x811   :  { %5098 = vmatprep.subr.bf16.mxu0 %v7977_v5  ;;  %v8008_v5 = vld [vmem:[#allocation93_spill] sm:$0xff] }
 0x813   :  { %5036 = vmatpush1.bf16.msra.mxu1 %v7756_v17 }
 0x814   :  { %5038 = vmatprep.subr.bf16.mxu1 %v7996_v58  ;;  %5100 = vmatpush1.bf16.msra.mxu0 %v7997_v53  ;;  %v8035_v53 = vld [vmem:[#allocation50_spill] sm:$0xff] }
 0x815   :  { %5102 = vmatprep.subr.bf16.mxu0 %v7998_v7  ;;  %v8036_v7 = vld [vmem:[#allocation52_spill] sm:$0xff] }
 0x817   :  { %5040 = vmatpush1.bf16.msra.mxu1 %v7999_v14 }
 0x818   :  { %5042 = vmatprep.subr.bf16.mxu1 %v8000_v42  ;;  %5104 = vmatpush1.bf16.msra.mxu0 %v8001_v37  ;;  %v8037_v37 = vld [vmem:[#allocation54_spill] sm:$0xff] }
 0x819   :  { %5106 = vmatprep.subr.bf16.mxu0 %v8002_v26  ;;  %v8038_v26 = vld [vmem:[#allocation56_spill] sm:$0xff] }
 0x81b   :  { %5044 = vmatpush1.bf16.msra.mxu1 %v8003_v32 }
 0x81c   :  { %5046 = vmatprep.subr.bf16.mxu1 %v8004_v60  ;;  %5108 = vmatpush1.bf16.msra.mxu0 %v8005_v39  ;;  %v8039_v39 = vld [vmem:[#allocation58_spill] sm:$0xff] }
 0x81d   :  { %5110 = vmatprep.subr.bf16.mxu0 %v8006_v45  ;;  %v8040_v45 = vld [vmem:[#allocation60_spill] sm:$0xff] }
 0x81f   :  { %5048 = vmatpush1.bf16.msra.mxu1 %v8007_v34 }
 0x820   :  { %5050 = vmatprep.subr.bf16.mxu1 %v8008_v5  ;;  %5112 = vmatpush1.bf16.msra.mxu0 %v8009_v57  ;;  %v8041_v57 = vld [vmem:[#allocation62_spill] sm:$0xff] }
 0x821   :  { %5114 = vmatprep.subr.bf16.mxu0 %v8010_v59  ;;  %v8042_v59 = vld [vmem:[#allocation64_spill] sm:$0xff] }
 0x823   :  { %5052 = vmatpush1.bf16.msra.mxu1 %v8011_v51 }
 0x824   :  { %5054 = vmatprep.subr.bf16.mxu1 %v8012_v54  ;;  %5116 = vmatpush1.bf16.msra.mxu0 %v8013_v21  ;;  %v8043_v21 = vld [vmem:[#allocation66_spill] sm:$0xff] }
 0x825   :  { %5118 = vmatprep.subr.bf16.mxu0 %v8014_v15  ;;  %v8044_v15 = vld [vmem:[#allocation68_spill] sm:$0xff] }
 0x827   :  { %5056 = vmatpush1.bf16.msra.mxu1 %v8015_v62 }
 0x828   :  { %5122 = vmatprep.subr.bf16.mxu1 %v8016_v18  ;;  %5120 = vmatpush1.bf16.msra.mxu0 %v8017_v3  ;;  %v8045_v18 = vld [vmem:[#allocation70_spill] sm:$0xff]  ;;  %v8046_v3 = vld [vmem:[#allocation72_spill] sm:$0xff] }
 0x829   :  { %5186 = vmatprep.subr.bf16.mxu0 %v8018_v41  ;;  %v8047_v41 = vld [vmem:[#allocation74_spill] sm:$0xff] }
 0x82a   :  { %2867 = vmatmul.mubr.f32.vlgmr.msra.gmra.mrb[48].mxu1 %v7021_v29 }
 0x82b   :  { %5124 = vmatpush1.bf16.msra.mxu1 %v8019_v61  ;;  %v8048_v61 = vld [vmem:[#allocation76_spill] sm:$0xff] }
 0x82c   :  { %5126 = vmatprep.subr.bf16.mxu1 %v8020_v44  ;;  %v8049_v44 = vld [vmem:[#allocation78_spill] sm:$0xff] }
 0x82f   :  { %5128 = vmatpush1.bf16.msra.mxu1 %v8021_v13  ;;  %v8050_v13 = vld [vmem:[#allocation129_spill] sm:$0xff] }
 0x830   :  { %5130 = vmatprep.subr.bf16.mxu1 %v8022_v16  ;;  %v8051_v16 = vld [vmem:[#allocation97_spill] sm:$0xff] }
 0x833   :  { %5132 = vmatpush1.bf16.msra.mxu1 %v8023_v9  ;;  %v279_v9 = vadd.f32 %v8051_v16, %v8050_v13 }
 0x834   :  { %5134 = vmatprep.subr.bf16.mxu1 %v8024_v38  ;;  %v8052_v38 = vld [vmem:[#allocation98_spill] sm:$0xff] }
 0x837   :  { %5136 = vmatpush1.bf16.msra.mxu1 %v8025_v22  ;;  %v281_v22 = vadd.f32 %v8052_v38, %v7991_v11 }
 0x838   :  { %5138 = vmatprep.subr.bf16.mxu1 %v8026_v25 }
 0x83b   :  { %5140 = vmatpush1.bf16.msra.mxu1 %v8027_v4 }
 0x83c   :  { %5142 = vmatprep.subr.bf16.mxu1 %v8028_v50 }
 0x83f   :  { %5144 = vmatpush1.bf16.msra.mxu1 %v8029_v47 }
 0x840   :  { %5146 = vmatprep.subr.bf16.mxu1 %v8030_v1 }
 0x843   :  { %5148 = vmatpush1.bf16.msra.mxu1 %v8031_v56 }
 0x844   :  { %5150 = vmatprep.subr.bf16.mxu1 %v8032_v52  ;;  %v8053_v52 = vld [vmem:[#allocation112_spill] sm:$0xff] }
 0x847   :  { %5152 = vmatpush1.bf16.msra.mxu1 %v8033_v28 }
 0x848   :  { %5154 = vmatprep.subr.bf16.mxu1 %v8034_v24 }
 0x84b   :  { %5156 = vmatpush1.bf16.msra.mxu1 %v8035_v53 }
 0x84c   :  { %5158 = vmatprep.subr.bf16.mxu1 %v8036_v7 }
 0x84f   :  { %5160 = vmatpush1.bf16.msra.mxu1 %v8037_v37 }
 0x850   :  { %5162 = vmatprep.subr.bf16.mxu1 %v8038_v26 }
 0x853   :  { %5164 = vmatpush1.bf16.msra.mxu1 %v8039_v39 }
 0x854   :  { %5166 = vmatprep.subr.bf16.mxu1 %v8040_v45  ;;  %v8054_v45 = vld [vmem:[#allocation80_spill] sm:$0xff] }
 0x857   :  { %5168 = vmatpush1.bf16.msra.mxu1 %v8041_v57 }
 0x858   :  { %5170 = vmatprep.subr.bf16.mxu1 %v8042_v59 }
 0x85b   :  { %5172 = vmatpush1.bf16.msra.mxu1 %v8043_v21 }
 0x85c   :  { %5174 = vmatprep.subr.bf16.mxu1 %v8044_v15  ;;  %v8055_v15 = vld [vmem:[#allocation107_spill] sm:$0xff] }
 0x85f   :  { %5176 = vmatpush1.bf16.msra.mxu1 %v8045_v18 }
 0x860   :  { %5178 = vmatprep.subr.bf16.mxu1 %v8046_v3 }
 0x863   :  { %5180 = vmatpush1.bf16.msra.mxu1 %v8047_v41 }
 0x864   :  { %5182 = vmatprep.subr.bf16.mxu1 %v8048_v61 }
 0x867   :  { %5184 = vmatpush1.bf16.msra.mxu1 %v8049_v44 }
 0x8bd   :  { %v2726_v25 = vpop.f32.mrb[26].mxu0  ;;  %v2797_v4 = vpop.f32.mrb[46].mxu1 }
 0x8be   :  { %v2873_v50 = vadd.f32 %v2726_v25, %v279_v9  ;;  %v2728_v47 = vpop.f32.mrb[27].mxu0  ;;  %v2799_v1 = vpop.f32.mrb[47].mxu1  ;;  %v2887_v57 = vadd.f32 %v8054_v45, %v2797_v4  ;;  %v8056_v4 = vld [vmem:[#allocation113_spill] sm:$0xff] }
 0x8bf   :  { %v2880_v56 = vadd.f32 %v2728_v47, %v281_v22  ;;  %v2895_v28 = vadd.f32 %v2799_v1, %v8053_v52 }
 0x8c0   :  { %v3498_v24 = vmul.f32 -1.442695, %v2873_v50 }
 0x8c1   :  { %v3499_v53 = vmul.f32 -1.442695, %v2880_v56  ;;  %v3500_v3 = vmul.f32 -1.442695, %v2895_v28 }
 0x8c2   :  { %5469 = vpow2.f32 %v3498_v24 }
 0x8c3   :  { %5471 = vpow2.f32 %v3499_v53  ;;  %v8057_v53 = vld [vmem:[#allocation109_spill] sm:$0xff] }
 0x8cc   :  { %v5470_v7 = vpop.eup %5469 }
 0x8cd   :  { %v2877_v37 = vadd.f32 1.0, %v5470_v7  ;;  %v5472_v26 = vpop.eup %5471 }
 0x8ce   :  { %v2884_v39 = vadd.f32 1.0, %v5472_v26 }
 0x8cf   :  { %5473 = vrcp.f32 %v2877_v37 }
 0x8d0   :  { %5475 = vrcp.f32 %v2884_v39 }
 0x8d9   :  { %v5474_v59 = vpop.eup %5473 }
 0x8da   :  { %v2888_v21 = vmul.f32 %v5474_v59, %v2887_v57  ;;  %v5476_v41 = vpop.eup %5475 }
 0x8db   :  { %v2891_v61 = vsub.f32 1.0, %v5476_v41  ;;  %v2893_v9 = vmul.f32 %v5476_v41, %v7021_v29  ;;  %v2922_v41 = vpop.permute.xlu1 %2921 }
 0x8dc   :  { %v2889_v18 = vadd.f32 %v2888_v21, %v8055_v15  ;;  %vm2923_vm6 = vcmp.eq.s32.totalorder %v2922_v41, 1 }
 0x8de   :  { %5477 = vtanh.f32 %v2889_v18  ;;  %v2930_v18 = vpop.permute.xlu0 %2929 }
 0x8df   :  { %5479 = vpow2.f32 %v3500_v3  ;;  %vm2931_vm5 = vcmp.eq.s32.totalorder %v2930_v18, 1 }
 0x8e8   :  { %v5478_v44 = vpop.eup %5477 }
 0x8e9   :  { %v2892_v16 = vmul.f32 %v5478_v44, %v2891_v61  ;;  %v5480_v22 = vpop.eup %5479 }
 0x8ea   :  { %v2899_v25 = vadd.f32 1.0, %v5480_v22  ;;  %v3246_v22 = vld [vmem:[#allocation10 + $0x38] sm:$0xff] }
 0x8eb   :  { %v2894_v38 = vadd.f32 %v2893_v9, %v2892_v16  ;;  %v3244_v16 = vld [vmem:[#allocation10 + $0x28] sm:$0xff] }
 0x8ec   :  { %5481 = vrcp.f32 %v2899_v25 }
 0x8ed   :  { %v7140_v44 = vsel %vm2923_vm6, %v2894_v38, %v7021_v29  ;;  %v3245_v38 = vld [vmem:[#allocation10 + $0x30] sm:$0xff] }
 0x8ee   :  { %v5259_v25 = vpack.c.bf16 %v3246_v22, %v3245_v38 }
 0x8f6   :  { %v5482_v52 = vpop.eup %5481 }
 0x8fd   :  { %v2868_v50 = vpop.f32.mrb[48].mxu1 }
 0x8fe   :  { %v2902_v47 = vadd.f32 %v2868_v50, %v8056_v4  ;;  %v2870_v1 = vpop.f32.mrb[49].mxu1  ;;  %v3247_v50 = vld [vmem:[#allocation10 + $0x40] sm:$0xff]  ;;  %v3248_v4 = vld [vmem:[#allocation10 + $0x48] sm:$0xff] }
 0x8ff   :  { %v2909_v56 = vadd.f32 %v6892_v31, %v2870_v1  ;;  %v5262_v1 = vpack.c.bf16 %v3248_v4, %v3247_v50 }
 0x900   :  { %v3501_v24 = vmul.f32 -1.442695, %v2902_v47  ;;  %v3249_v47 = vld [vmem:[#allocation10 + $0x50] sm:$0xff] }
 0x901   :  { %v2910_v28 = vmul.f32 %v5482_v52, %v2909_v56  ;;  %v3250_v56 = vld [vmem:[#allocation10 + $0x58] sm:$0xff] }
 0x902   :  { %5483 = vpow2.f32 %v3501_v24  ;;  %v5265_v52 = vpack.c.bf16 %v3250_v56, %v3249_v47  ;;  %v3251_v24 = vld [vmem:[#allocation10 + $0x60] sm:$0xff] }
 0x903   :  { %v2911_v7 = vadd.f32 %v2910_v28, %v8057_v53  ;;  %v3252_v28 = vld [vmem:[#allocation10 + $0x68] sm:$0xff] }
 0x904   :  { %v5268_v53 = vpack.c.bf16 %v3252_v28, %v3251_v24  ;;  %v3506_v24 = vld [vmem:[%s7284_s12] ss:$0 sm:$0xff] }
 0x90c   :  { %v5484_v37 = vpop.eup %5483 }
 0x90d   :  { %v2906_v26 = vadd.f32 1.0, %v5484_v37  ;;  %v3254_v37 = vld [vmem:[#allocation10 + $0x78] sm:$0xff] }
 0x90f   :  { %5485 = vrcp.f32 %v2906_v26 }
 0x910   :  { %5487 = vtanh.f32 %v2911_v7  ;;  %v3253_v7 = vld [vmem:[#allocation10 + $0x70] sm:$0xff] }
 0x911   :  { %v5271_v26 = vpack.c.bf16 %v3254_v37, %v3253_v7 }
 0x919   :  { %v5486_v39 = vpop.eup %5485 }
 0x91a   :  { %v2913_v57 = vsub.f32 1.0, %v5486_v39  ;;  %v5488_v59 = vpop.eup %5487  ;;  %v2915_v15 = vmul.f32 %v5486_v39, %v7016_v49  ;;  %v8059_v39 = vld [vmem:[#allocation99_spill] sm:$0xff] }
 0x91c   :  { %v2914_v21 = vmul.f32 %v5488_v59, %v2913_v57  ;;  %v285_v57 = vadd.f32 %v8059_v39, %v8050_v13  ;;  %v8060_v59 = vld [vmem:[#allocation100_spill] sm:$0xff] }
 0x91e   :  { %v2916_v3 = vadd.f32 %v2915_v15, %v2914_v21  ;;  %v287_v21 = vadd.f32 %v8060_v59, %v7991_v11 }
 0x920   :  { %v7135_v61 = vsel %vm2931_vm5, %v2916_v3, %v7016_v49  ;;  %v3236_v49 = vld [vmem:[%s7282_s10 + $0x68] sm:$0xff] }
 0x921   :  { %3009 = vmatprep.mubr.f32.mxu0 %v7135_v61  ;;  %3080 = vmatprep.mubr.f32.mxu1 %v7135_v61 }
 0x922   :  { %3010 = vmatmul.mubr.f32.vlgmr.msra.gmra.mrb[28].mxu0 %v7140_v44  ;;  %3081 = vmatmul.mubr.f32.vlgmr.msra.gmra.mrb[50].mxu1 %v7140_v44 }
 0x923   :  { %5188 = vmatpush1.bf16.msra.mxu0 %v6067_v19  ;;  %3151 = vmatprep.mubr.f32.mxu0 %v7135_v61  ;;  %v5616_v19 = vmov 0.0|0.0  }
 0x924   :  { %5190 = vmatprep.subr.bf16.mxu0 %v7689_v0  ;;  %5249 = vmatprep.subr.bf16.mxu1 %v5616_v19  ;;  %v3232_v0 = vld [vmem:[%s7282_s10 + $0x48] sm:$0xff] }
 0x927   :  { %5192 = vmatpush1.bf16.msra.mxu0 %v6082_v40  ;;  %v3225_v40 = vld [vmem:[%s7282_s10 + $0x10] sm:$0xff] }
 0x928   :  { %5194 = vmatprep.subr.bf16.mxu0 %v6089_v55  ;;  %v3226_v55 = vld [vmem:[%s7282_s10 + $0x18] sm:$0xff] }
 0x92b   :  { %5196 = vmatpush1.bf16.msra.mxu0 %v6096_v30  ;;  %v5277_v30 = vpack.c.bf16 %v3226_v55, %v3225_v40 }
 0x92c   :  { %5198 = vmatprep.subr.bf16.mxu0 %v6099_v12  ;;  %v3227_v12 = vld [vmem:[%s7282_s10 + $0x20] sm:$0xff] }
 0x92f   :  { %5200 = vmatpush1.bf16.msra.mxu0 %v6104_v2  ;;  %v3223_v2 = vld [vmem:[%s7282_s10] sm:$0xff] }
 0x930   :  { %5202 = vmatprep.subr.bf16.mxu0 %v6107_v48  ;;  %v3228_v48 = vld [vmem:[%s7282_s10 + $0x28] sm:$0xff] }
 0x933   :  { %5204 = vmatpush1.bf16.msra.mxu0 %v6112_v10  ;;  %v3224_v10 = vld [vmem:[%s7282_s10 + $0x8] sm:$0xff] }
 0x934   :  { %5206 = vmatprep.subr.bf16.mxu0 %v6115_v27  ;;  %v5280_v27 = vpack.c.bf16 %v3228_v48, %v3227_v12 }
 0x937   :  { %5208 = vmatpush1.bf16.msra.mxu0 %v7690_v35 }
 0x938   :  { %5210 = vmatprep.subr.bf16.mxu0 %v7691_v8  ;;  %v3233_v8 = vld [vmem:[%s7282_s10 + $0x50] sm:$0xff] }
 0x93b   :  { %5212 = vmatpush1.bf16.msra.mxu0 %v6128_v36  ;;  %v5274_v36 = vpack.c.bf16 %v3224_v10, %v3223_v2 }
 0x93c   :  { %5214 = vmatprep.subr.bf16.mxu0 %v7692_v43  ;;  %v3234_v43 = vld [vmem:[%s7282_s10 + $0x58] sm:$0xff] }
 0x93f   :  { %5216 = vmatpush1.bf16.msra.mxu0 %v6145_v46  ;;  %v3229_v46 = vld [vmem:[%s7282_s10 + $0x30] sm:$0xff] }
 0x940   :  { %5218 = vmatprep.subr.bf16.mxu0 %v7693_v33  ;;  %v8058_v33 = vmov 0.0  }
 0x941   :  { %3643 = vmatprep.mubr.msk.f32.mxu1 %vm5617_vm7, %v8058_v33 }
 0x943   :  { %5220 = vmatpush1.bf16.msra.mxu0 %v6158_v20  ;;  %v3230_v20 = vld [vmem:[%s7282_s10 + $0x38] sm:$0xff] }
 0x944   :  { %5222 = vmatprep.subr.bf16.mxu0 %v7694_v63  ;;  %v5289_v63 = vpack.c.bf16 %v3234_v43, %v3233_v8  ;;  %v3207_v43 = vpop.permute.xlu0 %3206 }
 0x945   :  { %vm3208_vm8 = vcmp.eq.s32.totalorder %v3207_v43, 1 }
 0x947   :  { %5224 = vmatpush1.bf16.msra.mxu0 %v6171_v6  ;;  %v5283_v6 = vpack.c.bf16 %v3230_v20, %v3229_v46  ;;  %v8062_v20 = vld [vmem:[#allocation106_spill] sm:$0xff] }
 0x948   :  { %5226 = vmatprep.subr.bf16.mxu0 %v6175_v23  ;;  %v3231_v23 = vld [vmem:[%s7282_s10 + $0x40] sm:$0xff] }
 0x949   :  { %v5286_v35 = vpack.c.bf16 %v3232_v0, %v3231_v23 }
 0x94b   :  { %5228 = vmatpush1.bf16.msra.mxu0 %v7756_v17  ;;  %v3235_v17 = vld [vmem:[%s7282_s10 + $0x60] sm:$0xff] }
 0x94c   :  { %5230 = vmatprep.subr.bf16.mxu0 %v7996_v58  ;;  %v5292_v29 = vpack.c.bf16 %v3236_v49, %v3235_v17  ;;  %v3237_v58 = vld [vmem:[%s7282_s10 + $0x70] sm:$0xff] }
 0x94f   :  { %5232 = vmatpush1.bf16.msra.mxu0 %v7999_v14  ;;  %v3238_v14 = vld [vmem:[%s7282_s10 + $0x78] sm:$0xff] }
 0x950   :  { %5234 = vmatprep.subr.bf16.mxu0 %v8000_v42  ;;  %v5295_v42 = vpack.c.bf16 %v3238_v14, %v3237_v58  ;;  %v8063_v14 = vld [vmem:[#allocation110_spill] sm:$0xff] }
 0x953   :  { %5236 = vmatpush1.bf16.msra.mxu0 %v8003_v32  ;;  %v3239_v32 = vld [vmem:[#allocation10] sm:$0xff] }
 0x954   :  { %5238 = vmatprep.subr.bf16.mxu0 %v8004_v60  ;;  %v3240_v60 = vld [vmem:[#allocation10 + $0x8] sm:$0xff] }
 0x957   :  { %5240 = vmatpush1.bf16.msra.mxu0 %v8007_v34  ;;  %v5250_v34 = vpack.c.bf16 %v3240_v60, %v3239_v32 }
 0x958   :  { %5242 = vmatprep.subr.bf16.mxu0 %v8008_v5  ;;  %v3241_v5 = vld [vmem:[#allocation10 + $0x10] sm:$0xff] }
 0x959   :  { %5251 = vmatpush3.bf16.msra.mxu1 %v5250_v34 }
 0x95a   :  { %5252 = vmatprep.subr.bf16.mxu1 %v5616_v19 }
 0x95b   :  { %5244 = vmatpush1.bf16.msra.mxu0 %v8011_v51  ;;  %v3242_v51 = vld [vmem:[#allocation10 + $0x18] sm:$0xff] }
 0x95c   :  { %5246 = vmatprep.subr.bf16.mxu0 %v8012_v54  ;;  %v5253_v54 = vpack.c.bf16 %v3242_v51, %v3241_v5 }
 0x95e   :  { %5254 = vmatpush3.bf16.msra.mxu1 %v5253_v54  ;;  %v8064_v54 = vld [vmem:[#allocation111_spill] sm:$0xff] }
 0x95f   :  { %5248 = vmatpush1.bf16.msra.mxu0 %v8015_v62  ;;  %5255 = vmatprep.subr.bf16.mxu1 %v5616_v19  ;;  %v3243_v62 = vld [vmem:[#allocation10 + $0x20] sm:$0xff] }
 0x960   :  { %5273 = vmatprep.subr.bf16.mxu0 %v5616_v19  ;;  %v5256_v9 = vpack.c.bf16 %v3244_v16, %v3243_v62 }
 0x962   :  { %3152 = vmatmul.mubr.f32.vlgmr.msra.gmra.mrb[30].mxu0 %v7140_v44  ;;  %5257 = vmatpush3.bf16.msra.mxu1 %v5256_v9 }
 0x963   :  { %5275 = vmatpush3.bf16.msra.mxu0 %v5274_v36  ;;  %3678 = vmatprep.mubr.msk.f32.mxu0 %vm5617_vm7, %v8058_v33  ;;  %v8061_v36 = vld [vmem:[#allocation108_spill] sm:$0xff] }
 0x964   :  { %5276 = vmatprep.subr.bf16.mxu0 %v5616_v19  ;;  %5258 = vmatprep.subr.bf16.mxu1 %v5616_v19 }
 0x966   :  { %5260 = vmatpush3.bf16.msra.mxu1 %v5259_v25  ;;  %v3215_v25 = vpop.permute.xlu1 %3214 }
 0x967   :  { %5278 = vmatpush3.bf16.msra.mxu0 %v5277_v30  ;;  %5261 = vmatprep.subr.bf16.mxu1 %v5616_v19  ;;  %vm3216_vm9 = vcmp.eq.s32.totalorder %v3215_v25, 1 }
 0x968   :  { %5279 = vmatprep.subr.bf16.mxu0 %v5616_v19 }
 0x96a   :  { %5263 = vmatpush3.bf16.msra.mxu1 %v5262_v1 }
 0x96b   :  { %5281 = vmatpush3.bf16.msra.mxu0 %v5280_v27  ;;  %5264 = vmatprep.subr.bf16.mxu1 %v5616_v19 }
 0x96c   :  { %5282 = vmatprep.subr.bf16.mxu0 %v5616_v19 }
 0x96e   :  { %5266 = vmatpush3.bf16.msra.mxu1 %v5265_v52 }
 0x96f   :  { %5284 = vmatpush3.bf16.msra.mxu0 %v5283_v6  ;;  %5267 = vmatprep.subr.bf16.mxu1 %v5616_v19 }
 0x970   :  { %5285 = vmatprep.subr.bf16.mxu0 %v5616_v19 }
 0x972   :  { %5269 = vmatpush3.bf16.msra.mxu1 %v5268_v53 }
 0x973   :  { %5287 = vmatpush3.bf16.msra.mxu0 %v5286_v35  ;;  %5270 = vmatprep.subr.bf16.mxu1 %v5616_v19 }
 0x974   :  { %5288 = vmatprep.subr.bf16.mxu0 %v5616_v19 }
 0x976   :  { %5272 = vmatpush3.bf16.msra.mxu1 %v5271_v26 }
 0x977   :  { %5290 = vmatpush3.bf16.msra.mxu0 %v5289_v63 }
 0x978   :  { %5291 = vmatprep.subr.bf16.mxu0 %v5616_v19 }
 0x97b   :  { %5293 = vmatpush3.bf16.msra.mxu0 %v5292_v29 }
 0x97c   :  { %5294 = vmatprep.subr.bf16.mxu0 %v5616_v19 }
 0x97f   :  { %5296 = vmatpush3.bf16.msra.mxu0 %v5295_v42 }
 0x9f5   :  { %v3011_v15 = vpop.f32.mrb[28].mxu0  ;;  %v3082_v18 = vpop.f32.mrb[50].mxu1 }
 0x9f6   :  { %v3158_v3 = vadd.f32 %v3011_v15, %v285_v57  ;;  %v3013_v41 = vpop.f32.mrb[29].mxu0  ;;  %v3084_v2 = vpop.f32.mrb[51].mxu1  ;;  %v3172_v27 = vadd.f32 %v8054_v45, %v3082_v18 }
 0x9f7   :  { %v3165_v10 = vadd.f32 %v3013_v41, %v287_v21  ;;  %v3180_v40 = vadd.f32 %v3084_v2, %v8061_v36 }
 0x9f8   :  { %v3502_v55 = vmul.f32 -1.442695, %v3158_v3 }
 0x9f9   :  { %v3503_v30 = vmul.f32 -1.442695, %v3165_v10  ;;  %v3504_v23 = vmul.f32 -1.442695, %v3180_v40 }
 0x9fa   :  { %5489 = vpow2.f32 %v3502_v55 }
 0x9fb   :  { %5491 = vpow2.f32 %v3503_v30 }
 0xa04   :  { %v5490_v19 = vpop.eup %5489 }
 0xa05   :  { %v3162_v12 = vadd.f32 1.0, %v5490_v19  ;;  %v5492_v48 = vpop.eup %5491 }
 0xa06   :  { %v3169_v13 = vadd.f32 1.0, %v5492_v48 }
 0xa07   :  { %5493 = vrcp.f32 %v3162_v12 }
 0xa08   :  { %5495 = vrcp.f32 %v3169_v13 }
 0xa11   :  { %v5494_v11 = vpop.eup %5493 }
 0xa12   :  { %v3173_v46 = vmul.f32 %v5494_v11, %v3172_v27  ;;  %v5496_v0 = vpop.eup %5495 }
 0xa13   :  { %v3176_v35 = vsub.f32 1.0, %v5496_v0  ;;  %v3178_v63 = vmul.f32 %v5496_v0, %v7140_v44 }
 0xa14   :  { %v3174_v6 = vadd.f32 %v3173_v46, %v8062_v20 }
 0xa16   :  { %5497 = vtanh.f32 %v3174_v6 }
 0xa17   :  { %5499 = vpow2.f32 %v3504_v23 }
 0xa20   :  { %v5498_v8 = vpop.eup %5497 }
 0xa21   :  { %v3177_v33 = vmul.f32 %v5498_v8, %v3176_v35  ;;  %v5500_v45 = vpop.eup %5499 }
 0xa22   :  { %v3184_v29 = vadd.f32 1.0, %v5500_v45 }
 0xa23   :  { %v3179_v17 = vadd.f32 %v3178_v63, %v3177_v33 }
 0xa24   :  { %5501 = vrcp.f32 %v3184_v29 }
 0xa25   :  { %v3209_v49 = vsel %vm3208_vm8, %v3179_v17, %v7140_v44 }
 0xa26   :  { %3679 = vmatmul.mubr.f32.vlgmr.msra.gmra.mrb[32].mxu0 %v3209_v49 }
 0xa2e   :  { %v5502_v34 = vpop.eup %5501 }
 0xa35   :  { %v3153_v58 = vpop.f32.mrb[30].mxu0 }
 0xa36   :  { %v3187_v42 = vadd.f32 %v3153_v58, %v8063_v14  ;;  %v3155_v32 = vpop.f32.mrb[31].mxu0 }
 0xa37   :  { %v3194_v60 = vadd.f32 %v6892_v31, %v3155_v32 }
 0xa38   :  { %v3505_v5 = vmul.f32 -1.442695, %v3187_v42 }
 0xa39   :  { %v3195_v51 = vmul.f32 %v5502_v34, %v3194_v60 }
 0xa3a   :  { %5503 = vpow2.f32 %v3505_v5 }
 0xa3b   :  { %v3196_v62 = vadd.f32 %v3195_v51, %v8064_v54 }
 0xa44   :  { %v5504_v16 = vpop.eup %5503 }
 0xa45   :  { %v3191_v9 = vadd.f32 1.0, %v5504_v16 }
 0xa47   :  { %5505 = vrcp.f32 %v3191_v9 }
 0xa48   :  { %5507 = vtanh.f32 %v3196_v62 }
 0xa51   :  { %v5506_v44 = vpop.eup %5505 }
 0xa52   :  { %v3198_v38 = vsub.f32 1.0, %v5506_v44  ;;  %v5508_v22 = vpop.eup %5507  ;;  %v3200_v4 = vmul.f32 %v5506_v44, %v7135_v61 }
 0xa54   :  { %v3199_v50 = vmul.f32 %v5508_v22, %v3198_v38 }
 0xa56   :  { %v3201_v47 = vadd.f32 %v3200_v4, %v3199_v50 }
 0xa58   :  { %v3217_v31 = vsel %vm3216_vm9, %v3201_v47, %v7135_v61 }
 0xa59   :  { %3644 = vmatmul.mubr.f32.vlgmr.msra.gmra.mrb[52].mxu1 %v3217_v31 }
 0xaf9   :  { %v3391_v1 = vpop.f32.mrb[32].mxu0 }
 0xafa   :  { %v3680_v56 = vpop.f32.mrb[33].mxu0 }
 0xb2c   :  { %v3321_v52 = vpop.f32.mrb[52].mxu1 }
 0xb2d   :  { %v3392_v28 = vadd.f32 %v3391_v1, %v3321_v52  ;;  %v3645_v53 = vpop.f32.mrb[53].mxu1 }
 0xb2f   :  { %v3402_v7 = vadd.f32 %v3506_v24, %v3392_v28 }
 0xb31   :  { %3403 = vst [vmem:[#allocation11] sm:$0xff] %v3402_v7 }
 0xb32   :  { %5588 = shalt.err (!%p5585_p0)
}
 0xb33   :  { %s5589_s21 = scalar_lea.hbm %s7285_s13, 128 }
 0xb34   :  { %p5590_p1 = scmp.ne.s32.totalorder %s7285_s13, %s5589_s21  ;;  %p5593_p2 = scmp.lt.u32.totalorder %s5589_s21, %s7285_s13 }
 0xb36   :  { %p5595_p3 = pnand %p5593_p2, %p5590_p1 }
 0xb38   :  { %5598 = shalt.err (!%p5595_p3)
}
 0xb39   :  { %3413 = dma.vmem_to_hbm [thread:$0]  %s3411_s11, 128, %s7285_s13, [#allocation7]  }
 0xb3a   :  { %5603 = dma.done.wait [#allocation7], 128  }
 0xb3b   :  { %5604 = vsyncadd [#allocation7], 4294967168 }
 0xb3c   :  { %3417 = vsyncpa [#allocation6], 1 }
 0xb3d   :  { %3418 = vsyncpa [#allocation9], 1 }
 0xb3e   :  { %3419 = vsyncpa [#allocation7], 1 }

</bundles_post_ra>
